<compile_context>
chip_gen: v7x
topology: tpu7x:2x2x1
jax: 0.10.0
libtpu: 0.0.40
codegen_flags: <defaults>
</compile_context>

<pallas_src>
import functools

import jax
import jax.numpy as jnp
from jax import lax
from jax.experimental import pallas as pl
from jax.experimental.pallas import tpu as pltpu

BN_EPS = 1e-5
BN_SCALE = float(1.0 / (1.0 + BN_EPS) ** 0.5)   # eval-mode BatchNorm, fresh stats
LEAKY_SLOPE = 0.01                               # nn.LeakyReLU default


# ----------------------------------------------------------------------------
# Fused kernel (single grid point; everything VMEM/SMEM resident)
# ----------------------------------------------------------------------------
def hglenet_kernel(x_ref, wt_ref, bt_ref, w11_ref, b11_ref,
                   pp1_ref, pp2_ref, pp3_ref, ppair_ref,
                   wl_ref, bl_ref, gg_ref, wg_ref, bg_ref,
                   o_ref, *, B, C, num_T, kernels, Tcs, bn_eps):
    BC = B * C
    x = x_ref[...]                                    # (BC, T) f32, time on lanes

    # ---- Tception branches: conv -> +bias -> square -> avg-pool -> log ------
    pool_refs = (pp1_ref, pp2_ref, pp3_ref)
    branch_logs = []                                  # (num_T*BC, Tp_i), rows = nt*BC + rc
    for i, K in enumerate(kernels):
        Tc = Tcs[i]
        accs = [None] * num_T
        for j in range(K):                            # one shifted view per tap,
            tap = x[:, j:j + Tc]                      # reused across all num_T filters
            for nt in range(num_T):
                term = wt_ref[i * num_T + nt, j] * tap
                accs[nt] = term if accs[nt] is None else accs[nt] + term
        sq_rows = []
        for nt in range(num_T):
            y = accs[nt] + bt_ref[i * num_T + nt]     # conv bias
            sq_rows.append(y * y)                     # PowerLayer x^2
        sq_all = jnp.concatenate(sq_rows, axis=0)     # (num_T*BC, Tc)
        pooled = jnp.dot(sq_all, pool_refs[i][...],
                         preferred_element_type=jnp.float32)   # (num_T*BC, Tp_i)
        branch_logs.append(jnp.log(pooled))
    L = jnp.concatenate(branch_logs, axis=1)          # (num_T*BC, Ttot), torch cat order

    # ---- BN_t (folded) + 1x1 conv + LeakyReLU + AvgPool(1,2) + BN_t_ (folded)
    ppair = ppair_ref[...]                            # (Ttot, Tp2), entries 0.5*BN_SCALE
    L_nt = [L[nt * BC:(nt + 1) * BC, :] for nt in range(num_T)]   # (BC, Ttot) per channel
    feat_parts = []
    for no in range(num_T):
        y = b11_ref[no] + w11_ref[no, 0] * L_nt[0]    # w11 already has BN_t scale folded
        for ni in range(1, num_T):
            y = y + w11_ref[no, ni] * L_nt[ni]
        y = jnp.where(y >= 0.0, y, LEAKY_SLOPE * y)   # LeakyReLU
        feat_parts.append(jnp.dot(y, ppair, preferred_element_type=jnp.float32))
    # torch permute(0,2,1,3)+reshape -> columns ordered (nt, pooled-time)
    feat = jnp.concatenate(feat_parts, axis=1)        # (BC, F), rows rc = b*C + c
    Fdim = feat.shape[1]

    # ---- local_filter_fun: relu(x * w - bias), applied per batch block -------
    wl = wl_ref[...]                                   # (C, F)
    bl = bl_ref[...]                                   # (C, 1)
    h_b = []
    for b in range(B):
        fb = feat[b * C:(b + 1) * C, :]               # (C, F)
        h_b.append(jnp.maximum(fb * wl - bl, 0.0))

    # ---- apply_bn: fresh BatchNorm1d -> batch stats over (B, F) per channel --
    cnt = float(B * Fdim)
    mean = sum(jnp.sum(hb, axis=1, keepdims=True) for hb in h_b) / cnt     # (C, 1)
    d_b = [hb - mean for hb in h_b]
    var = sum(jnp.sum(db * db, axis=1, keepdims=True) for db in d_b) / cnt  # (C, 1)
    inv = lax.rsqrt(var + bn_eps)
    hn_b = [db * inv for db in d_b]                                # normalized (C, F)

    # ---- adjacency + GraphConvolution + bn_ (folded) + readout ---------------
    gg = gg_ref[...]                                   # global_adj + global_adj^T
    row = lax.broadcasted_iota(jnp.int32, (C, C), 0)
    col = lax.broadcasted_iota(jnp.int32, (C, C), 1)
    eye = (row == col).astype(jnp.float32)             # identity built in-kernel
    wg = wg_ref[...]                                   # w_gcn * BN_SCALE
    bg = bg_ref[...]                                   # b_gcn * BN_SCALE
    reps = []
    for b in range(B):                                 # B=2 -> unrolled 2-D dots
        hb = hn_b[b]                                   # (C, F)
        # self-similarity: hb @ hb^T (contract feature axis of both operands)
        s = lax.dot_general(hb, hb, (((1,), (1,)), ((), ())),
                            preferred_element_type=jnp.float32)   # (C, C)
        adj = jnp.maximum(s * gg, 0.0) + eye
        # adj is symmetric, so row sums == column sums; use both reductions to
        # apply D^{-1/2} A D^{-1/2} without an in-kernel transpose.
        rs_c = jnp.sum(adj, axis=1, keepdims=True)
        rs_c = rs_c + (rs_c == 0.0).astype(jnp.float32)
        rs_r = jnp.sum(adj, axis=0, keepdims=True)
        rs_r = rs_r + (rs_r == 0.0).astype(jnp.float32)
        adjn = adj * lax.rsqrt(rs_c) * lax.rsqrt(rs_r)
        hx = jnp.dot(adjn, hb, preferred_element_type=jnp.float32)        # (C, F)
        out1 = jnp.dot(hx, wg, preferred_element_type=jnp.float32) - bg   # (C, OG)
        # Reference softmax is over a size-1 axis (identically 1), so the
        # attention readout equals the plain channel sum (bit-identical).
        reps.append(jnp.sum(out1, axis=0, keepdims=True))                 # (1, OG)
    o_ref[...] = jnp.concatenate(reps, axis=0)                            # (B, OG)


# ----------------------------------------------------------------------------
# Wrapper: parameter folding + one pallas_call, all under jax.jit
# ----------------------------------------------------------------------------
def make_forward(cfg):
    C = cfg['channel']
    num_T = cfg['num_T']
    pool = cfg['pool']
    step = cfg['pool_step']
    kernels = tuple(cfg['kernels'])
    OG = cfg['out_graph']

    def forward(x, params):
        B, T = x.shape[0], x.shape[-1]
        BC = B * C
        Tcs = tuple(T - k + 1 for k in kernels)
        Tps = tuple((tc - pool) // step + 1 for tc in Tcs)
        Ttot = sum(Tps)
        Tp2 = (Ttot - 2) // 2 + 1

        xs = x[:, 0].reshape(BC, T)                   # in_chan == 1

        # constant pool matrices (constant-folded by XLA under jit)
        def pool_mat(t_in, t_out, length, stride, scale):
            src = jnp.arange(t_in)[:, None]
            dst = jnp.arange(t_out)[None, :]
            m = ((src >= dst * stride) & (src < dst * stride + length))
            return m.astype(jnp.float32) * scale

        pmats = [pool_mat(Tcs[i], Tps[i], pool, step, 1.0 / pool) for i in range(3)]
        ppair = pool_mat(Ttot, Tp2, 2, 2, 0.5 * BN_SCALE)      # AvgPool(1,2) + BN_t_

        # pack temporal-conv weights (zero-padded to a common tap count) for SMEM
        Kmax = max(kernels)
        wt = jnp.concatenate(
            [jnp.pad(params['tconv_w'][i], ((0, 0), (0, Kmax - kernels[i])))
             for i in range(3)], axis=0)              # (3*num_T, Kmax)
        bt = jnp.concatenate([params['tconv_b'][i] for i in range(3)], axis=0)

        w11 = params['oxo_w'] * BN_SCALE              # (out, in), BN_t folded
        b11 = params['oxo_b']                         # (num_T,)

        wl = params['w_local']                        # (C, F), applied per batch in-kernel
        bl = params['b_local']                        # (C, 1)
        wg_s = params['w_gcn'] * BN_SCALE             # bn_ folded
        bg_s = params['b_gcn'] * BN_SCALE
        gg = params['gg']

        kernel = functools.partial(
            hglenet_kernel, B=B, C=C, num_T=num_T,
            kernels=kernels, Tcs=Tcs, bn_eps=BN_EPS)

        def vspec(shape):
            nd = len(shape)
            return pl.BlockSpec(shape, lambda i, _nd=nd: (0,) * _nd)

        def sspec():
            return pl.BlockSpec(memory_space=pltpu.MemorySpace.SMEM)

        out = pl.pallas_call(
            kernel,
            out_shape=jax.ShapeDtypeStruct((B, OG), jnp.float32),
            grid=(1,),
            in_specs=[
                vspec(xs.shape),
                sspec(), sspec(), sspec(), sspec(),               # wt, bt, w11, b11
                vspec(pmats[0].shape), vspec(pmats[1].shape), vspec(pmats[2].shape),
                vspec(ppair.shape),
                vspec(wl.shape), vspec(bl.shape),
                vspec(gg.shape),
                vspec(wg_s.shape), vspec(bg_s.shape),
            ],
            out_specs=vspec((B, OG)),
            compiler_params=pltpu.CompilerParams(
                dimension_semantics=("arbitrary",)),
        )(xs, wt, bt, w11, b11, pmats[0], pmats[1], pmats[2], ppair,
          wl, bl, gg, wg_s, bg_s)
        return out

    return jax.jit(forward)


# ----------------------------------------------------------------------------
# Main
# ----------------------------------------------------------------------------
if __name__ == "__main__":
    B, in_chan, C, T = 2, 1, 8, 128
    sampling_rate = 40
    num_T = 4
    pool, pool_step_rate = 16, 0.25
    out_graph = 16
    kernels = [int(0.5 * sampling_rate), int(0.2 * sampling_rate), int(0.1 * sampling_rate)]
    step = int(pool_step_rate * pool)
    cfg = dict(channel=C, num_T=num_T, pool=pool, pool_step=step,
               kernels=kernels, out_graph=out_graph)

    # analytic mirror of get_size_temporal -> feature dim after temporal block
    tps = [((T - k + 1) - pool) // step + 1 for k in kernels]
    ttot = sum(tps)
    feat_dim = num_T * ((ttot - 2) // 2 + 1)          # = 156 for these sizes

    key = jax.random.PRNGKey(0)
    ks = jax.random.split(key, 12)

    def uinit(k, shape, bound):
        return jax.random.uniform(k, shape, jnp.float32, -bound, bound)

    def xavier(k, shape, gain=1.0):
        b = gain * (6.0 / (shape[0] + shape[1])) ** 0.5
        return uinit(k, shape, b)

    params = {
        # temporal conv weights (out=num_T, taps=K) and biases, one per branch
        'tconv_w': [uinit(ks[i], (num_T, kernels[i]), 1.0 / kernels[i] ** 0.5)
                    for i in range(3)],
        'tconv_b': [uinit(ks[3 + i], (num_T,), 1.0 / kernels[i] ** 0.5)
                    for i in range(3)],
        # 1x1 conv stored torch-style (out, in)
        'oxo_w': uinit(ks[6], (num_T, num_T), 1.0 / num_T ** 0.5),
        'oxo_b': uinit(ks[7], (num_T,), 1.0 / num_T ** 0.5),
        'w_local': xavier(ks[8], (C, feat_dim)),
        'b_local': jnp.zeros((C, 1), jnp.float32),          # torch (1,C,1), zeros
        'w_gcn': xavier(ks[9], (feat_dim, out_graph), gain=1.44),
        'b_gcn': jnp.zeros((1, out_graph), jnp.float32),    # torch (1,1,OG), zeros
    }
    g = xavier(ks[10], (C, C))
    params['gg'] = g + g.T                                  # global_adj + global_adj^T

    x = jax.random.normal(ks[11], (B, in_chan, C, T), jnp.float32)

    forward = make_forward(cfg)
    out = forward(x, params)
    out = jax.block_until_ready(out)
    assert out.shape == (B, out_graph) and bool(jnp.all(jnp.isfinite(out)))
    print("KERNEL_OK")
</pallas_src>

<mosaic_0001>
module attributes {stable_mosaic.version = 11 : i64} {
  func.func @hglenet_kernel(%arg0: i32, %arg1: memref<16x128xf32, #tpu.memory_space<vmem>>, %arg2: memref<12x20xf32, #tpu.memory_space<smem>>, %arg3: memref<12xf32, #tpu.memory_space<smem>>, %arg4: memref<4x4xf32, #tpu.memory_space<smem>>, %arg5: memref<4xf32, #tpu.memory_space<smem>>, %arg6: memref<109x24xf32, #tpu.memory_space<vmem>>, %arg7: memref<121x27xf32, #tpu.memory_space<vmem>>, %arg8: memref<125x28xf32, #tpu.memory_space<vmem>>, %arg9: memref<79x39xf32, #tpu.memory_space<vmem>>, %arg10: memref<8x156xf32, #tpu.memory_space<vmem>>, %arg11: memref<8x1xf32, #tpu.memory_space<vmem>>, %arg12: memref<8x8xf32, #tpu.memory_space<vmem>>, %arg13: memref<156x16xf32, #tpu.memory_space<vmem>>, %arg14: memref<1x16xf32, #tpu.memory_space<vmem>>, %arg15: memref<2x16xf32, #tpu.memory_space<vmem>>) attributes {dimension_semantics = [#tpu.dimension_semantics<arbitrary>], iteration_bounds = array<i64: 1>, scalar_prefetch = 0 : i64, scratch_operands = 0 : i64, tpu.core_type = #tpu.core_type<tc>, window_params = [{pipeline_mode = #tpu.pipeline_mode<synchronous>, transform_indices = @transform_0, window_bounds = array<i64: 16, 128>}, {transform_indices = @transform_1, window_bounds = array<i64: 12, 20>}, {transform_indices = @transform_2, window_bounds = array<i64: 12>}, {transform_indices = @transform_3, window_bounds = array<i64: 4, 4>}, {transform_indices = @transform_4, window_bounds = array<i64: 4>}, {pipeline_mode = #tpu.pipeline_mode<synchronous>, transform_indices = @transform_5, window_bounds = array<i64: 109, 24>}, {pipeline_mode = #tpu.pipeline_mode<synchronous>, transform_indices = @transform_6, window_bounds = array<i64: 121, 27>}, {pipeline_mode = #tpu.pipeline_mode<synchronous>, transform_indices = @transform_7, window_bounds = array<i64: 125, 28>}, {pipeline_mode = #tpu.pipeline_mode<synchronous>, transform_indices = @transform_8, window_bounds = array<i64: 79, 39>}, {pipeline_mode = #tpu.pipeline_mode<synchronous>, transform_indices = @transform_9, window_bounds = array<i64: 8, 156>}, {pipeline_mode = #tpu.pipeline_mode<synchronous>, transform_indices = @transform_10, window_bounds = array<i64: 8, 1>}, {pipeline_mode = #tpu.pipeline_mode<synchronous>, transform_indices = @transform_11, window_bounds = array<i64: 8, 8>}, {pipeline_mode = #tpu.pipeline_mode<synchronous>, transform_indices = @transform_12, window_bounds = array<i64: 156, 16>}, {pipeline_mode = #tpu.pipeline_mode<synchronous>, transform_indices = @transform_13, window_bounds = array<i64: 1, 16>}, {pipeline_mode = #tpu.pipeline_mode<synchronous>, transform_indices = @transform_14, window_bounds = array<i64: 2, 16>}]} {
    %c0 = arith.constant 0 : index
    %c0_0 = arith.constant 0 : index
    %0 = vector.load %arg1[%c0, %c0_0] : memref<16x128xf32, #tpu.memory_space<vmem>>, vector<16x128xf32>
    %1 = vector.extract_strided_slice %0 {offsets = [0, 0], sizes = [16, 109], strides = [1, 1]} : vector<16x128xf32> to vector<16x109xf32>
    %c0_1 = arith.constant 0 : index
    %c0_2 = arith.constant 0 : index
    %2 = memref.load %arg2[%c0_1, %c0_2] : memref<12x20xf32, #tpu.memory_space<smem>>
    %3 = vector.broadcast %2 : f32 to vector<16x109xf32>
    %4 = arith.mulf %3, %1 : vector<16x109xf32>
    %c1 = arith.constant 1 : index
    %c0_3 = arith.constant 0 : index
    %5 = memref.load %arg2[%c1, %c0_3] : memref<12x20xf32, #tpu.memory_space<smem>>
    %6 = vector.broadcast %5 : f32 to vector<16x109xf32>
    %7 = arith.mulf %6, %1 : vector<16x109xf32>
    %c2 = arith.constant 2 : index
    %c0_4 = arith.constant 0 : index
    %8 = memref.load %arg2[%c2, %c0_4] : memref<12x20xf32, #tpu.memory_space<smem>>
    %9 = vector.broadcast %8 : f32 to vector<16x109xf32>
    %10 = arith.mulf %9, %1 : vector<16x109xf32>
    %c3 = arith.constant 3 : index
    %c0_5 = arith.constant 0 : index
    %11 = memref.load %arg2[%c3, %c0_5] : memref<12x20xf32, #tpu.memory_space<smem>>
    %12 = vector.broadcast %11 : f32 to vector<16x109xf32>
    %13 = arith.mulf %12, %1 : vector<16x109xf32>
    %14 = vector.extract_strided_slice %0 {offsets = [0, 1], sizes = [16, 109], strides = [1, 1]} : vector<16x128xf32> to vector<16x109xf32>
    %c0_6 = arith.constant 0 : index
    %c1_7 = arith.constant 1 : index
    %15 = memref.load %arg2[%c0_6, %c1_7] : memref<12x20xf32, #tpu.memory_space<smem>>
    %16 = vector.broadcast %15 : f32 to vector<16x109xf32>
    %17 = arith.mulf %16, %14 : vector<16x109xf32>
    %18 = arith.addf %4, %17 : vector<16x109xf32>
    %c1_8 = arith.constant 1 : index
    %c1_9 = arith.constant 1 : index
    %19 = memref.load %arg2[%c1_8, %c1_9] : memref<12x20xf32, #tpu.memory_space<smem>>
    %20 = vector.broadcast %19 : f32 to vector<16x109xf32>
    %21 = arith.mulf %20, %14 : vector<16x109xf32>
    %22 = arith.addf %7, %21 : vector<16x109xf32>
    %c2_10 = arith.constant 2 : index
    %c1_11 = arith.constant 1 : index
    %23 = memref.load %arg2[%c2_10, %c1_11] : memref<12x20xf32, #tpu.memory_space<smem>>
    %24 = vector.broadcast %23 : f32 to vector<16x109xf32>
    %25 = arith.mulf %24, %14 : vector<16x109xf32>
    %26 = arith.addf %10, %25 : vector<16x109xf32>
    %c3_12 = arith.constant 3 : index
    %c1_13 = arith.constant 1 : index
    %27 = memref.load %arg2[%c3_12, %c1_13] : memref<12x20xf32, #tpu.memory_space<smem>>
    %28 = vector.broadcast %27 : f32 to vector<16x109xf32>
    %29 = arith.mulf %28, %14 : vector<16x109xf32>
    %30 = arith.addf %13, %29 : vector<16x109xf32>
    %31 = vector.extract_strided_slice %0 {offsets = [0, 2], sizes = [16, 109], strides = [1, 1]} : vector<16x128xf32> to vector<16x109xf32>
    %c0_14 = arith.constant 0 : index
    %c2_15 = arith.constant 2 : index
    %32 = memref.load %arg2[%c0_14, %c2_15] : memref<12x20xf32, #tpu.memory_space<smem>>
    %33 = vector.broadcast %32 : f32 to vector<16x109xf32>
    %34 = arith.mulf %33, %31 : vector<16x109xf32>
    %35 = arith.addf %18, %34 : vector<16x109xf32>
    %c1_16 = arith.constant 1 : index
    %c2_17 = arith.constant 2 : index
    %36 = memref.load %arg2[%c1_16, %c2_17] : memref<12x20xf32, #tpu.memory_space<smem>>
    %37 = vector.broadcast %36 : f32 to vector<16x109xf32>
    %38 = arith.mulf %37, %31 : vector<16x109xf32>
    %39 = arith.addf %22, %38 : vector<16x109xf32>
    %c2_18 = arith.constant 2 : index
    %c2_19 = arith.constant 2 : index
    %40 = memref.load %arg2[%c2_18, %c2_19] : memref<12x20xf32, #tpu.memory_space<smem>>
    %41 = vector.broadcast %40 : f32 to vector<16x109xf32>
    %42 = arith.mulf %41, %31 : vector<16x109xf32>
    %43 = arith.addf %26, %42 : vector<16x109xf32>
    %c3_20 = arith.constant 3 : index
    %c2_21 = arith.constant 2 : index
    %44 = memref.load %arg2[%c3_20, %c2_21] : memref<12x20xf32, #tpu.memory_space<smem>>
    %45 = vector.broadcast %44 : f32 to vector<16x109xf32>
    %46 = arith.mulf %45, %31 : vector<16x109xf32>
    %47 = arith.addf %30, %46 : vector<16x109xf32>
    %48 = vector.extract_strided_slice %0 {offsets = [0, 3], sizes = [16, 109], strides = [1, 1]} : vector<16x128xf32> to vector<16x109xf32>
    %c0_22 = arith.constant 0 : index
    %c3_23 = arith.constant 3 : index
    %49 = memref.load %arg2[%c0_22, %c3_23] : memref<12x20xf32, #tpu.memory_space<smem>>
    %50 = vector.broadcast %49 : f32 to vector<16x109xf32>
    %51 = arith.mulf %50, %48 : vector<16x109xf32>
    %52 = arith.addf %35, %51 : vector<16x109xf32>
    %c1_24 = arith.constant 1 : index
    %c3_25 = arith.constant 3 : index
    %53 = memref.load %arg2[%c1_24, %c3_25] : memref<12x20xf32, #tpu.memory_space<smem>>
    %54 = vector.broadcast %53 : f32 to vector<16x109xf32>
    %55 = arith.mulf %54, %48 : vector<16x109xf32>
    %56 = arith.addf %39, %55 : vector<16x109xf32>
    %c2_26 = arith.constant 2 : index
    %c3_27 = arith.constant 3 : index
    %57 = memref.load %arg2[%c2_26, %c3_27] : memref<12x20xf32, #tpu.memory_space<smem>>
    %58 = vector.broadcast %57 : f32 to vector<16x109xf32>
    %59 = arith.mulf %58, %48 : vector<16x109xf32>
    %60 = arith.addf %43, %59 : vector<16x109xf32>
    %c3_28 = arith.constant 3 : index
    %c3_29 = arith.constant 3 : index
    %61 = memref.load %arg2[%c3_28, %c3_29] : memref<12x20xf32, #tpu.memory_space<smem>>
    %62 = vector.broadcast %61 : f32 to vector<16x109xf32>
    %63 = arith.mulf %62, %48 : vector<16x109xf32>
    %64 = arith.addf %47, %63 : vector<16x109xf32>
    %65 = vector.extract_strided_slice %0 {offsets = [0, 4], sizes = [16, 109], strides = [1, 1]} : vector<16x128xf32> to vector<16x109xf32>
    %c0_30 = arith.constant 0 : index
    %c4 = arith.constant 4 : index
    %66 = memref.load %arg2[%c0_30, %c4] : memref<12x20xf32, #tpu.memory_space<smem>>
    %67 = vector.broadcast %66 : f32 to vector<16x109xf32>
    %68 = arith.mulf %67, %65 : vector<16x109xf32>
    %69 = arith.addf %52, %68 : vector<16x109xf32>
    %c1_31 = arith.constant 1 : index
    %c4_32 = arith.constant 4 : index
    %70 = memref.load %arg2[%c1_31, %c4_32] : memref<12x20xf32, #tpu.memory_space<smem>>
    %71 = vector.broadcast %70 : f32 to vector<16x109xf32>
    %72 = arith.mulf %71, %65 : vector<16x109xf32>
    %73 = arith.addf %56, %72 : vector<16x109xf32>
    %c2_33 = arith.constant 2 : index
    %c4_34 = arith.constant 4 : index
    %74 = memref.load %arg2[%c2_33, %c4_34] : memref<12x20xf32, #tpu.memory_space<smem>>
    %75 = vector.broadcast %74 : f32 to vector<16x109xf32>
    %76 = arith.mulf %75, %65 : vector<16x109xf32>
    %77 = arith.addf %60, %76 : vector<16x109xf32>
    %c3_35 = arith.constant 3 : index
    %c4_36 = arith.constant 4 : index
    %78 = memref.load %arg2[%c3_35, %c4_36] : memref<12x20xf32, #tpu.memory_space<smem>>
    %79 = vector.broadcast %78 : f32 to vector<16x109xf32>
    %80 = arith.mulf %79, %65 : vector<16x109xf32>
    %81 = arith.addf %64, %80 : vector<16x109xf32>
    %82 = vector.extract_strided_slice %0 {offsets = [0, 5], sizes = [16, 109], strides = [1, 1]} : vector<16x128xf32> to vector<16x109xf32>
    %c0_37 = arith.constant 0 : index
    %c5 = arith.constant 5 : index
    %83 = memref.load %arg2[%c0_37, %c5] : memref<12x20xf32, #tpu.memory_space<smem>>
    %84 = vector.broadcast %83 : f32 to vector<16x109xf32>
    %85 = arith.mulf %84, %82 : vector<16x109xf32>
    %86 = arith.addf %69, %85 : vector<16x109xf32>
    %c1_38 = arith.constant 1 : index
    %c5_39 = arith.constant 5 : index
    %87 = memref.load %arg2[%c1_38, %c5_39] : memref<12x20xf32, #tpu.memory_space<smem>>
    %88 = vector.broadcast %87 : f32 to vector<16x109xf32>
    %89 = arith.mulf %88, %82 : vector<16x109xf32>
    %90 = arith.addf %73, %89 : vector<16x109xf32>
    %c2_40 = arith.constant 2 : index
    %c5_41 = arith.constant 5 : index
    %91 = memref.load %arg2[%c2_40, %c5_41] : memref<12x20xf32, #tpu.memory_space<smem>>
    %92 = vector.broadcast %91 : f32 to vector<16x109xf32>
    %93 = arith.mulf %92, %82 : vector<16x109xf32>
    %94 = arith.addf %77, %93 : vector<16x109xf32>
    %c3_42 = arith.constant 3 : index
    %c5_43 = arith.constant 5 : index
    %95 = memref.load %arg2[%c3_42, %c5_43] : memref<12x20xf32, #tpu.memory_space<smem>>
    %96 = vector.broadcast %95 : f32 to vector<16x109xf32>
    %97 = arith.mulf %96, %82 : vector<16x109xf32>
    %98 = arith.addf %81, %97 : vector<16x109xf32>
    %99 = vector.extract_strided_slice %0 {offsets = [0, 6], sizes = [16, 109], strides = [1, 1]} : vector<16x128xf32> to vector<16x109xf32>
    %c0_44 = arith.constant 0 : index
    %c6 = arith.constant 6 : index
    %100 = memref.load %arg2[%c0_44, %c6] : memref<12x20xf32, #tpu.memory_space<smem>>
    %101 = vector.broadcast %100 : f32 to vector<16x109xf32>
    %102 = arith.mulf %101, %99 : vector<16x109xf32>
    %103 = arith.addf %86, %102 : vector<16x109xf32>
    %c1_45 = arith.constant 1 : index
    %c6_46 = arith.constant 6 : index
    %104 = memref.load %arg2[%c1_45, %c6_46] : memref<12x20xf32, #tpu.memory_space<smem>>
    %105 = vector.broadcast %104 : f32 to vector<16x109xf32>
    %106 = arith.mulf %105, %99 : vector<16x109xf32>
    %107 = arith.addf %90, %106 : vector<16x109xf32>
    %c2_47 = arith.constant 2 : index
    %c6_48 = arith.constant 6 : index
    %108 = memref.load %arg2[%c2_47, %c6_48] : memref<12x20xf32, #tpu.memory_space<smem>>
    %109 = vector.broadcast %108 : f32 to vector<16x109xf32>
    %110 = arith.mulf %109, %99 : vector<16x109xf32>
    %111 = arith.addf %94, %110 : vector<16x109xf32>
    %c3_49 = arith.constant 3 : index
    %c6_50 = arith.constant 6 : index
    %112 = memref.load %arg2[%c3_49, %c6_50] : memref<12x20xf32, #tpu.memory_space<smem>>
    %113 = vector.broadcast %112 : f32 to vector<16x109xf32>
    %114 = arith.mulf %113, %99 : vector<16x109xf32>
    %115 = arith.addf %98, %114 : vector<16x109xf32>
    %116 = vector.extract_strided_slice %0 {offsets = [0, 7], sizes = [16, 109], strides = [1, 1]} : vector<16x128xf32> to vector<16x109xf32>
    %c0_51 = arith.constant 0 : index
    %c7 = arith.constant 7 : index
    %117 = memref.load %arg2[%c0_51, %c7] : memref<12x20xf32, #tpu.memory_space<smem>>
    %118 = vector.broadcast %117 : f32 to vector<16x109xf32>
    %119 = arith.mulf %118, %116 : vector<16x109xf32>
    %120 = arith.addf %103, %119 : vector<16x109xf32>
    %c1_52 = arith.constant 1 : index
    %c7_53 = arith.constant 7 : index
    %121 = memref.load %arg2[%c1_52, %c7_53] : memref<12x20xf32, #tpu.memory_space<smem>>
    %122 = vector.broadcast %121 : f32 to vector<16x109xf32>
    %123 = arith.mulf %122, %116 : vector<16x109xf32>
    %124 = arith.addf %107, %123 : vector<16x109xf32>
    %c2_54 = arith.constant 2 : index
    %c7_55 = arith.constant 7 : index
    %125 = memref.load %arg2[%c2_54, %c7_55] : memref<12x20xf32, #tpu.memory_space<smem>>
    %126 = vector.broadcast %125 : f32 to vector<16x109xf32>
    %127 = arith.mulf %126, %116 : vector<16x109xf32>
    %128 = arith.addf %111, %127 : vector<16x109xf32>
    %c3_56 = arith.constant 3 : index
    %c7_57 = arith.constant 7 : index
    %129 = memref.load %arg2[%c3_56, %c7_57] : memref<12x20xf32, #tpu.memory_space<smem>>
    %130 = vector.broadcast %129 : f32 to vector<16x109xf32>
    %131 = arith.mulf %130, %116 : vector<16x109xf32>
    %132 = arith.addf %115, %131 : vector<16x109xf32>
    %133 = vector.extract_strided_slice %0 {offsets = [0, 8], sizes = [16, 109], strides = [1, 1]} : vector<16x128xf32> to vector<16x109xf32>
    %c0_58 = arith.constant 0 : index
    %c8 = arith.constant 8 : index
    %134 = memref.load %arg2[%c0_58, %c8] : memref<12x20xf32, #tpu.memory_space<smem>>
    %135 = vector.broadcast %134 : f32 to vector<16x109xf32>
    %136 = arith.mulf %135, %133 : vector<16x109xf32>
    %137 = arith.addf %120, %136 : vector<16x109xf32>
    %c1_59 = arith.constant 1 : index
    %c8_60 = arith.constant 8 : index
    %138 = memref.load %arg2[%c1_59, %c8_60] : memref<12x20xf32, #tpu.memory_space<smem>>
    %139 = vector.broadcast %138 : f32 to vector<16x109xf32>
    %140 = arith.mulf %139, %133 : vector<16x109xf32>
    %141 = arith.addf %124, %140 : vector<16x109xf32>
    %c2_61 = arith.constant 2 : index
    %c8_62 = arith.constant 8 : index
    %142 = memref.load %arg2[%c2_61, %c8_62] : memref<12x20xf32, #tpu.memory_space<smem>>
    %143 = vector.broadcast %142 : f32 to vector<16x109xf32>
    %144 = arith.mulf %143, %133 : vector<16x109xf32>
    %145 = arith.addf %128, %144 : vector<16x109xf32>
    %c3_63 = arith.constant 3 : index
    %c8_64 = arith.constant 8 : index
    %146 = memref.load %arg2[%c3_63, %c8_64] : memref<12x20xf32, #tpu.memory_space<smem>>
    %147 = vector.broadcast %146 : f32 to vector<16x109xf32>
    %148 = arith.mulf %147, %133 : vector<16x109xf32>
    %149 = arith.addf %132, %148 : vector<16x109xf32>
    %150 = vector.extract_strided_slice %0 {offsets = [0, 9], sizes = [16, 109], strides = [1, 1]} : vector<16x128xf32> to vector<16x109xf32>
    %c0_65 = arith.constant 0 : index
    %c9 = arith.constant 9 : index
    %151 = memref.load %arg2[%c0_65, %c9] : memref<12x20xf32, #tpu.memory_space<smem>>
    %152 = vector.broadcast %151 : f32 to vector<16x109xf32>
    %153 = arith.mulf %152, %150 : vector<16x109xf32>
    %154 = arith.addf %137, %153 : vector<16x109xf32>
    %c1_66 = arith.constant 1 : index
    %c9_67 = arith.constant 9 : index
    %155 = memref.load %arg2[%c1_66, %c9_67] : memref<12x20xf32, #tpu.memory_space<smem>>
    %156 = vector.broadcast %155 : f32 to vector<16x109xf32>
    %157 = arith.mulf %156, %150 : vector<16x109xf32>
    %158 = arith.addf %141, %157 : vector<16x109xf32>
    %c2_68 = arith.constant 2 : index
    %c9_69 = arith.constant 9 : index
    %159 = memref.load %arg2[%c2_68, %c9_69] : memref<12x20xf32, #tpu.memory_space<smem>>
    %160 = vector.broadcast %159 : f32 to vector<16x109xf32>
    %161 = arith.mulf %160, %150 : vector<16x109xf32>
    %162 = arith.addf %145, %161 : vector<16x109xf32>
    %c3_70 = arith.constant 3 : index
    %c9_71 = arith.constant 9 : index
    %163 = memref.load %arg2[%c3_70, %c9_71] : memref<12x20xf32, #tpu.memory_space<smem>>
    %164 = vector.broadcast %163 : f32 to vector<16x109xf32>
    %165 = arith.mulf %164, %150 : vector<16x109xf32>
    %166 = arith.addf %149, %165 : vector<16x109xf32>
    %167 = vector.extract_strided_slice %0 {offsets = [0, 10], sizes = [16, 109], strides = [1, 1]} : vector<16x128xf32> to vector<16x109xf32>
    %c0_72 = arith.constant 0 : index
    %c10 = arith.constant 10 : index
    %168 = memref.load %arg2[%c0_72, %c10] : memref<12x20xf32, #tpu.memory_space<smem>>
    %169 = vector.broadcast %168 : f32 to vector<16x109xf32>
    %170 = arith.mulf %169, %167 : vector<16x109xf32>
    %171 = arith.addf %154, %170 : vector<16x109xf32>
    %c1_73 = arith.constant 1 : index
    %c10_74 = arith.constant 10 : index
    %172 = memref.load %arg2[%c1_73, %c10_74] : memref<12x20xf32, #tpu.memory_space<smem>>
    %173 = vector.broadcast %172 : f32 to vector<16x109xf32>
    %174 = arith.mulf %173, %167 : vector<16x109xf32>
    %175 = arith.addf %158, %174 : vector<16x109xf32>
    %c2_75 = arith.constant 2 : index
    %c10_76 = arith.constant 10 : index
    %176 = memref.load %arg2[%c2_75, %c10_76] : memref<12x20xf32, #tpu.memory_space<smem>>
    %177 = vector.broadcast %176 : f32 to vector<16x109xf32>
    %178 = arith.mulf %177, %167 : vector<16x109xf32>
    %179 = arith.addf %162, %178 : vector<16x109xf32>
    %c3_77 = arith.constant 3 : index
    %c10_78 = arith.constant 10 : index
    %180 = memref.load %arg2[%c3_77, %c10_78] : memref<12x20xf32, #tpu.memory_space<smem>>
    %181 = vector.broadcast %180 : f32 to vector<16x109xf32>
    %182 = arith.mulf %181, %167 : vector<16x109xf32>
    %183 = arith.addf %166, %182 : vector<16x109xf32>
    %184 = vector.extract_strided_slice %0 {offsets = [0, 11], sizes = [16, 109], strides = [1, 1]} : vector<16x128xf32> to vector<16x109xf32>
    %c0_79 = arith.constant 0 : index
    %c11 = arith.constant 11 : index
    %185 = memref.load %arg2[%c0_79, %c11] : memref<12x20xf32, #tpu.memory_space<smem>>
    %186 = vector.broadcast %185 : f32 to vector<16x109xf32>
    %187 = arith.mulf %186, %184 : vector<16x109xf32>
    %188 = arith.addf %171, %187 : vector<16x109xf32>
    %c1_80 = arith.constant 1 : index
    %c11_81 = arith.constant 11 : index
    %189 = memref.load %arg2[%c1_80, %c11_81] : memref<12x20xf32, #tpu.memory_space<smem>>
    %190 = vector.broadcast %189 : f32 to vector<16x109xf32>
    %191 = arith.mulf %190, %184 : vector<16x109xf32>
    %192 = arith.addf %175, %191 : vector<16x109xf32>
    %c2_82 = arith.constant 2 : index
    %c11_83 = arith.constant 11 : index
    %193 = memref.load %arg2[%c2_82, %c11_83] : memref<12x20xf32, #tpu.memory_space<smem>>
    %194 = vector.broadcast %193 : f32 to vector<16x109xf32>
    %195 = arith.mulf %194, %184 : vector<16x109xf32>
    %196 = arith.addf %179, %195 : vector<16x109xf32>
    %c3_84 = arith.constant 3 : index
    %c11_85 = arith.constant 11 : index
    %197 = memref.load %arg2[%c3_84, %c11_85] : memref<12x20xf32, #tpu.memory_space<smem>>
    %198 = vector.broadcast %197 : f32 to vector<16x109xf32>
    %199 = arith.mulf %198, %184 : vector<16x109xf32>
    %200 = arith.addf %183, %199 : vector<16x109xf32>
    %201 = vector.extract_strided_slice %0 {offsets = [0, 12], sizes = [16, 109], strides = [1, 1]} : vector<16x128xf32> to vector<16x109xf32>
    %c0_86 = arith.constant 0 : index
    %c12 = arith.constant 12 : index
    %202 = memref.load %arg2[%c0_86, %c12] : memref<12x20xf32, #tpu.memory_space<smem>>
    %203 = vector.broadcast %202 : f32 to vector<16x109xf32>
    %204 = arith.mulf %203, %201 : vector<16x109xf32>
    %205 = arith.addf %188, %204 : vector<16x109xf32>
    %c1_87 = arith.constant 1 : index
    %c12_88 = arith.constant 12 : index
    %206 = memref.load %arg2[%c1_87, %c12_88] : memref<12x20xf32, #tpu.memory_space<smem>>
    %207 = vector.broadcast %206 : f32 to vector<16x109xf32>
    %208 = arith.mulf %207, %201 : vector<16x109xf32>
    %209 = arith.addf %192, %208 : vector<16x109xf32>
    %c2_89 = arith.constant 2 : index
    %c12_90 = arith.constant 12 : index
    %210 = memref.load %arg2[%c2_89, %c12_90] : memref<12x20xf32, #tpu.memory_space<smem>>
    %211 = vector.broadcast %210 : f32 to vector<16x109xf32>
    %212 = arith.mulf %211, %201 : vector<16x109xf32>
    %213 = arith.addf %196, %212 : vector<16x109xf32>
    %c3_91 = arith.constant 3 : index
    %c12_92 = arith.constant 12 : index
    %214 = memref.load %arg2[%c3_91, %c12_92] : memref<12x20xf32, #tpu.memory_space<smem>>
    %215 = vector.broadcast %214 : f32 to vector<16x109xf32>
    %216 = arith.mulf %215, %201 : vector<16x109xf32>
    %217 = arith.addf %200, %216 : vector<16x109xf32>
    %218 = vector.extract_strided_slice %0 {offsets = [0, 13], sizes = [16, 109], strides = [1, 1]} : vector<16x128xf32> to vector<16x109xf32>
    %c0_93 = arith.constant 0 : index
    %c13 = arith.constant 13 : index
    %219 = memref.load %arg2[%c0_93, %c13] : memref<12x20xf32, #tpu.memory_space<smem>>
    %220 = vector.broadcast %219 : f32 to vector<16x109xf32>
    %221 = arith.mulf %220, %218 : vector<16x109xf32>
    %222 = arith.addf %205, %221 : vector<16x109xf32>
    %c1_94 = arith.constant 1 : index
    %c13_95 = arith.constant 13 : index
    %223 = memref.load %arg2[%c1_94, %c13_95] : memref<12x20xf32, #tpu.memory_space<smem>>
    %224 = vector.broadcast %223 : f32 to vector<16x109xf32>
    %225 = arith.mulf %224, %218 : vector<16x109xf32>
    %226 = arith.addf %209, %225 : vector<16x109xf32>
    %c2_96 = arith.constant 2 : index
    %c13_97 = arith.constant 13 : index
    %227 = memref.load %arg2[%c2_96, %c13_97] : memref<12x20xf32, #tpu.memory_space<smem>>
    %228 = vector.broadcast %227 : f32 to vector<16x109xf32>
    %229 = arith.mulf %228, %218 : vector<16x109xf32>
    %230 = arith.addf %213, %229 : vector<16x109xf32>
    %c3_98 = arith.constant 3 : index
    %c13_99 = arith.constant 13 : index
    %231 = memref.load %arg2[%c3_98, %c13_99] : memref<12x20xf32, #tpu.memory_space<smem>>
    %232 = vector.broadcast %231 : f32 to vector<16x109xf32>
    %233 = arith.mulf %232, %218 : vector<16x109xf32>
    %234 = arith.addf %217, %233 : vector<16x109xf32>
    %235 = vector.extract_strided_slice %0 {offsets = [0, 14], sizes = [16, 109], strides = [1, 1]} : vector<16x128xf32> to vector<16x109xf32>
    %c0_100 = arith.constant 0 : index
    %c14 = arith.constant 14 : index
    %236 = memref.load %arg2[%c0_100, %c14] : memref<12x20xf32, #tpu.memory_space<smem>>
    %237 = vector.broadcast %236 : f32 to vector<16x109xf32>
    %238 = arith.mulf %237, %235 : vector<16x109xf32>
    %239 = arith.addf %222, %238 : vector<16x109xf32>
    %c1_101 = arith.constant 1 : index
    %c14_102 = arith.constant 14 : index
    %240 = memref.load %arg2[%c1_101, %c14_102] : memref<12x20xf32, #tpu.memory_space<smem>>
    %241 = vector.broadcast %240 : f32 to vector<16x109xf32>
    %242 = arith.mulf %241, %235 : vector<16x109xf32>
    %243 = arith.addf %226, %242 : vector<16x109xf32>
    %c2_103 = arith.constant 2 : index
    %c14_104 = arith.constant 14 : index
    %244 = memref.load %arg2[%c2_103, %c14_104] : memref<12x20xf32, #tpu.memory_space<smem>>
    %245 = vector.broadcast %244 : f32 to vector<16x109xf32>
    %246 = arith.mulf %245, %235 : vector<16x109xf32>
    %247 = arith.addf %230, %246 : vector<16x109xf32>
    %c3_105 = arith.constant 3 : index
    %c14_106 = arith.constant 14 : index
    %248 = memref.load %arg2[%c3_105, %c14_106] : memref<12x20xf32, #tpu.memory_space<smem>>
    %249 = vector.broadcast %248 : f32 to vector<16x109xf32>
    %250 = arith.mulf %249, %235 : vector<16x109xf32>
    %251 = arith.addf %234, %250 : vector<16x109xf32>
    %252 = vector.extract_strided_slice %0 {offsets = [0, 15], sizes = [16, 109], strides = [1, 1]} : vector<16x128xf32> to vector<16x109xf32>
    %c0_107 = arith.constant 0 : index
    %c15 = arith.constant 15 : index
    %253 = memref.load %arg2[%c0_107, %c15] : memref<12x20xf32, #tpu.memory_space<smem>>
    %254 = vector.broadcast %253 : f32 to vector<16x109xf32>
    %255 = arith.mulf %254, %252 : vector<16x109xf32>
    %256 = arith.addf %239, %255 : vector<16x109xf32>
    %c1_108 = arith.constant 1 : index
    %c15_109 = arith.constant 15 : index
    %257 = memref.load %arg2[%c1_108, %c15_109] : memref<12x20xf32, #tpu.memory_space<smem>>
    %258 = vector.broadcast %257 : f32 to vector<16x109xf32>
    %259 = arith.mulf %258, %252 : vector<16x109xf32>
    %260 = arith.addf %243, %259 : vector<16x109xf32>
    %c2_110 = arith.constant 2 : index
    %c15_111 = arith.constant 15 : index
    %261 = memref.load %arg2[%c2_110, %c15_111] : memref<12x20xf32, #tpu.memory_space<smem>>
    %262 = vector.broadcast %261 : f32 to vector<16x109xf32>
    %263 = arith.mulf %262, %252 : vector<16x109xf32>
    %264 = arith.addf %247, %263 : vector<16x109xf32>
    %c3_112 = arith.constant 3 : index
    %c15_113 = arith.constant 15 : index
    %265 = memref.load %arg2[%c3_112, %c15_113] : memref<12x20xf32, #tpu.memory_space<smem>>
    %266 = vector.broadcast %265 : f32 to vector<16x109xf32>
    %267 = arith.mulf %266, %252 : vector<16x109xf32>
    %268 = arith.addf %251, %267 : vector<16x109xf32>
    %269 = vector.extract_strided_slice %0 {offsets = [0, 16], sizes = [16, 109], strides = [1, 1]} : vector<16x128xf32> to vector<16x109xf32>
    %c0_114 = arith.constant 0 : index
    %c16 = arith.constant 16 : index
    %270 = memref.load %arg2[%c0_114, %c16] : memref<12x20xf32, #tpu.memory_space<smem>>
    %271 = vector.broadcast %270 : f32 to vector<16x109xf32>
    %272 = arith.mulf %271, %269 : vector<16x109xf32>
    %273 = arith.addf %256, %272 : vector<16x109xf32>
    %c1_115 = arith.constant 1 : index
    %c16_116 = arith.constant 16 : index
    %274 = memref.load %arg2[%c1_115, %c16_116] : memref<12x20xf32, #tpu.memory_space<smem>>
    %275 = vector.broadcast %274 : f32 to vector<16x109xf32>
    %276 = arith.mulf %275, %269 : vector<16x109xf32>
    %277 = arith.addf %260, %276 : vector<16x109xf32>
    %c2_117 = arith.constant 2 : index
    %c16_118 = arith.constant 16 : index
    %278 = memref.load %arg2[%c2_117, %c16_118] : memref<12x20xf32, #tpu.memory_space<smem>>
    %279 = vector.broadcast %278 : f32 to vector<16x109xf32>
    %280 = arith.mulf %279, %269 : vector<16x109xf32>
    %281 = arith.addf %264, %280 : vector<16x109xf32>
    %c3_119 = arith.constant 3 : index
    %c16_120 = arith.constant 16 : index
    %282 = memref.load %arg2[%c3_119, %c16_120] : memref<12x20xf32, #tpu.memory_space<smem>>
    %283 = vector.broadcast %282 : f32 to vector<16x109xf32>
    %284 = arith.mulf %283, %269 : vector<16x109xf32>
    %285 = arith.addf %268, %284 : vector<16x109xf32>
    %286 = vector.extract_strided_slice %0 {offsets = [0, 17], sizes = [16, 109], strides = [1, 1]} : vector<16x128xf32> to vector<16x109xf32>
    %c0_121 = arith.constant 0 : index
    %c17 = arith.constant 17 : index
    %287 = memref.load %arg2[%c0_121, %c17] : memref<12x20xf32, #tpu.memory_space<smem>>
    %288 = vector.broadcast %287 : f32 to vector<16x109xf32>
    %289 = arith.mulf %288, %286 : vector<16x109xf32>
    %290 = arith.addf %273, %289 : vector<16x109xf32>
    %c1_122 = arith.constant 1 : index
    %c17_123 = arith.constant 17 : index
    %291 = memref.load %arg2[%c1_122, %c17_123] : memref<12x20xf32, #tpu.memory_space<smem>>
    %292 = vector.broadcast %291 : f32 to vector<16x109xf32>
    %293 = arith.mulf %292, %286 : vector<16x109xf32>
    %294 = arith.addf %277, %293 : vector<16x109xf32>
    %c2_124 = arith.constant 2 : index
    %c17_125 = arith.constant 17 : index
    %295 = memref.load %arg2[%c2_124, %c17_125] : memref<12x20xf32, #tpu.memory_space<smem>>
    %296 = vector.broadcast %295 : f32 to vector<16x109xf32>
    %297 = arith.mulf %296, %286 : vector<16x109xf32>
    %298 = arith.addf %281, %297 : vector<16x109xf32>
    %c3_126 = arith.constant 3 : index
    %c17_127 = arith.constant 17 : index
    %299 = memref.load %arg2[%c3_126, %c17_127] : memref<12x20xf32, #tpu.memory_space<smem>>
    %300 = vector.broadcast %299 : f32 to vector<16x109xf32>
    %301 = arith.mulf %300, %286 : vector<16x109xf32>
    %302 = arith.addf %285, %301 : vector<16x109xf32>
    %303 = vector.extract_strided_slice %0 {offsets = [0, 18], sizes = [16, 109], strides = [1, 1]} : vector<16x128xf32> to vector<16x109xf32>
    %c0_128 = arith.constant 0 : index
    %c18 = arith.constant 18 : index
    %304 = memref.load %arg2[%c0_128, %c18] : memref<12x20xf32, #tpu.memory_space<smem>>
    %305 = vector.broadcast %304 : f32 to vector<16x109xf32>
    %306 = arith.mulf %305, %303 : vector<16x109xf32>
    %307 = arith.addf %290, %306 : vector<16x109xf32>
    %c1_129 = arith.constant 1 : index
    %c18_130 = arith.constant 18 : index
    %308 = memref.load %arg2[%c1_129, %c18_130] : memref<12x20xf32, #tpu.memory_space<smem>>
    %309 = vector.broadcast %308 : f32 to vector<16x109xf32>
    %310 = arith.mulf %309, %303 : vector<16x109xf32>
    %311 = arith.addf %294, %310 : vector<16x109xf32>
    %c2_131 = arith.constant 2 : index
    %c18_132 = arith.constant 18 : index
    %312 = memref.load %arg2[%c2_131, %c18_132] : memref<12x20xf32, #tpu.memory_space<smem>>
    %313 = vector.broadcast %312 : f32 to vector<16x109xf32>
    %314 = arith.mulf %313, %303 : vector<16x109xf32>
    %315 = arith.addf %298, %314 : vector<16x109xf32>
    %c3_133 = arith.constant 3 : index
    %c18_134 = arith.constant 18 : index
    %316 = memref.load %arg2[%c3_133, %c18_134] : memref<12x20xf32, #tpu.memory_space<smem>>
    %317 = vector.broadcast %316 : f32 to vector<16x109xf32>
    %318 = arith.mulf %317, %303 : vector<16x109xf32>
    %319 = arith.addf %302, %318 : vector<16x109xf32>
    %320 = vector.extract_strided_slice %0 {offsets = [0, 19], sizes = [16, 109], strides = [1, 1]} : vector<16x128xf32> to vector<16x109xf32>
    %c0_135 = arith.constant 0 : index
    %c19 = arith.constant 19 : index
    %321 = memref.load %arg2[%c0_135, %c19] : memref<12x20xf32, #tpu.memory_space<smem>>
    %322 = vector.broadcast %321 : f32 to vector<16x109xf32>
    %323 = arith.mulf %322, %320 : vector<16x109xf32>
    %324 = arith.addf %307, %323 : vector<16x109xf32>
    %c1_136 = arith.constant 1 : index
    %c19_137 = arith.constant 19 : index
    %325 = memref.load %arg2[%c1_136, %c19_137] : memref<12x20xf32, #tpu.memory_space<smem>>
    %326 = vector.broadcast %325 : f32 to vector<16x109xf32>
    %327 = arith.mulf %326, %320 : vector<16x109xf32>
    %328 = arith.addf %311, %327 : vector<16x109xf32>
    %c2_138 = arith.constant 2 : index
    %c19_139 = arith.constant 19 : index
    %329 = memref.load %arg2[%c2_138, %c19_139] : memref<12x20xf32, #tpu.memory_space<smem>>
    %330 = vector.broadcast %329 : f32 to vector<16x109xf32>
    %331 = arith.mulf %330, %320 : vector<16x109xf32>
    %332 = arith.addf %315, %331 : vector<16x109xf32>
    %c3_140 = arith.constant 3 : index
    %c19_141 = arith.constant 19 : index
    %333 = memref.load %arg2[%c3_140, %c19_141] : memref<12x20xf32, #tpu.memory_space<smem>>
    %334 = vector.broadcast %333 : f32 to vector<16x109xf32>
    %335 = arith.mulf %334, %320 : vector<16x109xf32>
    %336 = arith.addf %319, %335 : vector<16x109xf32>
    %c0_142 = arith.constant 0 : index
    %337 = memref.load %arg3[%c0_142] : memref<12xf32, #tpu.memory_space<smem>>
    %338 = vector.broadcast %337 : f32 to vector<16x109xf32>
    %339 = arith.addf %324, %338 : vector<16x109xf32>
    %340 = arith.mulf %339, %339 : vector<16x109xf32>
    %c1_143 = arith.constant 1 : index
    %341 = memref.load %arg3[%c1_143] : memref<12xf32, #tpu.memory_space<smem>>
    %342 = vector.broadcast %341 : f32 to vector<16x109xf32>
    %343 = arith.addf %328, %342 : vector<16x109xf32>
    %344 = arith.mulf %343, %343 : vector<16x109xf32>
    %c2_144 = arith.constant 2 : index
    %345 = memref.load %arg3[%c2_144] : memref<12xf32, #tpu.memory_space<smem>>
    %346 = vector.broadcast %345 : f32 to vector<16x109xf32>
    %347 = arith.addf %332, %346 : vector<16x109xf32>
    %348 = arith.mulf %347, %347 : vector<16x109xf32>
    %c3_145 = arith.constant 3 : index
    %349 = memref.load %arg3[%c3_145] : memref<12xf32, #tpu.memory_space<smem>>
    %350 = vector.broadcast %349 : f32 to vector<16x109xf32>
    %351 = arith.addf %336, %350 : vector<16x109xf32>
    %352 = arith.mulf %351, %351 : vector<16x109xf32>
    %353 = tpu.concatenate %340, %344, %348, %352 in 0 : vector<16x109xf32>, vector<16x109xf32>, vector<16x109xf32>, vector<16x109xf32> -> vector<64x109xf32>
    %c0_146 = arith.constant 0 : index
    %c0_147 = arith.constant 0 : index
    %354 = vector.load %arg6[%c0_146, %c0_147] : memref<109x24xf32, #tpu.memory_space<vmem>>, vector<109x24xf32>
    %cst = arith.constant dense<0.000000e+00> : vector<64x24xf32>
    %355 = tpu.matmul %353, %354, %cst {dimension_numbers = #tpu.dot_dimension_numbers<[1], [0], [0], [1], [0, 0, 1, 1], [], []>} : vector<64x109xf32>, vector<109x24xf32>, vector<64x24xf32> -> vector<64x24xf32>
    %356 = math.log %355 : vector<64x24xf32>
    %357 = vector.extract_strided_slice %0 {offsets = [0, 0], sizes = [16, 121], strides = [1, 1]} : vector<16x128xf32> to vector<16x121xf32>
    %c4_148 = arith.constant 4 : index
    %c0_149 = arith.constant 0 : index
    %358 = memref.load %arg2[%c4_148, %c0_149] : memref<12x20xf32, #tpu.memory_space<smem>>
    %359 = vector.broadcast %358 : f32 to vector<16x121xf32>
    %360 = arith.mulf %359, %357 : vector<16x121xf32>
    %c5_150 = arith.constant 5 : index
    %c0_151 = arith.constant 0 : index
    %361 = memref.load %arg2[%c5_150, %c0_151] : memref<12x20xf32, #tpu.memory_space<smem>>
    %362 = vector.broadcast %361 : f32 to vector<16x121xf32>
    %363 = arith.mulf %362, %357 : vector<16x121xf32>
    %c6_152 = arith.constant 6 : index
    %c0_153 = arith.constant 0 : index
    %364 = memref.load %arg2[%c6_152, %c0_153] : memref<12x20xf32, #tpu.memory_space<smem>>
    %365 = vector.broadcast %364 : f32 to vector<16x121xf32>
    %366 = arith.mulf %365, %357 : vector<16x121xf32>
    %c7_154 = arith.constant 7 : index
    %c0_155 = arith.constant 0 : index
    %367 = memref.load %arg2[%c7_154, %c0_155] : memref<12x20xf32, #tpu.memory_space<smem>>
    %368 = vector.broadcast %367 : f32 to vector<16x121xf32>
    %369 = arith.mulf %368, %357 : vector<16x121xf32>
    %370 = vector.extract_strided_slice %0 {offsets = [0, 1], sizes = [16, 121], strides = [1, 1]} : vector<16x128xf32> to vector<16x121xf32>
    %c4_156 = arith.constant 4 : index
    %c1_157 = arith.constant 1 : index
    %371 = memref.load %arg2[%c4_156, %c1_157] : memref<12x20xf32, #tpu.memory_space<smem>>
    %372 = vector.broadcast %371 : f32 to vector<16x121xf32>
    %373 = arith.mulf %372, %370 : vector<16x121xf32>
    %374 = arith.addf %360, %373 : vector<16x121xf32>
    %c5_158 = arith.constant 5 : index
    %c1_159 = arith.constant 1 : index
    %375 = memref.load %arg2[%c5_158, %c1_159] : memref<12x20xf32, #tpu.memory_space<smem>>
    %376 = vector.broadcast %375 : f32 to vector<16x121xf32>
    %377 = arith.mulf %376, %370 : vector<16x121xf32>
    %378 = arith.addf %363, %377 : vector<16x121xf32>
    %c6_160 = arith.constant 6 : index
    %c1_161 = arith.constant 1 : index
    %379 = memref.load %arg2[%c6_160, %c1_161] : memref<12x20xf32, #tpu.memory_space<smem>>
    %380 = vector.broadcast %379 : f32 to vector<16x121xf32>
    %381 = arith.mulf %380, %370 : vector<16x121xf32>
    %382 = arith.addf %366, %381 : vector<16x121xf32>
    %c7_162 = arith.constant 7 : index
    %c1_163 = arith.constant 1 : index
    %383 = memref.load %arg2[%c7_162, %c1_163] : memref<12x20xf32, #tpu.memory_space<smem>>
    %384 = vector.broadcast %383 : f32 to vector<16x121xf32>
    %385 = arith.mulf %384, %370 : vector<16x121xf32>
    %386 = arith.addf %369, %385 : vector<16x121xf32>
    %387 = vector.extract_strided_slice %0 {offsets = [0, 2], sizes = [16, 121], strides = [1, 1]} : vector<16x128xf32> to vector<16x121xf32>
    %c4_164 = arith.constant 4 : index
    %c2_165 = arith.constant 2 : index
    %388 = memref.load %arg2[%c4_164, %c2_165] : memref<12x20xf32, #tpu.memory_space<smem>>
    %389 = vector.broadcast %388 : f32 to vector<16x121xf32>
    %390 = arith.mulf %389, %387 : vector<16x121xf32>
    %391 = arith.addf %374, %390 : vector<16x121xf32>
    %c5_166 = arith.constant 5 : index
    %c2_167 = arith.constant 2 : index
    %392 = memref.load %arg2[%c5_166, %c2_167] : memref<12x20xf32, #tpu.memory_space<smem>>
    %393 = vector.broadcast %392 : f32 to vector<16x121xf32>
    %394 = arith.mulf %393, %387 : vector<16x121xf32>
    %395 = arith.addf %378, %394 : vector<16x121xf32>
    %c6_168 = arith.constant 6 : index
    %c2_169 = arith.constant 2 : index
    %396 = memref.load %arg2[%c6_168, %c2_169] : memref<12x20xf32, #tpu.memory_space<smem>>
    %397 = vector.broadcast %396 : f32 to vector<16x121xf32>
    %398 = arith.mulf %397, %387 : vector<16x121xf32>
    %399 = arith.addf %382, %398 : vector<16x121xf32>
    %c7_170 = arith.constant 7 : index
    %c2_171 = arith.constant 2 : index
    %400 = memref.load %arg2[%c7_170, %c2_171] : memref<12x20xf32, #tpu.memory_space<smem>>
    %401 = vector.broadcast %400 : f32 to vector<16x121xf32>
    %402 = arith.mulf %401, %387 : vector<16x121xf32>
    %403 = arith.addf %386, %402 : vector<16x121xf32>
    %404 = vector.extract_strided_slice %0 {offsets = [0, 3], sizes = [16, 121], strides = [1, 1]} : vector<16x128xf32> to vector<16x121xf32>
    %c4_172 = arith.constant 4 : index
    %c3_173 = arith.constant 3 : index
    %405 = memref.load %arg2[%c4_172, %c3_173] : memref<12x20xf32, #tpu.memory_space<smem>>
    %406 = vector.broadcast %405 : f32 to vector<16x121xf32>
    %407 = arith.mulf %406, %404 : vector<16x121xf32>
    %408 = arith.addf %391, %407 : vector<16x121xf32>
    %c5_174 = arith.constant 5 : index
    %c3_175 = arith.constant 3 : index
    %409 = memref.load %arg2[%c5_174, %c3_175] : memref<12x20xf32, #tpu.memory_space<smem>>
    %410 = vector.broadcast %409 : f32 to vector<16x121xf32>
    %411 = arith.mulf %410, %404 : vector<16x121xf32>
    %412 = arith.addf %395, %411 : vector<16x121xf32>
    %c6_176 = arith.constant 6 : index
    %c3_177 = arith.constant 3 : index
    %413 = memref.load %arg2[%c6_176, %c3_177] : memref<12x20xf32, #tpu.memory_space<smem>>
    %414 = vector.broadcast %413 : f32 to vector<16x121xf32>
    %415 = arith.mulf %414, %404 : vector<16x121xf32>
    %416 = arith.addf %399, %415 : vector<16x121xf32>
    %c7_178 = arith.constant 7 : index
    %c3_179 = arith.constant 3 : index
    %417 = memref.load %arg2[%c7_178, %c3_179] : memref<12x20xf32, #tpu.memory_space<smem>>
    %418 = vector.broadcast %417 : f32 to vector<16x121xf32>
    %419 = arith.mulf %418, %404 : vector<16x121xf32>
    %420 = arith.addf %403, %419 : vector<16x121xf32>
    %421 = vector.extract_strided_slice %0 {offsets = [0, 4], sizes = [16, 121], strides = [1, 1]} : vector<16x128xf32> to vector<16x121xf32>
    %c4_180 = arith.constant 4 : index
    %c4_181 = arith.constant 4 : index
    %422 = memref.load %arg2[%c4_180, %c4_181] : memref<12x20xf32, #tpu.memory_space<smem>>
    %423 = vector.broadcast %422 : f32 to vector<16x121xf32>
    %424 = arith.mulf %423, %421 : vector<16x121xf32>
    %425 = arith.addf %408, %424 : vector<16x121xf32>
    %c5_182 = arith.constant 5 : index
    %c4_183 = arith.constant 4 : index
    %426 = memref.load %arg2[%c5_182, %c4_183] : memref<12x20xf32, #tpu.memory_space<smem>>
    %427 = vector.broadcast %426 : f32 to vector<16x121xf32>
    %428 = arith.mulf %427, %421 : vector<16x121xf32>
    %429 = arith.addf %412, %428 : vector<16x121xf32>
    %c6_184 = arith.constant 6 : index
    %c4_185 = arith.constant 4 : index
    %430 = memref.load %arg2[%c6_184, %c4_185] : memref<12x20xf32, #tpu.memory_space<smem>>
    %431 = vector.broadcast %430 : f32 to vector<16x121xf32>
    %432 = arith.mulf %431, %421 : vector<16x121xf32>
    %433 = arith.addf %416, %432 : vector<16x121xf32>
    %c7_186 = arith.constant 7 : index
    %c4_187 = arith.constant 4 : index
    %434 = memref.load %arg2[%c7_186, %c4_187] : memref<12x20xf32, #tpu.memory_space<smem>>
    %435 = vector.broadcast %434 : f32 to vector<16x121xf32>
    %436 = arith.mulf %435, %421 : vector<16x121xf32>
    %437 = arith.addf %420, %436 : vector<16x121xf32>
    %438 = vector.extract_strided_slice %0 {offsets = [0, 5], sizes = [16, 121], strides = [1, 1]} : vector<16x128xf32> to vector<16x121xf32>
    %c4_188 = arith.constant 4 : index
    %c5_189 = arith.constant 5 : index
    %439 = memref.load %arg2[%c4_188, %c5_189] : memref<12x20xf32, #tpu.memory_space<smem>>
    %440 = vector.broadcast %439 : f32 to vector<16x121xf32>
    %441 = arith.mulf %440, %438 : vector<16x121xf32>
    %442 = arith.addf %425, %441 : vector<16x121xf32>
    %c5_190 = arith.constant 5 : index
    %c5_191 = arith.constant 5 : index
    %443 = memref.load %arg2[%c5_190, %c5_191] : memref<12x20xf32, #tpu.memory_space<smem>>
    %444 = vector.broadcast %443 : f32 to vector<16x121xf32>
    %445 = arith.mulf %444, %438 : vector<16x121xf32>
    %446 = arith.addf %429, %445 : vector<16x121xf32>
    %c6_192 = arith.constant 6 : index
    %c5_193 = arith.constant 5 : index
    %447 = memref.load %arg2[%c6_192, %c5_193] : memref<12x20xf32, #tpu.memory_space<smem>>
    %448 = vector.broadcast %447 : f32 to vector<16x121xf32>
    %449 = arith.mulf %448, %438 : vector<16x121xf32>
    %450 = arith.addf %433, %449 : vector<16x121xf32>
    %c7_194 = arith.constant 7 : index
    %c5_195 = arith.constant 5 : index
    %451 = memref.load %arg2[%c7_194, %c5_195] : memref<12x20xf32, #tpu.memory_space<smem>>
    %452 = vector.broadcast %451 : f32 to vector<16x121xf32>
    %453 = arith.mulf %452, %438 : vector<16x121xf32>
    %454 = arith.addf %437, %453 : vector<16x121xf32>
    %455 = vector.extract_strided_slice %0 {offsets = [0, 6], sizes = [16, 121], strides = [1, 1]} : vector<16x128xf32> to vector<16x121xf32>
    %c4_196 = arith.constant 4 : index
    %c6_197 = arith.constant 6 : index
    %456 = memref.load %arg2[%c4_196, %c6_197] : memref<12x20xf32, #tpu.memory_space<smem>>
    %457 = vector.broadcast %456 : f32 to vector<16x121xf32>
    %458 = arith.mulf %457, %455 : vector<16x121xf32>
    %459 = arith.addf %442, %458 : vector<16x121xf32>
    %c5_198 = arith.constant 5 : index
    %c6_199 = arith.constant 6 : index
    %460 = memref.load %arg2[%c5_198, %c6_199] : memref<12x20xf32, #tpu.memory_space<smem>>
    %461 = vector.broadcast %460 : f32 to vector<16x121xf32>
    %462 = arith.mulf %461, %455 : vector<16x121xf32>
    %463 = arith.addf %446, %462 : vector<16x121xf32>
    %c6_200 = arith.constant 6 : index
    %c6_201 = arith.constant 6 : index
    %464 = memref.load %arg2[%c6_200, %c6_201] : memref<12x20xf32, #tpu.memory_space<smem>>
    %465 = vector.broadcast %464 : f32 to vector<16x121xf32>
    %466 = arith.mulf %465, %455 : vector<16x121xf32>
    %467 = arith.addf %450, %466 : vector<16x121xf32>
    %c7_202 = arith.constant 7 : index
    %c6_203 = arith.constant 6 : index
    %468 = memref.load %arg2[%c7_202, %c6_203] : memref<12x20xf32, #tpu.memory_space<smem>>
    %469 = vector.broadcast %468 : f32 to vector<16x121xf32>
    %470 = arith.mulf %469, %455 : vector<16x121xf32>
    %471 = arith.addf %454, %470 : vector<16x121xf32>
    %472 = vector.extract_strided_slice %0 {offsets = [0, 7], sizes = [16, 121], strides = [1, 1]} : vector<16x128xf32> to vector<16x121xf32>
    %c4_204 = arith.constant 4 : index
    %c7_205 = arith.constant 7 : index
    %473 = memref.load %arg2[%c4_204, %c7_205] : memref<12x20xf32, #tpu.memory_space<smem>>
    %474 = vector.broadcast %473 : f32 to vector<16x121xf32>
    %475 = arith.mulf %474, %472 : vector<16x121xf32>
    %476 = arith.addf %459, %475 : vector<16x121xf32>
    %c5_206 = arith.constant 5 : index
    %c7_207 = arith.constant 7 : index
    %477 = memref.load %arg2[%c5_206, %c7_207] : memref<12x20xf32, #tpu.memory_space<smem>>
    %478 = vector.broadcast %477 : f32 to vector<16x121xf32>
    %479 = arith.mulf %478, %472 : vector<16x121xf32>
    %480 = arith.addf %463, %479 : vector<16x121xf32>
    %c6_208 = arith.constant 6 : index
    %c7_209 = arith.constant 7 : index
    %481 = memref.load %arg2[%c6_208, %c7_209] : memref<12x20xf32, #tpu.memory_space<smem>>
    %482 = vector.broadcast %481 : f32 to vector<16x121xf32>
    %483 = arith.mulf %482, %472 : vector<16x121xf32>
    %484 = arith.addf %467, %483 : vector<16x121xf32>
    %c7_210 = arith.constant 7 : index
    %c7_211 = arith.constant 7 : index
    %485 = memref.load %arg2[%c7_210, %c7_211] : memref<12x20xf32, #tpu.memory_space<smem>>
    %486 = vector.broadcast %485 : f32 to vector<16x121xf32>
    %487 = arith.mulf %486, %472 : vector<16x121xf32>
    %488 = arith.addf %471, %487 : vector<16x121xf32>
    %c4_212 = arith.constant 4 : index
    %489 = memref.load %arg3[%c4_212] : memref<12xf32, #tpu.memory_space<smem>>
    %490 = vector.broadcast %489 : f32 to vector<16x121xf32>
    %491 = arith.addf %476, %490 : vector<16x121xf32>
    %492 = arith.mulf %491, %491 : vector<16x121xf32>
    %c5_213 = arith.constant 5 : index
    %493 = memref.load %arg3[%c5_213] : memref<12xf32, #tpu.memory_space<smem>>
    %494 = vector.broadcast %493 : f32 to vector<16x121xf32>
    %495 = arith.addf %480, %494 : vector<16x121xf32>
    %496 = arith.mulf %495, %495 : vector<16x121xf32>
    %c6_214 = arith.constant 6 : index
    %497 = memref.load %arg3[%c6_214] : memref<12xf32, #tpu.memory_space<smem>>
    %498 = vector.broadcast %497 : f32 to vector<16x121xf32>
    %499 = arith.addf %484, %498 : vector<16x121xf32>
    %500 = arith.mulf %499, %499 : vector<16x121xf32>
    %c7_215 = arith.constant 7 : index
    %501 = memref.load %arg3[%c7_215] : memref<12xf32, #tpu.memory_space<smem>>
    %502 = vector.broadcast %501 : f32 to vector<16x121xf32>
    %503 = arith.addf %488, %502 : vector<16x121xf32>
    %504 = arith.mulf %503, %503 : vector<16x121xf32>
    %505 = tpu.concatenate %492, %496, %500, %504 in 0 : vector<16x121xf32>, vector<16x121xf32>, vector<16x121xf32>, vector<16x121xf32> -> vector<64x121xf32>
    %c0_216 = arith.constant 0 : index
    %c0_217 = arith.constant 0 : index
    %506 = vector.load %arg7[%c0_216, %c0_217] : memref<121x27xf32, #tpu.memory_space<vmem>>, vector<121x27xf32>
    %cst_218 = arith.constant dense<0.000000e+00> : vector<64x27xf32>
    %507 = tpu.matmul %505, %506, %cst_218 {dimension_numbers = #tpu.dot_dimension_numbers<[1], [0], [0], [1], [0, 0, 1, 1], [], []>} : vector<64x121xf32>, vector<121x27xf32>, vector<64x27xf32> -> vector<64x27xf32>
    %508 = math.log %507 : vector<64x27xf32>
    %509 = vector.extract_strided_slice %0 {offsets = [0, 0], sizes = [16, 125], strides = [1, 1]} : vector<16x128xf32> to vector<16x125xf32>
    %c8_219 = arith.constant 8 : index
    %c0_220 = arith.constant 0 : index
    %510 = memref.load %arg2[%c8_219, %c0_220] : memref<12x20xf32, #tpu.memory_space<smem>>
    %511 = vector.broadcast %510 : f32 to vector<16x125xf32>
    %512 = arith.mulf %511, %509 : vector<16x125xf32>
    %c9_221 = arith.constant 9 : index
    %c0_222 = arith.constant 0 : index
    %513 = memref.load %arg2[%c9_221, %c0_222] : memref<12x20xf32, #tpu.memory_space<smem>>
    %514 = vector.broadcast %513 : f32 to vector<16x125xf32>
    %515 = arith.mulf %514, %509 : vector<16x125xf32>
    %c10_223 = arith.constant 10 : index
    %c0_224 = arith.constant 0 : index
    %516 = memref.load %arg2[%c10_223, %c0_224] : memref<12x20xf32, #tpu.memory_space<smem>>
    %517 = vector.broadcast %516 : f32 to vector<16x125xf32>
    %518 = arith.mulf %517, %509 : vector<16x125xf32>
    %c11_225 = arith.constant 11 : index
    %c0_226 = arith.constant 0 : index
    %519 = memref.load %arg2[%c11_225, %c0_226] : memref<12x20xf32, #tpu.memory_space<smem>>
    %520 = vector.broadcast %519 : f32 to vector<16x125xf32>
    %521 = arith.mulf %520, %509 : vector<16x125xf32>
    %522 = vector.extract_strided_slice %0 {offsets = [0, 1], sizes = [16, 125], strides = [1, 1]} : vector<16x128xf32> to vector<16x125xf32>
    %c8_227 = arith.constant 8 : index
    %c1_228 = arith.constant 1 : index
    %523 = memref.load %arg2[%c8_227, %c1_228] : memref<12x20xf32, #tpu.memory_space<smem>>
    %524 = vector.broadcast %523 : f32 to vector<16x125xf32>
    %525 = arith.mulf %524, %522 : vector<16x125xf32>
    %526 = arith.addf %512, %525 : vector<16x125xf32>
    %c9_229 = arith.constant 9 : index
    %c1_230 = arith.constant 1 : index
    %527 = memref.load %arg2[%c9_229, %c1_230] : memref<12x20xf32, #tpu.memory_space<smem>>
    %528 = vector.broadcast %527 : f32 to vector<16x125xf32>
    %529 = arith.mulf %528, %522 : vector<16x125xf32>
    %530 = arith.addf %515, %529 : vector<16x125xf32>
    %c10_231 = arith.constant 10 : index
    %c1_232 = arith.constant 1 : index
    %531 = memref.load %arg2[%c10_231, %c1_232] : memref<12x20xf32, #tpu.memory_space<smem>>
    %532 = vector.broadcast %531 : f32 to vector<16x125xf32>
    %533 = arith.mulf %532, %522 : vector<16x125xf32>
    %534 = arith.addf %518, %533 : vector<16x125xf32>
    %c11_233 = arith.constant 11 : index
    %c1_234 = arith.constant 1 : index
    %535 = memref.load %arg2[%c11_233, %c1_234] : memref<12x20xf32, #tpu.memory_space<smem>>
    %536 = vector.broadcast %535 : f32 to vector<16x125xf32>
    %537 = arith.mulf %536, %522 : vector<16x125xf32>
    %538 = arith.addf %521, %537 : vector<16x125xf32>
    %539 = vector.extract_strided_slice %0 {offsets = [0, 2], sizes = [16, 125], strides = [1, 1]} : vector<16x128xf32> to vector<16x125xf32>
    %c8_235 = arith.constant 8 : index
    %c2_236 = arith.constant 2 : index
    %540 = memref.load %arg2[%c8_235, %c2_236] : memref<12x20xf32, #tpu.memory_space<smem>>
    %541 = vector.broadcast %540 : f32 to vector<16x125xf32>
    %542 = arith.mulf %541, %539 : vector<16x125xf32>
    %543 = arith.addf %526, %542 : vector<16x125xf32>
    %c9_237 = arith.constant 9 : index
    %c2_238 = arith.constant 2 : index
    %544 = memref.load %arg2[%c9_237, %c2_238] : memref<12x20xf32, #tpu.memory_space<smem>>
    %545 = vector.broadcast %544 : f32 to vector<16x125xf32>
    %546 = arith.mulf %545, %539 : vector<16x125xf32>
    %547 = arith.addf %530, %546 : vector<16x125xf32>
    %c10_239 = arith.constant 10 : index
    %c2_240 = arith.constant 2 : index
    %548 = memref.load %arg2[%c10_239, %c2_240] : memref<12x20xf32, #tpu.memory_space<smem>>
    %549 = vector.broadcast %548 : f32 to vector<16x125xf32>
    %550 = arith.mulf %549, %539 : vector<16x125xf32>
    %551 = arith.addf %534, %550 : vector<16x125xf32>
    %c11_241 = arith.constant 11 : index
    %c2_242 = arith.constant 2 : index
    %552 = memref.load %arg2[%c11_241, %c2_242] : memref<12x20xf32, #tpu.memory_space<smem>>
    %553 = vector.broadcast %552 : f32 to vector<16x125xf32>
    %554 = arith.mulf %553, %539 : vector<16x125xf32>
    %555 = arith.addf %538, %554 : vector<16x125xf32>
    %556 = vector.extract_strided_slice %0 {offsets = [0, 3], sizes = [16, 125], strides = [1, 1]} : vector<16x128xf32> to vector<16x125xf32>
    %c8_243 = arith.constant 8 : index
    %c3_244 = arith.constant 3 : index
    %557 = memref.load %arg2[%c8_243, %c3_244] : memref<12x20xf32, #tpu.memory_space<smem>>
    %558 = vector.broadcast %557 : f32 to vector<16x125xf32>
    %559 = arith.mulf %558, %556 : vector<16x125xf32>
    %560 = arith.addf %543, %559 : vector<16x125xf32>
    %c9_245 = arith.constant 9 : index
    %c3_246 = arith.constant 3 : index
    %561 = memref.load %arg2[%c9_245, %c3_246] : memref<12x20xf32, #tpu.memory_space<smem>>
    %562 = vector.broadcast %561 : f32 to vector<16x125xf32>
    %563 = arith.mulf %562, %556 : vector<16x125xf32>
    %564 = arith.addf %547, %563 : vector<16x125xf32>
    %c10_247 = arith.constant 10 : index
    %c3_248 = arith.constant 3 : index
    %565 = memref.load %arg2[%c10_247, %c3_248] : memref<12x20xf32, #tpu.memory_space<smem>>
    %566 = vector.broadcast %565 : f32 to vector<16x125xf32>
    %567 = arith.mulf %566, %556 : vector<16x125xf32>
    %568 = arith.addf %551, %567 : vector<16x125xf32>
    %c11_249 = arith.constant 11 : index
    %c3_250 = arith.constant 3 : index
    %569 = memref.load %arg2[%c11_249, %c3_250] : memref<12x20xf32, #tpu.memory_space<smem>>
    %570 = vector.broadcast %569 : f32 to vector<16x125xf32>
    %571 = arith.mulf %570, %556 : vector<16x125xf32>
    %572 = arith.addf %555, %571 : vector<16x125xf32>
    %c8_251 = arith.constant 8 : index
    %573 = memref.load %arg3[%c8_251] : memref<12xf32, #tpu.memory_space<smem>>
    %574 = vector.broadcast %573 : f32 to vector<16x125xf32>
    %575 = arith.addf %560, %574 : vector<16x125xf32>
    %576 = arith.mulf %575, %575 : vector<16x125xf32>
    %c9_252 = arith.constant 9 : index
    %577 = memref.load %arg3[%c9_252] : memref<12xf32, #tpu.memory_space<smem>>
    %578 = vector.broadcast %577 : f32 to vector<16x125xf32>
    %579 = arith.addf %564, %578 : vector<16x125xf32>
    %580 = arith.mulf %579, %579 : vector<16x125xf32>
    %c10_253 = arith.constant 10 : index
    %581 = memref.load %arg3[%c10_253] : memref<12xf32, #tpu.memory_space<smem>>
    %582 = vector.broadcast %581 : f32 to vector<16x125xf32>
    %583 = arith.addf %568, %582 : vector<16x125xf32>
    %584 = arith.mulf %583, %583 : vector<16x125xf32>
    %c11_254 = arith.constant 11 : index
    %585 = memref.load %arg3[%c11_254] : memref<12xf32, #tpu.memory_space<smem>>
    %586 = vector.broadcast %585 : f32 to vector<16x125xf32>
    %587 = arith.addf %572, %586 : vector<16x125xf32>
    %588 = arith.mulf %587, %587 : vector<16x125xf32>
    %589 = tpu.concatenate %576, %580, %584, %588 in 0 : vector<16x125xf32>, vector<16x125xf32>, vector<16x125xf32>, vector<16x125xf32> -> vector<64x125xf32>
    %c0_255 = arith.constant 0 : index
    %c0_256 = arith.constant 0 : index
    %590 = vector.load %arg8[%c0_255, %c0_256] : memref<125x28xf32, #tpu.memory_space<vmem>>, vector<125x28xf32>
    %cst_257 = arith.constant dense<0.000000e+00> : vector<64x28xf32>
    %591 = tpu.matmul %589, %590, %cst_257 {dimension_numbers = #tpu.dot_dimension_numbers<[1], [0], [0], [1], [0, 0, 1, 1], [], []>} : vector<64x125xf32>, vector<125x28xf32>, vector<64x28xf32> -> vector<64x28xf32>
    %592 = math.log %591 : vector<64x28xf32>
    %593 = tpu.concatenate %356, %508, %592 in 1 : vector<64x24xf32>, vector<64x27xf32>, vector<64x28xf32> -> vector<64x79xf32>
    %c0_258 = arith.constant 0 : index
    %c0_259 = arith.constant 0 : index
    %594 = vector.load %arg9[%c0_258, %c0_259] : memref<79x39xf32, #tpu.memory_space<vmem>>, vector<79x39xf32>
    %595 = vector.extract_strided_slice %593 {offsets = [0, 0], sizes = [16, 79], strides = [1, 1]} : vector<64x79xf32> to vector<16x79xf32>
    %596 = vector.extract_strided_slice %593 {offsets = [16, 0], sizes = [16, 79], strides = [1, 1]} : vector<64x79xf32> to vector<16x79xf32>
    %597 = vector.extract_strided_slice %593 {offsets = [32, 0], sizes = [16, 79], strides = [1, 1]} : vector<64x79xf32> to vector<16x79xf32>
    %598 = vector.extract_strided_slice %593 {offsets = [48, 0], sizes = [16, 79], strides = [1, 1]} : vector<64x79xf32> to vector<16x79xf32>
    %c0_260 = arith.constant 0 : index
    %599 = memref.load %arg5[%c0_260] : memref<4xf32, #tpu.memory_space<smem>>
    %c0_261 = arith.constant 0 : index
    %c0_262 = arith.constant 0 : index
    %600 = memref.load %arg4[%c0_261, %c0_262] : memref<4x4xf32, #tpu.memory_space<smem>>
    %601 = vector.broadcast %600 : f32 to vector<16x79xf32>
    %602 = arith.mulf %601, %595 : vector<16x79xf32>
    %603 = vector.broadcast %599 : f32 to vector<16x79xf32>
    %604 = arith.addf %603, %602 : vector<16x79xf32>
    %c0_263 = arith.constant 0 : index
    %c1_264 = arith.constant 1 : index
    %605 = memref.load %arg4[%c0_263, %c1_264] : memref<4x4xf32, #tpu.memory_space<smem>>
    %606 = vector.broadcast %605 : f32 to vector<16x79xf32>
    %607 = arith.mulf %606, %596 : vector<16x79xf32>
    %608 = arith.addf %604, %607 : vector<16x79xf32>
    %c0_265 = arith.constant 0 : index
    %c2_266 = arith.constant 2 : index
    %609 = memref.load %arg4[%c0_265, %c2_266] : memref<4x4xf32, #tpu.memory_space<smem>>
    %610 = vector.broadcast %609 : f32 to vector<16x79xf32>
    %611 = arith.mulf %610, %597 : vector<16x79xf32>
    %612 = arith.addf %608, %611 : vector<16x79xf32>
    %c0_267 = arith.constant 0 : index
    %c3_268 = arith.constant 3 : index
    %613 = memref.load %arg4[%c0_267, %c3_268] : memref<4x4xf32, #tpu.memory_space<smem>>
    %614 = vector.broadcast %613 : f32 to vector<16x79xf32>
    %615 = arith.mulf %614, %598 : vector<16x79xf32>
    %616 = arith.addf %612, %615 : vector<16x79xf32>
    %cst_269 = arith.constant 0.000000e+00 : f32
    %617 = vector.broadcast %cst_269 : f32 to vector<16x79xf32>
    %618 = arith.cmpf oge, %616, %617 : vector<16x79xf32>
    %cst_270 = arith.constant 0.00999999977 : f32
    %619 = vector.broadcast %cst_270 : f32 to vector<16x79xf32>
    %620 = arith.mulf %619, %616 : vector<16x79xf32>
    %621 = arith.select %618, %616, %620 : vector<16x79xi1>, vector<16x79xf32>
    %cst_271 = arith.constant dense<0.000000e+00> : vector<16x39xf32>
    %622 = tpu.matmul %621, %594, %cst_271 {dimension_numbers = #tpu.dot_dimension_numbers<[1], [0], [0], [1], [0, 0, 1, 1], [], []>} : vector<16x79xf32>, vector<79x39xf32>, vector<16x39xf32> -> vector<16x39xf32>
    %c1_272 = arith.constant 1 : index
    %623 = memref.load %arg5[%c1_272] : memref<4xf32, #tpu.memory_space<smem>>
    %c1_273 = arith.constant 1 : index
    %c0_274 = arith.constant 0 : index
    %624 = memref.load %arg4[%c1_273, %c0_274] : memref<4x4xf32, #tpu.memory_space<smem>>
    %625 = vector.broadcast %624 : f32 to vector<16x79xf32>
    %626 = arith.mulf %625, %595 : vector<16x79xf32>
    %627 = vector.broadcast %623 : f32 to vector<16x79xf32>
    %628 = arith.addf %627, %626 : vector<16x79xf32>
    %c1_275 = arith.constant 1 : index
    %c1_276 = arith.constant 1 : index
    %629 = memref.load %arg4[%c1_275, %c1_276] : memref<4x4xf32, #tpu.memory_space<smem>>
    %630 = vector.broadcast %629 : f32 to vector<16x79xf32>
    %631 = arith.mulf %630, %596 : vector<16x79xf32>
    %632 = arith.addf %628, %631 : vector<16x79xf32>
    %c1_277 = arith.constant 1 : index
    %c2_278 = arith.constant 2 : index
    %633 = memref.load %arg4[%c1_277, %c2_278] : memref<4x4xf32, #tpu.memory_space<smem>>
    %634 = vector.broadcast %633 : f32 to vector<16x79xf32>
    %635 = arith.mulf %634, %597 : vector<16x79xf32>
    %636 = arith.addf %632, %635 : vector<16x79xf32>
    %c1_279 = arith.constant 1 : index
    %c3_280 = arith.constant 3 : index
    %637 = memref.load %arg4[%c1_279, %c3_280] : memref<4x4xf32, #tpu.memory_space<smem>>
    %638 = vector.broadcast %637 : f32 to vector<16x79xf32>
    %639 = arith.mulf %638, %598 : vector<16x79xf32>
    %640 = arith.addf %636, %639 : vector<16x79xf32>
    %cst_281 = arith.constant 0.000000e+00 : f32
    %641 = vector.broadcast %cst_281 : f32 to vector<16x79xf32>
    %642 = arith.cmpf oge, %640, %641 : vector<16x79xf32>
    %cst_282 = arith.constant 0.00999999977 : f32
    %643 = vector.broadcast %cst_282 : f32 to vector<16x79xf32>
    %644 = arith.mulf %643, %640 : vector<16x79xf32>
    %645 = arith.select %642, %640, %644 : vector<16x79xi1>, vector<16x79xf32>
    %cst_283 = arith.constant dense<0.000000e+00> : vector<16x39xf32>
    %646 = tpu.matmul %645, %594, %cst_283 {dimension_numbers = #tpu.dot_dimension_numbers<[1], [0], [0], [1], [0, 0, 1, 1], [], []>} : vector<16x79xf32>, vector<79x39xf32>, vector<16x39xf32> -> vector<16x39xf32>
    %c2_284 = arith.constant 2 : index
    %647 = memref.load %arg5[%c2_284] : memref<4xf32, #tpu.memory_space<smem>>
    %c2_285 = arith.constant 2 : index
    %c0_286 = arith.constant 0 : index
    %648 = memref.load %arg4[%c2_285, %c0_286] : memref<4x4xf32, #tpu.memory_space<smem>>
    %649 = vector.broadcast %648 : f32 to vector<16x79xf32>
    %650 = arith.mulf %649, %595 : vector<16x79xf32>
    %651 = vector.broadcast %647 : f32 to vector<16x79xf32>
    %652 = arith.addf %651, %650 : vector<16x79xf32>
    %c2_287 = arith.constant 2 : index
    %c1_288 = arith.constant 1 : index
    %653 = memref.load %arg4[%c2_287, %c1_288] : memref<4x4xf32, #tpu.memory_space<smem>>
    %654 = vector.broadcast %653 : f32 to vector<16x79xf32>
    %655 = arith.mulf %654, %596 : vector<16x79xf32>
    %656 = arith.addf %652, %655 : vector<16x79xf32>
    %c2_289 = arith.constant 2 : index
    %c2_290 = arith.constant 2 : index
    %657 = memref.load %arg4[%c2_289, %c2_290] : memref<4x4xf32, #tpu.memory_space<smem>>
    %658 = vector.broadcast %657 : f32 to vector<16x79xf32>
    %659 = arith.mulf %658, %597 : vector<16x79xf32>
    %660 = arith.addf %656, %659 : vector<16x79xf32>
    %c2_291 = arith.constant 2 : index
    %c3_292 = arith.constant 3 : index
    %661 = memref.load %arg4[%c2_291, %c3_292] : memref<4x4xf32, #tpu.memory_space<smem>>
    %662 = vector.broadcast %661 : f32 to vector<16x79xf32>
    %663 = arith.mulf %662, %598 : vector<16x79xf32>
    %664 = arith.addf %660, %663 : vector<16x79xf32>
    %cst_293 = arith.constant 0.000000e+00 : f32
    %665 = vector.broadcast %cst_293 : f32 to vector<16x79xf32>
    %666 = arith.cmpf oge, %664, %665 : vector<16x79xf32>
    %cst_294 = arith.constant 0.00999999977 : f32
    %667 = vector.broadcast %cst_294 : f32 to vector<16x79xf32>
    %668 = arith.mulf %667, %664 : vector<16x79xf32>
    %669 = arith.select %666, %664, %668 : vector<16x79xi1>, vector<16x79xf32>
    %cst_295 = arith.constant dense<0.000000e+00> : vector<16x39xf32>
    %670 = tpu.matmul %669, %594, %cst_295 {dimension_numbers = #tpu.dot_dimension_numbers<[1], [0], [0], [1], [0, 0, 1, 1], [], []>} : vector<16x79xf32>, vector<79x39xf32>, vector<16x39xf32> -> vector<16x39xf32>
    %c3_296 = arith.constant 3 : index
    %671 = memref.load %arg5[%c3_296] : memref<4xf32, #tpu.memory_space<smem>>
    %c3_297 = arith.constant 3 : index
    %c0_298 = arith.constant 0 : index
    %672 = memref.load %arg4[%c3_297, %c0_298] : memref<4x4xf32, #tpu.memory_space<smem>>
    %673 = vector.broadcast %672 : f32 to vector<16x79xf32>
    %674 = arith.mulf %673, %595 : vector<16x79xf32>
    %675 = vector.broadcast %671 : f32 to vector<16x79xf32>
    %676 = arith.addf %675, %674 : vector<16x79xf32>
    %c3_299 = arith.constant 3 : index
    %c1_300 = arith.constant 1 : index
    %677 = memref.load %arg4[%c3_299, %c1_300] : memref<4x4xf32, #tpu.memory_space<smem>>
    %678 = vector.broadcast %677 : f32 to vector<16x79xf32>
    %679 = arith.mulf %678, %596 : vector<16x79xf32>
    %680 = arith.addf %676, %679 : vector<16x79xf32>
    %c3_301 = arith.constant 3 : index
    %c2_302 = arith.constant 2 : index
    %681 = memref.load %arg4[%c3_301, %c2_302] : memref<4x4xf32, #tpu.memory_space<smem>>
    %682 = vector.broadcast %681 : f32 to vector<16x79xf32>
    %683 = arith.mulf %682, %597 : vector<16x79xf32>
    %684 = arith.addf %680, %683 : vector<16x79xf32>
    %c3_303 = arith.constant 3 : index
    %c3_304 = arith.constant 3 : index
    %685 = memref.load %arg4[%c3_303, %c3_304] : memref<4x4xf32, #tpu.memory_space<smem>>
    %686 = vector.broadcast %685 : f32 to vector<16x79xf32>
    %687 = arith.mulf %686, %598 : vector<16x79xf32>
    %688 = arith.addf %684, %687 : vector<16x79xf32>
    %cst_305 = arith.constant 0.000000e+00 : f32
    %689 = vector.broadcast %cst_305 : f32 to vector<16x79xf32>
    %690 = arith.cmpf oge, %688, %689 : vector<16x79xf32>
    %cst_306 = arith.constant 0.00999999977 : f32
    %691 = vector.broadcast %cst_306 : f32 to vector<16x79xf32>
    %692 = arith.mulf %691, %688 : vector<16x79xf32>
    %693 = arith.select %690, %688, %692 : vector<16x79xi1>, vector<16x79xf32>
    %cst_307 = arith.constant dense<0.000000e+00> : vector<16x39xf32>
    %694 = tpu.matmul %693, %594, %cst_307 {dimension_numbers = #tpu.dot_dimension_numbers<[1], [0], [0], [1], [0, 0, 1, 1], [], []>} : vector<16x79xf32>, vector<79x39xf32>, vector<16x39xf32> -> vector<16x39xf32>
    %695 = tpu.concatenate %622, %646, %670, %694 in 1 : vector<16x39xf32>, vector<16x39xf32>, vector<16x39xf32>, vector<16x39xf32> -> vector<16x156xf32>
    %c0_308 = arith.constant 0 : index
    %c0_309 = arith.constant 0 : index
    %696 = vector.load %arg10[%c0_308, %c0_309] : memref<8x156xf32, #tpu.memory_space<vmem>>, vector<8x156xf32>
    %c0_310 = arith.constant 0 : index
    %c0_311 = arith.constant 0 : index
    %697 = vector.load %arg11[%c0_310, %c0_311] : memref<8x1xf32, #tpu.memory_space<vmem>>, vector<8x1xf32>
    %698 = vector.extract_strided_slice %695 {offsets = [0, 0], sizes = [8, 156], strides = [1, 1]} : vector<16x156xf32> to vector<8x156xf32>
    %699 = arith.mulf %698, %696 : vector<8x156xf32>
    %700 = vector.broadcast %697 : vector<8x1xf32> to vector<8x156xf32>
    %701 = arith.subf %699, %700 : vector<8x156xf32>
    %cst_312 = arith.constant 0.000000e+00 : f32
    %702 = vector.broadcast %cst_312 : f32 to vector<8x156xf32>
    %703 = arith.maximumf %701, %702 : vector<8x156xf32>
    %704 = vector.extract_strided_slice %695 {offsets = [8, 0], sizes = [8, 156], strides = [1, 1]} : vector<16x156xf32> to vector<8x156xf32>
    %705 = arith.mulf %704, %696 : vector<8x156xf32>
    %706 = vector.broadcast %697 : vector<8x1xf32> to vector<8x156xf32>
    %707 = arith.subf %705, %706 : vector<8x156xf32>
    %cst_313 = arith.constant 0.000000e+00 : f32
    %708 = vector.broadcast %cst_313 : f32 to vector<8x156xf32>
    %709 = arith.maximumf %707, %708 : vector<8x156xf32>
    %cst_314 = arith.constant dense<0.000000e+00> : vector<8xf32>
    %710 = vector.multi_reduction <add>, %703, %cst_314 [1] : vector<8x156xf32> to vector<8xf32>
    %711 = vector.shape_cast %710 : vector<8xf32> to vector<8x1xf32>
    %cst_315 = arith.constant 0.000000e+00 : f32
    %712 = vector.broadcast %cst_315 : f32 to vector<8x1xf32>
    %713 = arith.addf %712, %711 : vector<8x1xf32>
    %cst_316 = arith.constant dense<0.000000e+00> : vector<8xf32>
    %714 = vector.multi_reduction <add>, %709, %cst_316 [1] : vector<8x156xf32> to vector<8xf32>
    %715 = vector.shape_cast %714 : vector<8xf32> to vector<8x1xf32>
    %716 = arith.addf %713, %715 : vector<8x1xf32>
    %cst_317 = arith.constant 3.120000e+02 : f32
    %717 = vector.broadcast %cst_317 : f32 to vector<8x1xf32>
    %718 = arith.divf %716, %717 : vector<8x1xf32>
    %719 = vector.broadcast %718 : vector<8x1xf32> to vector<8x156xf32>
    %720 = arith.subf %703, %719 : vector<8x156xf32>
    %721 = vector.broadcast %718 : vector<8x1xf32> to vector<8x156xf32>
    %722 = arith.subf %709, %721 : vector<8x156xf32>
    %723 = arith.mulf %720, %720 : vector<8x156xf32>
    %cst_318 = arith.constant dense<0.000000e+00> : vector<8xf32>
    %724 = vector.multi_reduction <add>, %723, %cst_318 [1] : vector<8x156xf32> to vector<8xf32>
    %725 = vector.shape_cast %724 : vector<8xf32> to vector<8x1xf32>
    %cst_319 = arith.constant 0.000000e+00 : f32
    %726 = vector.broadcast %cst_319 : f32 to vector<8x1xf32>
    %727 = arith.addf %726, %725 : vector<8x1xf32>
    %728 = arith.mulf %722, %722 : vector<8x156xf32>
    %cst_320 = arith.constant dense<0.000000e+00> : vector<8xf32>
    %729 = vector.multi_reduction <add>, %728, %cst_320 [1] : vector<8x156xf32> to vector<8xf32>
    %730 = vector.shape_cast %729 : vector<8xf32> to vector<8x1xf32>
    %731 = arith.addf %727, %730 : vector<8x1xf32>
    %cst_321 = arith.constant 3.120000e+02 : f32
    %732 = vector.broadcast %cst_321 : f32 to vector<8x1xf32>
    %733 = arith.divf %731, %732 : vector<8x1xf32>
    %cst_322 = arith.constant 9.99999974E-6 : f32
    %734 = vector.broadcast %cst_322 : f32 to vector<8x1xf32>
    %735 = arith.addf %733, %734 : vector<8x1xf32>
    %736 = math.rsqrt %735 : vector<8x1xf32>
    %737 = vector.broadcast %736 : vector<8x1xf32> to vector<8x156xf32>
    %738 = arith.mulf %720, %737 : vector<8x156xf32>
    %739 = vector.broadcast %736 : vector<8x1xf32> to vector<8x156xf32>
    %740 = arith.mulf %722, %739 : vector<8x156xf32>
    %c0_323 = arith.constant 0 : index
    %c0_324 = arith.constant 0 : index
    %741 = vector.load %arg12[%c0_323, %c0_324] : memref<8x8xf32, #tpu.memory_space<vmem>>, vector<8x8xf32>
    %742 = tpu.iota {dimensions = array<i32: 0>} : vector<8x8xi32>
    %743 = tpu.iota {dimensions = array<i32: 1>} : vector<8x8xi32>
    %744 = arith.cmpi eq, %742, %743 : vector<8x8xi32>
    %745 = arith.extui %744 : vector<8x8xi1> to vector<8x8xi32>
    %746 = arith.sitofp %745 : vector<8x8xi32> to vector<8x8xf32>
    %c0_325 = arith.constant 0 : index
    %c0_326 = arith.constant 0 : index
    %747 = vector.load %arg13[%c0_325, %c0_326] : memref<156x16xf32, #tpu.memory_space<vmem>>, vector<156x16xf32>
    %c0_327 = arith.constant 0 : index
    %c0_328 = arith.constant 0 : index
    %748 = vector.load %arg14[%c0_327, %c0_328] : memref<1x16xf32, #tpu.memory_space<vmem>>, vector<1x16xf32>
    %cst_329 = arith.constant dense<0.000000e+00> : vector<8x8xf32>
    %749 = tpu.matmul %738, %738, %cst_329 {dimension_numbers = #tpu.dot_dimension_numbers<[1], [1], [0], [0], [0, 0, 1, 0], [], []>} : vector<8x156xf32>, vector<8x156xf32>, vector<8x8xf32> -> vector<8x8xf32>
    %750 = arith.mulf %749, %741 : vector<8x8xf32>
    %cst_330 = arith.constant 0.000000e+00 : f32
    %751 = vector.broadcast %cst_330 : f32 to vector<8x8xf32>
    %752 = arith.maximumf %750, %751 : vector<8x8xf32>
    %753 = arith.addf %752, %746 : vector<8x8xf32>
    %cst_331 = arith.constant dense<0.000000e+00> : vector<8xf32>
    %754 = vector.multi_reduction <add>, %753, %cst_331 [1] : vector<8x8xf32> to vector<8xf32>
    %755 = vector.shape_cast %754 : vector<8xf32> to vector<8x1xf32>
    %cst_332 = arith.constant 0.000000e+00 : f32
    %756 = vector.broadcast %cst_332 : f32 to vector<8x1xf32>
    %757 = arith.cmpf oeq, %755, %756 : vector<8x1xf32>
    %758 = arith.extui %757 : vector<8x1xi1> to vector<8x1xi32>
    %759 = arith.sitofp %758 : vector<8x1xi32> to vector<8x1xf32>
    %760 = arith.addf %755, %759 : vector<8x1xf32>
    %cst_333 = arith.constant dense<0.000000e+00> : vector<8xf32>
    %761 = vector.multi_reduction <add>, %753, %cst_333 [0] : vector<8x8xf32> to vector<8xf32>
    %762 = vector.shape_cast %761 : vector<8xf32> to vector<1x8xf32>
    %cst_334 = arith.constant 0.000000e+00 : f32
    %763 = vector.broadcast %cst_334 : f32 to vector<1x8xf32>
    %764 = arith.cmpf oeq, %762, %763 : vector<1x8xf32>
    %765 = arith.extui %764 : vector<1x8xi1> to vector<1x8xi32>
    %766 = arith.sitofp %765 : vector<1x8xi32> to vector<1x8xf32>
    %767 = arith.addf %762, %766 : vector<1x8xf32>
    %768 = math.rsqrt %760 : vector<8x1xf32>
    %769 = vector.broadcast %768 : vector<8x1xf32> to vector<8x8xf32>
    %770 = arith.mulf %753, %769 : vector<8x8xf32>
    %771 = math.rsqrt %767 : vector<1x8xf32>
    %772 = vector.broadcast %771 : vector<1x8xf32> to vector<8x8xf32>
    %773 = arith.mulf %770, %772 : vector<8x8xf32>
    %cst_335 = arith.constant dense<0.000000e+00> : vector<8x156xf32>
    %774 = tpu.matmul %773, %738, %cst_335 {dimension_numbers = #tpu.dot_dimension_numbers<[1], [0], [0], [1], [0, 0, 1, 1], [], []>} : vector<8x8xf32>, vector<8x156xf32>, vector<8x156xf32> -> vector<8x156xf32>
    %cst_336 = arith.constant dense<0.000000e+00> : vector<8x16xf32>
    %775 = tpu.matmul %774, %747, %cst_336 {dimension_numbers = #tpu.dot_dimension_numbers<[1], [0], [0], [1], [0, 0, 1, 1], [], []>} : vector<8x156xf32>, vector<156x16xf32>, vector<8x16xf32> -> vector<8x16xf32>
    %776 = vector.broadcast %748 : vector<1x16xf32> to vector<8x16xf32>
    %777 = arith.subf %775, %776 : vector<8x16xf32>
    %cst_337 = arith.constant dense<0.000000e+00> : vector<16xf32>
    %778 = vector.multi_reduction <add>, %777, %cst_337 [0] : vector<8x16xf32> to vector<16xf32>
    %779 = vector.shape_cast %778 : vector<16xf32> to vector<1x16xf32>
    %cst_338 = arith.constant dense<0.000000e+00> : vector<8x8xf32>
    %780 = tpu.matmul %740, %740, %cst_338 {dimension_numbers = #tpu.dot_dimension_numbers<[1], [1], [0], [0], [0, 0, 1, 0], [], []>} : vector<8x156xf32>, vector<8x156xf32>, vector<8x8xf32> -> vector<8x8xf32>
    %781 = arith.mulf %780, %741 : vector<8x8xf32>
    %cst_339 = arith.constant 0.000000e+00 : f32
    %782 = vector.broadcast %cst_339 : f32 to vector<8x8xf32>
    %783 = arith.maximumf %781, %782 : vector<8x8xf32>
    %784 = arith.addf %783, %746 : vector<8x8xf32>
    %cst_340 = arith.constant dense<0.000000e+00> : vector<8xf32>
    %785 = vector.multi_reduction <add>, %784, %cst_340 [1] : vector<8x8xf32> to vector<8xf32>
    %786 = vector.shape_cast %785 : vector<8xf32> to vector<8x1xf32>
    %cst_341 = arith.constant 0.000000e+00 : f32
    %787 = vector.broadcast %cst_341 : f32 to vector<8x1xf32>
    %788 = arith.cmpf oeq, %786, %787 : vector<8x1xf32>
    %789 = arith.extui %788 : vector<8x1xi1> to vector<8x1xi32>
    %790 = arith.sitofp %789 : vector<8x1xi32> to vector<8x1xf32>
    %791 = arith.addf %786, %790 : vector<8x1xf32>
    %cst_342 = arith.constant dense<0.000000e+00> : vector<8xf32>
    %792 = vector.multi_reduction <add>, %784, %cst_342 [0] : vector<8x8xf32> to vector<8xf32>
    %793 = vector.shape_cast %792 : vector<8xf32> to vector<1x8xf32>
    %cst_343 = arith.constant 0.000000e+00 : f32
    %794 = vector.broadcast %cst_343 : f32 to vector<1x8xf32>
    %795 = arith.cmpf oeq, %793, %794 : vector<1x8xf32>
    %796 = arith.extui %795 : vector<1x8xi1> to vector<1x8xi32>
    %797 = arith.sitofp %796 : vector<1x8xi32> to vector<1x8xf32>
    %798 = arith.addf %793, %797 : vector<1x8xf32>
    %799 = math.rsqrt %791 : vector<8x1xf32>
    %800 = vector.broadcast %799 : vector<8x1xf32> to vector<8x8xf32>
    %801 = arith.mulf %784, %800 : vector<8x8xf32>
    %802 = math.rsqrt %798 : vector<1x8xf32>
    %803 = vector.broadcast %802 : vector<1x8xf32> to vector<8x8xf32>
    %804 = arith.mulf %801, %803 : vector<8x8xf32>
    %cst_344 = arith.constant dense<0.000000e+00> : vector<8x156xf32>
    %805 = tpu.matmul %804, %740, %cst_344 {dimension_numbers = #tpu.dot_dimension_numbers<[1], [0], [0], [1], [0, 0, 1, 1], [], []>} : vector<8x8xf32>, vector<8x156xf32>, vector<8x156xf32> -> vector<8x156xf32>
    %cst_345 = arith.constant dense<0.000000e+00> : vector<8x16xf32>
    %806 = tpu.matmul %805, %747, %cst_345 {dimension_numbers = #tpu.dot_dimension_numbers<[1], [0], [0], [1], [0, 0, 1, 1], [], []>} : vector<8x156xf32>, vector<156x16xf32>, vector<8x16xf32> -> vector<8x16xf32>
    %807 = vector.broadcast %748 : vector<1x16xf32> to vector<8x16xf32>
    %808 = arith.subf %806, %807 : vector<8x16xf32>
    %cst_346 = arith.constant dense<0.000000e+00> : vector<16xf32>
    %809 = vector.multi_reduction <add>, %808, %cst_346 [0] : vector<8x16xf32> to vector<16xf32>
    %810 = vector.shape_cast %809 : vector<16xf32> to vector<1x16xf32>
    %811 = tpu.concatenate %779, %810 in 0 : vector<1x16xf32>, vector<1x16xf32> -> vector<2x16xf32>
    %c0_347 = arith.constant 0 : index
    %c0_348 = arith.constant 0 : index
    %812 = vector.load %arg15[%c0_347, %c0_348] : memref<2x16xf32, #tpu.memory_space<vmem>>, vector<2x16xf32>
    tpu.vector_store %arg15[%c0_347, %c0_348], %811 {strides = array<i32>} : memref<2x16xf32, #tpu.memory_space<vmem>>, vector<2x16xf32>,
    return
  }
  func.func @transform_0(%arg0: i32) -> (i32, i32) {
    %c0_i32 = arith.constant 0 : i32
    %c0_i32_0 = arith.constant 0 : i32
    %c0_i32_1 = arith.constant 0 : i32
    return %c0_i32, %c0_i32_0 : i32, i32
  }
  func.func @transform_1(%arg0: i32) -> (i32, i32) {
    %c0_i32 = arith.constant 0 : i32
    %c0_i32_0 = arith.constant 0 : i32
    %c0_i32_1 = arith.constant 0 : i32
    return %c0_i32, %c0_i32_0 : i32, i32
  }
  func.func @transform_2(%arg0: i32) -> i32 {
    %c0_i32 = arith.constant 0 : i32
    %c0_i32_0 = arith.constant 0 : i32
    return %c0_i32 : i32
  }
  func.func @transform_3(%arg0: i32) -> (i32, i32) {
    %c0_i32 = arith.constant 0 : i32
    %c0_i32_0 = arith.constant 0 : i32
    %c0_i32_1 = arith.constant 0 : i32
    return %c0_i32, %c0_i32_0 : i32, i32
  }
  func.func @transform_4(%arg0: i32) -> i32 {
    %c0_i32 = arith.constant 0 : i32
    %c0_i32_0 = arith.constant 0 : i32
    return %c0_i32 : i32
  }
  func.func @transform_5(%arg0: i32) -> (i32, i32) {
    %c0_i32 = arith.constant 0 : i32
    %c0_i32_0 = arith.constant 0 : i32
    %c0_i32_1 = arith.constant 0 : i32
    return %c0_i32, %c0_i32_0 : i32, i32
  }
  func.func @transform_6(%arg0: i32) -> (i32, i32) {
    %c0_i32 = arith.constant 0 : i32
    %c0_i32_0 = arith.constant 0 : i32
    %c0_i32_1 = arith.constant 0 : i32
    return %c0_i32, %c0_i32_0 : i32, i32
  }
  func.func @transform_7(%arg0: i32) -> (i32, i32) {
    %c0_i32 = arith.constant 0 : i32
    %c0_i32_0 = arith.constant 0 : i32
    %c0_i32_1 = arith.constant 0 : i32
    return %c0_i32, %c0_i32_0 : i32, i32
  }
  func.func @transform_8(%arg0: i32) -> (i32, i32) {
    %c0_i32 = arith.constant 0 : i32
    %c0_i32_0 = arith.constant 0 : i32
    %c0_i32_1 = arith.constant 0 : i32
    return %c0_i32, %c0_i32_0 : i32, i32
  }
  func.func @transform_9(%arg0: i32) -> (i32, i32) {
    %c0_i32 = arith.constant 0 : i32
    %c0_i32_0 = arith.constant 0 : i32
    %c0_i32_1 = arith.constant 0 : i32
    return %c0_i32, %c0_i32_0 : i32, i32
  }
  func.func @transform_10(%arg0: i32) -> (i32, i32) {
    %c0_i32 = arith.constant 0 : i32
    %c0_i32_0 = arith.constant 0 : i32
    %c0_i32_1 = arith.constant 0 : i32
    return %c0_i32, %c0_i32_0 : i32, i32
  }
  func.func @transform_11(%arg0: i32) -> (i32, i32) {
    %c0_i32 = arith.constant 0 : i32
    %c0_i32_0 = arith.constant 0 : i32
    %c0_i32_1 = arith.constant 0 : i32
    return %c0_i32, %c0_i32_0 : i32, i32
  }
  func.func @transform_12(%arg0: i32) -> (i32, i32) {
    %c0_i32 = arith.constant 0 : i32
    %c0_i32_0 = arith.constant 0 : i32
    %c0_i32_1 = arith.constant 0 : i32
    return %c0_i32, %c0_i32_0 : i32, i32
  }
  func.func @transform_13(%arg0: i32) -> (i32, i32) {
    %c0_i32 = arith.constant 0 : i32
    %c0_i32_0 = arith.constant 0 : i32
    %c0_i32_1 = arith.constant 0 : i32
    return %c0_i32, %c0_i32_0 : i32, i32
  }
  func.func @transform_14(%arg0: i32) -> (i32, i32) {
    %c0_i32 = arith.constant 0 : i32
    %c0_i32_0 = arith.constant 0 : i32
    %c0_i32_1 = arith.constant 0 : i32
    return %c0_i32, %c0_i32_0 : i32, i32
  }
}

</mosaic_0001>

<bundles_post_ra>
// kernel: forward.1
= control target key start
LH: loop header
LB: loop body
LE: loop exit
PB: predicated region body
PF: predicated region fallthrough
CT: control target
= control target key end

     0   :  { %19 = vsyncpa [#allocation4], 0  ;;  %s6574_s0 = inlined_call_operand.vmem [shape: f32[16,128], index: 0, kind: input, shape index: {}]   ;;  %s6575_s1 = inlined_call_operand.vmem [shape: f32[12,20], index: 1, kind: input, shape index: {}]   ;;  %s6576_s2 = inlined_call_operand.vmem [shape: f32[12], index: 2, kind: input, shape index: {}]   ;;  %s6577_s3 = inlined_call_operand.vmem [shape: f32[4,4], index: 3, kind: input, shape index: {}]   ;;  %s6578_s4 = inlined_call_operand.vmem [shape: f32[4], index: 4, kind: input, shape index: {}]   ;;  %s6579_s5 = inlined_call_operand.vmem [shape: f32[109,24], index: 5, kind: input, shape index: {}]   ;;  %s6580_s6 = inlined_call_operand.vmem [shape: f32[121,27], index: 6, kind: input, shape index: {}]   ;;  %s6581_s7 = inlined_call_operand.vmem [shape: f32[125,28], index: 7, kind: input, shape index: {}]   ;;  %s6582_s8 = inlined_call_operand.vmem [shape: f32[79,39], index: 8, kind: input, shape index: {}]   ;;  %s6583_s9 = inlined_call_operand.vmem [shape: f32[8,156], index: 9, kind: input, shape index: {}]   ;;  %s6584_s10 = inlined_call_operand.vmem [shape: f32[8,1], index: 10, kind: input, shape index: {}]   ;;  %s6585_s11 = inlined_call_operand.vmem [shape: f32[8,8], index: 11, kind: input, shape index: {}]   ;;  %s6586_s12 = inlined_call_operand.vmem [shape: f32[156,16], index: 12, kind: input, shape index: {}]   ;;  %s6587_s13 = inlined_call_operand.vmem [shape: f32[1,16], index: 13, kind: input, shape index: {}]   ;;  %s6588_s14 = inlined_call_operand.hbm [shape: f32[2,16], index: 14, kind: output, shape index: {}]  }
   0x1   :  { %20 = vsyncpa [#allocation6], 0 }
   0x2   :  { %21 = vsyncpa [#allocation9], 0  ;;  %s43_s15 = sshll.u32 %s6576_s2, 4  ;;  %s44_s15 = int_to_ptr.vmem [resolvable:$true] %s43_s15 }
   0x3   :  { %22 = vsyncpa [#allocation3], 0  ;;  %s30_s18 = sshll.u32 %s6575_s1, 4  ;;  %s4438_s19 = scalar_lea.vmem %s44_s15, 16  ;;  %s31_s18 = int_to_ptr.vmem [resolvable:$true] %s30_s18 }
   0x4   :  { %p4439_p0 = scmp.ne.s32.totalorder %s44_s15, %s4438_s19  ;;  %p4443_p1 = scmp.lt.s32.totalorder %s44_s15, %s44_s15 }
   0x5   :  { %p4444_p2 = scmp.lt.s32.totalorder %s4438_s19, %s4438_s19 }
   0x7   :  { %p4445_p3 = por %p4444_p2, %p4443_p1 }
   0x9   :  { %p4446_p4 = pnand %p4445_p3, %p4439_p0 }
   0xb   :  { %4449 = shalt.err (!%p4446_p4)
}
   0xc   :  { %s4516_s20 = smov [#allocation5]   ;;  %s4450_s21 = scalar_lea.vmem %s31_s18, 256 }
   0xd   :  { %46 = dma.vmem_to_smem %s44_s15, 16, %s4516_s20, [#allocation6]  }
   0xe   :  { %p4451_p5 = scmp.ne.s32.totalorder %s31_s18, %s4450_s21  ;;  %p4455_p6 = scmp.lt.s32.totalorder %s31_s18, %s31_s18 }
   0xf   :  { %p4456_p7 = scmp.lt.s32.totalorder %s4450_s21, %s4450_s21 }
  0x11   :  { %p4457_p8 = por %p4456_p7, %p4455_p6 }
  0x13   :  { %p4458_p9 = pnand %p4457_p8, %p4451_p5 }
  0x15   :  { %4461 = shalt.err (!%p4458_p9)
}
  0x16   :  { %s4517_s2 = smov [#allocation2]   ;;  %s4518_s22 = smov 128  }
  0x17   :  { %s4519_s1 = smov 8   ;;  %s53_s25 = sshll.u32 %s6577_s3, 4  ;;  %s54_s25 = int_to_ptr.vmem [resolvable:$true] %s53_s25 }
  0x18   :  { %36 = dma.vmem_to_smem %s31_s18, 256, %s4517_s2, [#allocation4], %s4518_s22, %s4518_s22, %s4519_s1  }
  0x19   :  { %s63_s28 = sshll.u32 %s6578_s4, 4  ;;  %s4462_s29 = scalar_lea.vmem %s54_s25, 64  ;;  %s64_s28 = int_to_ptr.vmem [resolvable:$true] %s63_s28 }
  0x1a   :  { %p4463_p10 = scmp.ne.s32.totalorder %s54_s25, %s4462_s29  ;;  %p4467_p11 = scmp.lt.s32.totalorder %s54_s25, %s54_s25 }
  0x1b   :  { %p4468_p12 = scmp.lt.s32.totalorder %s4462_s29, %s4462_s29 }
  0x1d   :  { %p4469_p13 = por %p4468_p12, %p4467_p11 }
  0x1f   :  { %p4470_p0 = pnand %p4469_p13, %p4463_p10 }
  0x21   :  { %4473 = shalt.err (!%p4470_p0)
}
  0x22   :  { %s4520_s30 = smov [#allocation7]   ;;  %s4474_s15 = scalar_lea.vmem %s64_s28, 16 }
  0x23   :  { %56 = dma.vmem_to_smem %s54_s25, 64, %s4520_s30, [#allocation6]  }
  0x24   :  { %p4475_p1 = scmp.ne.s32.totalorder %s64_s28, %s4474_s15  ;;  %p4479_p2 = scmp.lt.s32.totalorder %s64_s28, %s64_s28 }
  0x25   :  { %p4480_p3 = scmp.lt.s32.totalorder %s4474_s15, %s4474_s15 }
  0x27   :  { %p4481_p4 = por %p4480_p3, %p4479_p2 }
  0x29   :  { %p4482_p5 = pnand %p4481_p4, %p4475_p1 }
  0x2b   :  { %4485 = shalt.err (!%p4482_p5)
}
  0x2c   :  { %s4521_s3 = smov [#allocation8]  }
  0x2d   :  { %66 = dma.vmem_to_smem %s64_s28, 16, %s4521_s3, [#allocation9]  }
  0x2e   :  { %4508 = dma.done.wait [#allocation4], 256  }
  0x2f   :  { %4509 = vsyncadd [#allocation4], 4294967040 }
  0x30   :  { %4510 = dma.done.wait [#allocation6], 80  }
  0x31   :  { %4511 = vsyncadd [#allocation6], 4294967216 }
  0x32   :  { %4512 = dma.done.wait [#allocation9], 16  }
  0x33   :  { %4513 = vsyncadd [#allocation9], 4294967280 }
  0x34   :  { %97 = sfence }
  0x35   :  { %s3551_s4 = sld [smem:[#allocation2 + $0x2]]  ;;  %s3547_s16 = sld [smem:[#allocation2 + $0x1]]  ;;  %v4640_v0 = vld [vmem:[%s6574_s0] sm:$0xff]  ;;  %v4645_v1 = vld [vmem:[%s6574_s0 + $0x8] sm:$0xff]  ;;  %vm1243_vm0 = vcmask 1044480   ;;  %vm4540_vm1 = vmmov 1  }
  0x36   :  { %s3555_s17 = sld [smem:[#allocation2 + $0x3]]  ;;  %s3559_s2 = sld [smem:[#allocation2 + $0x4]]  ;;  %vm4941_vm2 = vmpackc.low %vm1243_vm0, %vm4540_vm1  ;;  %vm1218_vm3 = vcmask 891904   ;;  %vm1841_vm4 = vcmask 1040384   ;;  %vm1816_vm6 = vcmask 990208   ;;  %vm2190_vm7 = vcmask 1022976  }
  0x37   :  { %s6591_s22 = smov 126   ;;  %s6593_s1 = smov 127   ;;  %vm4152_vm5 = vmpackc.low %vm1841_vm4, %vm4540_vm1  ;;  %vm2470_vm8 = vcmask 1046528   ;;  %vm2403_vm10 = vcmask 195584   ;;  %vm2412_vm11 = vcmask 416768   ;;  %vm2463_vm12 = vcmask 646144  }
  0x38   :  { %s3563_s23 = sld [smem:[#allocation2 + $0x5]]  ;;  %s3567_s24 = sld [smem:[#allocation2 + $0x6]]  ;;  %vm6233_vm9 = vmpackc.low %vm2470_vm8, %vm4540_vm1  ;;  %vm2915_vm8 = vcmask 637952  }
  0x39   :  { %s6589_s25 = smov 125   ;;  %s3571_s26 = sld [smem:[#allocation2 + $0x7]] }
  0x3a   :  { %s6599_s27 = smov 124   ;;  %s3575_s28 = sld [smem:[#allocation2 + $0x8]] }
  0x3b   :  { %v173_v2 = vstv %s3551_s4  ;;  %v117_v4 = vstv %s3547_s16  ;;  %s4526_s29 = smov 123   ;;  %s3579_s30 = sld [smem:[#allocation2 + $0x9]] }
  0x3c   :  { %v174_v3 = vmul.f32 %v173_v2, %v4640_v0  ;;  %v118_v5 = vmul.f32 %v117_v4, %v4640_v0  ;;  %v175_v6 = vmul.f32 %v173_v2, %v4645_v1  ;;  %v119_v7 = vmul.f32 %v117_v4, %v4645_v1  ;;  %s4527_s15 = smov 122   ;;  %s3548_s3 = sld [smem:[#allocation2 + $0x81]] }
  0x3d   :  { %v229_v8 = vstv %s3555_s17  ;;  %v285_v11 = vstv %s3559_s2  ;;  %s3583_s4 = sld [smem:[#allocation2 + $0xa]]  ;;  %s4528_s16 = smov 121  }
  0x3e   :  { %178 = vrot.lane.b32.xlu1 %v174_v3, %s6591_s22  ;;  %122 = vrot.lane.b32.xlu0 %v118_v5, %s6593_s1  ;;  %v231_v9 = vmul.f32 %v229_v8, %v4645_v1  ;;  %v230_v10 = vmul.f32 %v229_v8, %v4640_v0  ;;  %v287_v12 = vmul.f32 %v285_v11, %v4645_v1  ;;  %v341_v14 = vstv %s3563_s23  ;;  %s4529_s17 = smov 120   ;;  %s3552_s18 = sld [smem:[#allocation2 + $0x82]] }
  0x3f   :  { %v286_v13 = vmul.f32 %v285_v11, %v4640_v0  ;;  %v343_v15 = vmul.f32 %v341_v14, %v4645_v1  ;;  %v342_v16 = vmul.f32 %v341_v14, %v4640_v0  ;;  %v397_v17 = vstv %s3567_s24  ;;  %s3587_s19 = sld [smem:[#allocation2 + $0xb]]  ;;  %s4530_s20 = smov 119  }
  0x40   :  { %v399_v18 = vmul.f32 %v397_v17, %v4645_v1  ;;  %v398_v19 = vmul.f32 %v397_v17, %v4640_v0  ;;  %v453_v20 = vstv %s3571_s26  ;;  %v509_v23 = vstv %s3575_s28  ;;  %s4531_s21 = smov 118   ;;  %s4689_s2 = sld [smem:[#allocation2 + $0x101]] }
  0x41   :  { %v455_v21 = vmul.f32 %v453_v20, %v4645_v1  ;;  %v454_v22 = vmul.f32 %v453_v20, %v4640_v0  ;;  %v511_v24 = vmul.f32 %v509_v23, %v4645_v1  ;;  %v510_v25 = vmul.f32 %v509_v23, %v4640_v0  ;;  %s3591_s23 = sld [smem:[#allocation2 + $0xc]]  ;;  %s3556_s24 = sld [smem:[#allocation2 + $0x83]] }
  0x42   :  { %180 = vrot.lane.b32.xlu1 %v175_v6, %s6591_s22  ;;  %124 = vrot.lane.b32.xlu0 %v119_v7, %s6593_s1  ;;  %v565_v26 = vstv %s3579_s30  ;;  %v131_v29 = vstv %s3548_s3  ;;  %s4532_s26 = smov 117   ;;  %s4704_s28 = sld [smem:[#allocation2 + $0x102]] }
  0x43   :  { %v567_v27 = vmul.f32 %v565_v26, %v4645_v1  ;;  %v566_v28 = vmul.f32 %v565_v26, %v4640_v0  ;;  %v621_v30 = vstv %s3583_s4  ;;  %v132_v31 = vmul.f32 %v131_v29, %v4640_v0  ;;  %s3595_s30 = sld [smem:[#allocation2 + $0xd]]  ;;  %s4533_s3 = smov 116  }
  0x44   :  { %v622_v32 = vmul.f32 %v621_v30, %v4640_v0  ;;  %v133_v33 = vmul.f32 %v131_v29, %v4645_v1  ;;  %v623_v34 = vmul.f32 %v621_v30, %v4645_v1  ;;  %v187_v35 = vstv %s3552_s18  ;;  %s3560_s4 = sld [smem:[#allocation2 + $0x84]]  ;;  %s4719_s18 = sld [smem:[#allocation2 + $0x181]] }
  0x45   :  { %v677_v36 = vstv %s3587_s19  ;;  %v188_v37 = vmul.f32 %v187_v35, %v4640_v0  ;;  %v189_v39 = vmul.f32 %v187_v35, %v4645_v1  ;;  %s4721_s19 = sld [smem:[#allocation2 + $0xe]] }
  0x46   :  { %236 = vrot.lane.b32.xlu1 %v231_v9, %s6589_s25  ;;  %234 = vrot.lane.b32.xlu0 %v230_v10, %s6589_s25  ;;  %v678_v38 = vmul.f32 %v677_v36, %v4640_v0  ;;  %v679_v40 = vmul.f32 %v677_v36, %v4645_v1  ;;  %v145_v41 = vstv %s4689_s2  ;;  %s4534_s2 = smov 115  }
  0x47   :  { %v733_v42 = vstv %s3591_s23  ;;  %v146_v43 = vmul.f32 %v145_v41, %v4640_v0  ;;  %v243_v45 = vstv %s3556_s24  ;;  %v147_v49 = vmul.f32 %v145_v41, %v4645_v1  ;;  %s3564_s23 = sld [smem:[#allocation2 + $0x85]]  ;;  %s3557_s24 = sld [smem:[#allocation2 + $0x103]] }
  0x48   :  { %v734_v44 = vmul.f32 %v733_v42, %v4640_v0  ;;  %v735_v46 = vmul.f32 %v733_v42, %v4645_v1  ;;  %v244_v47 = vmul.f32 %v243_v45, %v4640_v0  ;;  %v245_v48 = vmul.f32 %v243_v45, %v4645_v1 }
  0x49   :  { %v201_v50 = vstv %s4704_s28  ;;  %v789_v51 = vstv %s3595_s30  ;;  %s4535_s28 = smov 114   ;;  %s3554_s30 = sld [smem:[#allocation2 + $0x182]] }
  0x4a   :  { %292 = vrot.lane.b32.xlu1 %v287_v12, %s6599_s27  ;;  %290 = vrot.lane.b32.xlu0 %v286_v13, %s6599_s27  ;;  %v202_v52 = vmul.f32 %v201_v50, %v4640_v0  ;;  %v790_v53 = vmul.f32 %v789_v51, %v4640_v0  ;;  %v299_v54 = vstv %s3560_s4  ;;  %v791_v55 = vmul.f32 %v789_v51, %v4645_v1  ;;  %s3603_s4 = sld [smem:[#allocation2 + $0xf]] }
  0x4b   :  { %v300_v56 = vmul.f32 %v299_v54, %v4640_v0  ;;  %v301_v57 = vmul.f32 %v299_v54, %v4645_v1  ;;  %v203_v58 = vmul.f32 %v201_v50, %v4645_v1  ;;  %v159_v59 = vstv %s4719_s18  ;;  %s3568_s18 = sld [smem:[#allocation2 + $0x86]]  ;;  %v1205_v50 = vld [vmem:[%s6579_s5 + $0x8] sm:$0xff] }
  0x4c   :  { %v845_v60 = vstv %s4721_s19  ;;  %v160_v61 = vmul.f32 %v159_v59, %v4640_v0  ;;  %v161_v5 = vmul.f32 %v159_v59, %v4645_v1  ;;  %s3561_s19 = sld [smem:[#allocation2 + $0x104]] }
  0x4d   :  { %v846_v62 = vmul.f32 %v845_v60, %v4640_v0  ;;  %v355_v63 = vstv %s3564_s23  ;;  %v257_v2 = vstv %s3557_s24  ;;  %v847_v6 = vmul.f32 %v845_v60, %v4645_v1  ;;  %s6597_s23 = smov 113   ;;  %s3558_s24 = sld [smem:[#allocation2 + $0x183]] }
  0x4e   :  { %348 = vrot.lane.b32.xlu1 %v343_v15, %s4526_s29  ;;  %346 = vrot.lane.b32.xlu0 %v342_v16, %s4526_s29  ;;  %v356_v3 = vmul.f32 %v355_v63, %v4640_v0  ;;  %v258_v4 = vmul.f32 %v257_v2, %v4640_v0  ;;  %v357_v7 = vmul.f32 %v355_v63, %v4645_v1 }
  0x4f   :  { %v259_v8 = vmul.f32 %v257_v2, %v4645_v1  ;;  %v215_v9 = vstv %s3554_s30  ;;  %s3607_s30 = sld [smem:[#allocation2 + $0x10]] }
  0x50   :  { %v901_v10 = vstv %s3603_s4  ;;  %v216_v11 = vmul.f32 %v215_v9, %v4640_v0  ;;  %v217_v17 = vmul.f32 %v215_v9, %v4645_v1  ;;  %s4761_s4 = sld [smem:[#allocation2 + $0x87]] }
  0x51   :  { %v902_v12 = vmul.f32 %v901_v10, %v4640_v0  ;;  %v411_v13 = vstv %s3568_s18  ;;  %s4763_s18 = sld [smem:[#allocation2 + $0x105]] }
  0x52   :  { %404 = vrot.lane.b32.xlu1 %v399_v18, %s4527_s15  ;;  %402 = vrot.lane.b32.xlu0 %v398_v19, %s4527_s15  ;;  %v313_v14 = vstv %s3561_s19  ;;  %v412_v15 = vmul.f32 %v411_v13, %v4640_v0  ;;  %v903_v18 = vmul.f32 %v901_v10, %v4645_v1  ;;  %v413_v19 = vmul.f32 %v411_v13, %v4645_v1  ;;  %s6595_s19 = smov 112   ;;  %v1211_v13 = vld [vmem:[%s6579_s5 + $0x38] sm:$0xff] }
  0x53   :  { %v314_v16 = vmul.f32 %v313_v14, %v4640_v0  ;;  %v315_v20 = vmul.f32 %v313_v14, %v4645_v1 }
  0x56   :  { %460 = vrot.lane.b32.xlu1 %v455_v21, %s4528_s16  ;;  %458 = vrot.lane.b32.xlu0 %v454_v22, %s4528_s16  ;;  %v271_v21 = vstv %s3558_s24  ;;  %v957_v22 = vstv %s3607_s30  ;;  %s4779_s24 = sld [smem:[#allocation2 + $0x184]]  ;;  %s4781_s30 = sld [smem:[#allocation2 + $0x11]] }
  0x57   :  { %v272_v23 = vmul.f32 %v271_v21, %v4640_v0  ;;  %v369_v26 = vstv %s4763_s18  ;;  %v273_v29 = vmul.f32 %v271_v21, %v4645_v1  ;;  %v959_v30 = vmul.f32 %v957_v22, %v4645_v1  ;;  %s4791_s18 = sld [smem:[#allocation2 + $0x106]] }
  0x5a   :  { %516 = vrot.lane.b32.xlu1 %v511_v24, %s4529_s17  ;;  %514 = vrot.lane.b32.xlu0 %v510_v25, %s4529_s17  ;;  %v958_v24 = vmul.f32 %v957_v22, %v4640_v0  ;;  %v467_v25 = vstv %s4761_s4  ;;  %s4787_s4 = sld [smem:[#allocation2 + $0x88]] }
  0x5c   :  { %v327_v35 = vstv %s4779_s24  ;;  %s4538_s24 = smov 111  }
  0x5d   :  { %v329_v51 = vmul.f32 %v327_v35, %v4645_v1 }
  0x5e   :  { %572 = vrot.lane.b32.xlu1 %v567_v27, %s4530_s20  ;;  %570 = vrot.lane.b32.xlu0 %v566_v28, %s4530_s20  ;;  %v468_v27 = vmul.f32 %v467_v25, %v4640_v0  ;;  %v370_v28 = vmul.f32 %v369_v26, %v4640_v0 }
  0x60   :  { %v523_v41 = vstv %s4787_s4  ;;  %s4841_s4 = sld [smem:[#allocation2 + $0x107]] }
  0x61   :  { %v524_v45 = vmul.f32 %v523_v41, %v4640_v0 }
  0x62   :  { %136 = vrot.lane.b32.xlu1 %v132_v31, %s6593_s1  ;;  %626 = vrot.lane.b32.xlu0 %v622_v32, %s4531_s21 }
  0x66   :  { %138 = vrot.lane.b32.xlu1 %v133_v33, %s6593_s1  ;;  %628 = vrot.lane.b32.xlu0 %v623_v34, %s4531_s21  ;;  %v469_v33 = vmul.f32 %v467_v25, %v4645_v1  ;;  %v371_v34 = vmul.f32 %v369_v26, %v4645_v1  ;;  %v481_v10 = vstv %s4841_s4  ;;  %s4887_s4 = sld [smem:[#allocation2 + $0x186]]  ;;  %v1214_v26 = vld [vmem:[%s6579_s5 + $0x50] sm:$0xff] }
  0x6a   :  { %192 = vrot.lane.b32.xlu1 %v188_v37, %s6591_s22  ;;  %682 = vrot.lane.b32.xlu0 %v678_v38, %s4532_s26  ;;  %v1013_v37 = vstv %s4781_s30  ;;  %s4819_s30 = sld [smem:[#allocation2 + $0x185]] }
  0x6e   :  { %194 = vrot.lane.b32.xlu1 %v189_v39, %s6591_s22  ;;  %684 = vrot.lane.b32.xlu0 %v679_v40, %s4532_s26  ;;  %v328_v39 = vmul.f32 %v327_v35, %v4640_v0  ;;  %v1014_v40 = vmul.f32 %v1013_v37, %v4640_v0 }
  0x72   :  { %150 = vrot.lane.b32.xlu1 %v146_v43, %s6593_s1  ;;  %738 = vrot.lane.b32.xlu0 %v734_v44, %s4533_s3  ;;  %v425_v43 = vstv %s4791_s18  ;;  %s4909_s18 = sld [smem:[#allocation2 + $0x108]] }
  0x73   :  { %v427_v60 = vmul.f32 %v425_v43, %v4645_v1 }
  0x76   :  { %740 = vrot.lane.b32.xlu1 %v735_v46, %s4533_s3  ;;  %248 = vrot.lane.b32.xlu0 %v244_v47, %s6589_s25  ;;  %v426_v46 = vmul.f32 %v425_v43, %v4640_v0 }
  0x7a   :  { %250 = vrot.lane.b32.xlu1 %v245_v48, %s6589_s25  ;;  %152 = vrot.lane.b32.xlu0 %v147_v49, %s6593_s1  ;;  %v1204_v49 = vld [vmem:[%s6579_s5] sm:$0xff] }
  0x7e   :  { %206 = vrot.lane.b32.xlu1 %v202_v52, %s6591_s22  ;;  %794 = vrot.lane.b32.xlu0 %v790_v53, %s4534_s2  ;;  %v4093_v52 = vpack.c.bf16 %v1205_v50, %v1204_v49  ;;  %v1015_v53 = vmul.f32 %v1013_v37, %v4645_v1 }
  0x80   :  { %4094 = vmatprep.subr.bf16.mxu0 %v4093_v52 }
  0x81   :  { %4096 = vmatpush3.bf16.msra.mxu0 %v4093_v52 }
  0x82   :  { %796 = vrot.lane.b32.xlu1 %v791_v55, %s4534_s2  ;;  %304 = vrot.lane.b32.xlu0 %v300_v56, %s6599_s27  ;;  %v1206_v56 = vld [vmem:[%s6579_s5 + $0x10] sm:$0xff] }
  0x86   :  { %306 = vrot.lane.b32.xlu1 %v301_v57, %s6599_s27  ;;  %208 = vrot.lane.b32.xlu0 %v203_v58, %s6591_s22  ;;  %v1207_v57 = vld [vmem:[%s6579_s5 + $0x18] sm:$0xff]  ;;  %v525_v58 = vmul.f32 %v523_v41, %v4645_v1 }
  0x87   :  { %v4097_v59 = vpack.c.bf16 %v1207_v57, %v1206_v56 }
  0x89   :  { %4098 = vmatprep.subr.bf16.mxu0 %v4097_v59 }
  0x8a   :  { %164 = vrot.lane.b32.xlu1 %v160_v61, %s6593_s1  ;;  %850 = vrot.lane.b32.xlu0 %v846_v62, %s4535_s28  ;;  %v383_v61 = vstv %s4819_s30  ;;  %s5012_s30 = sld [smem:[#allocation2 + $0x10b]] }
  0x8b   :  { %4100 = vmatpush3.bf16.msra.mxu0 %v4097_v59  ;;  %v385_v21 = vmul.f32 %v383_v61, %v4645_v1 }
  0x8e   :  { %360 = vrot.lane.b32.xlu1 %v356_v3, %s4526_s29  ;;  %262 = vrot.lane.b32.xlu0 %v258_v4, %s6589_s25  ;;  %v1208_v3 = vld [vmem:[%s6579_s5 + $0x20] sm:$0xff]  ;;  %v1209_v4 = vld [vmem:[%s6579_s5 + $0x28] sm:$0xff] }
  0x92   :  { %166 = vrot.lane.b32.xlu1 %v161_v5, %s6593_s1  ;;  %852 = vrot.lane.b32.xlu0 %v847_v6, %s4535_s28  ;;  %v384_v5 = vmul.f32 %v383_v61, %v4640_v0  ;;  %v4101_v6 = vpack.c.bf16 %v1209_v4, %v1208_v3  ;;  %s4891_s1 = sld [smem:[#allocation2 + $0x13]] }
  0x94   :  { %4102 = vmatprep.subr.bf16.mxu0 %v4101_v6 }
  0x95   :  { %4104 = vmatpush3.bf16.msra.mxu0 %v4101_v6 }
  0x96   :  { %362 = vrot.lane.b32.xlu1 %v357_v7, %s4526_s29  ;;  %264 = vrot.lane.b32.xlu0 %v259_v8, %s6589_s25 }
  0x98   :  { %v1125_v35 = vstv %s4891_s1  ;;  %s3574_s1 = sld [smem:[#allocation2 + $0x187]] }
  0x9a   :  { %220 = vrot.lane.b32.xlu1 %v216_v11, %s6591_s22  ;;  %906 = vrot.lane.b32.xlu0 %v902_v12, %s6597_s23  ;;  %v1210_v12 = vld [vmem:[%s6579_s5 + $0x30] sm:$0xff] }
  0x9e   :  { %416 = vrot.lane.b32.xlu1 %v412_v15, %s4527_s15  ;;  %318 = vrot.lane.b32.xlu0 %v314_v16, %s6599_s27  ;;  %v4105_v15 = vpack.c.bf16 %v1211_v13, %v1210_v12  ;;  %v482_v16 = vmul.f32 %v481_v10, %v4640_v0 }
  0xa0   :  { %4106 = vmatprep.subr.bf16.mxu0 %v4105_v15 }
  0xa1   :  { %4108 = vmatpush3.bf16.msra.mxu0 %v4105_v15 }
  0xa2   :  { %222 = vrot.lane.b32.xlu1 %v217_v17, %s6591_s22  ;;  %908 = vrot.lane.b32.xlu0 %v903_v18, %s6597_s23  ;;  %s4905_s22 = sld [smem:[#allocation2 + $0x8a]]  ;;  %s3582_s23 = sld [smem:[#allocation2 + $0x189]] }
  0xa6   :  { %418 = vrot.lane.b32.xlu1 %v413_v19, %s4527_s15  ;;  %320 = vrot.lane.b32.xlu0 %v315_v20, %s6599_s27  ;;  %v1212_v19 = vld [vmem:[%s6579_s5 + $0x40] sm:$0xff]  ;;  %v1213_v20 = vld [vmem:[%s6579_s5 + $0x48] sm:$0xff] }
  0xa7   :  { %v4109_v22 = vpack.c.bf16 %v1213_v20, %v1212_v19 }
  0xa9   :  { %4110 = vmatprep.subr.bf16.mxu0 %v4109_v22 }
  0xaa   :  { %276 = vrot.lane.b32.xlu1 %v272_v23, %s6589_s25  ;;  %962 = vrot.lane.b32.xlu0 %v958_v24, %s6595_s19 }
  0xab   :  { %4112 = vmatpush3.bf16.msra.mxu0 %v4109_v22 }
  0xae   :  { %472 = vrot.lane.b32.xlu1 %v468_v27, %s4528_s16  ;;  %374 = vrot.lane.b32.xlu0 %v370_v28, %s4526_s29  ;;  %v1215_v27 = vld [vmem:[%s6579_s5 + $0x58] sm:$0xff] }
  0xb0   :  { %v4789_v31 = vpop.permute.xlu1 %178  ;;  %v4793_v32 = vpop.permute.xlu0 %122 }
  0xb2   :  { %278 = vrot.lane.b32.xlu1 %v273_v29, %s6589_s25  ;;  %964 = vrot.lane.b32.xlu0 %v959_v30, %s6595_s19  ;;  %s4823_s25 = sld [smem:[#allocation2 + $0x12]]  ;;  %s4837_s19 = sld [smem:[#allocation2 + $0x89]]  ;;  %v4113_v29 = vpack.c.bf16 %v1215_v27, %v1214_v26  ;;  %v483_v30 = vmul.f32 %v481_v10, %v4645_v1 }
  0xb4   :  { %v4800_v36 = vpop.permute.xlu1 %180  ;;  %v4803_v38 = vpop.permute.xlu0 %124  ;;  %4114 = vmatprep.subr.bf16.mxu0 %v4113_v29 }
  0xb5   :  { %4116 = vmatpush3.bf16.msra.mxu0 %v4113_v29 }
  0xb6   :  { %474 = vrot.lane.b32.xlu1 %v469_v33, %s4528_s16  ;;  %376 = vrot.lane.b32.xlu0 %v371_v34, %s4526_s29  ;;  %v439_v33 = vstv %s4887_s4  ;;  %s4958_s4 = sld [smem:[#allocation2 + $0x109]] }
  0xb7   :  { %v440_v41 = vmul.f32 %v439_v33, %v4640_v0  ;;  %v441_v59 = vmul.f32 %v439_v33, %v4645_v1 }
  0xb8   :  { %v4810_v42 = vpop.permute.xlu1 %236  ;;  %v4813_v44 = vpop.permute.xlu0 %234  ;;  %v1069_v63 = vstv %s4823_s25  ;;  %v579_v8 = vstv %s4837_s19  ;;  %s4539_s19 = smov 110   ;;  %s3592_s25 = sld [smem:[#allocation2 + $0x8c]] }
  0xb9   :  { %v1070_v7 = vmul.f32 %v1069_v63, %v4640_v0  ;;  %v580_v14 = vmul.f32 %v579_v8, %v4640_v0  ;;  %v1071_v23 = vmul.f32 %v1069_v63, %v4645_v1  ;;  %v581_v28 = vmul.f32 %v579_v8, %v4645_v1 }
  0xba   :  { %332 = vrot.lane.b32.xlu1 %v328_v39, %s6599_s27  ;;  %1018 = vrot.lane.b32.xlu0 %v1014_v40, %s4538_s24  ;;  %v1216_v39 = vld [vmem:[%s6579_s5 + $0x60] sm:$0xff]  ;;  %v1217_v40 = vld [vmem:[%s6579_s5 + $0x68] sm:$0x1f]  ;;  %s4541_s5 = smov 109  }
  0xbb   :  { %v4117_v43 = vpack.c.bf16 %v1217_v40, %v1216_v39 }
  0xbc   :  { %v4821_v47 = vpop.permute.xlu1 %292  ;;  %v4825_v48 = vpop.permute.xlu0 %290 }
  0xbd   :  { %4119 = vmatprep.subr.msk.bf16.mxu0 %vm4941_vm2, %v4117_v43 }
  0xbe   :  { %528 = vrot.lane.b32.xlu1 %v524_v45, %s4529_s17  ;;  %430 = vrot.lane.b32.xlu0 %v426_v46, %s4527_s15  ;;  %v1126_v45 = vmul.f32 %v1125_v35, %v4640_v0  ;;  %v635_v46 = vstv %s4905_s22  ;;  %s3588_s22 = sld [smem:[#allocation2 + $0x8b]]  ;;  %v747_v39 = vstv %s3592_s25  ;;  %s5097_s25 = sld [smem:[#allocation2 + $0x18c]] }
  0xbf   :  { %4122 = vmatpush3.bf16.msk.msra.mxu0 %vm4941_vm2, %v4117_v43  ;;  %v637_v3 = vmul.f32 %v635_v46, %v4645_v1  ;;  %v748_v43 = vmul.f32 %v747_v39, %v4640_v0 }
  0xc0   :  { %v4839_v54 = vpop.permute.xlu1 %348  ;;  %v4843_v55 = vpop.permute.xlu0 %346 }
  0xc2   :  { %334 = vrot.lane.b32.xlu1 %v329_v51, %s6599_s27  ;;  %1020 = vrot.lane.b32.xlu0 %v1015_v53, %s4538_s24  ;;  %v537_v51 = vstv %s4909_s18  ;;  %v636_v53 = vmul.f32 %v635_v46, %v4640_v0  ;;  %s4985_s18 = sld [smem:[#allocation2 + $0x10a]]  ;;  %s3578_s27 = sld [smem:[#allocation2 + $0x188]] }
  0xc3   :  { %v538_v56 = vmul.f32 %v537_v51, %v4640_v0  ;;  %v539_v4 = vmul.f32 %v537_v51, %v4645_v1  ;;  %v749_v51 = vmul.f32 %v747_v39, %v4645_v1 }
  0xc4   :  { %v4856_v62 = vpop.permute.xlu1 %404  ;;  %v4859_v2 = vpop.permute.xlu0 %402 }
  0xc6   :  { %530 = vrot.lane.b32.xlu1 %v525_v58, %s4529_s17  ;;  %432 = vrot.lane.b32.xlu0 %v427_v60, %s4527_s15  ;;  %v1127_v60 = vmul.f32 %v1125_v35, %v4645_v1 }
  0xc8   :  { %v4872_v9 = vpop.permute.xlu1 %460  ;;  %v4875_v11 = vpop.permute.xlu0 %458  ;;  %v649_v26 = vstv %s4985_s18  ;;  %s3590_s18 = sld [smem:[#allocation2 + $0x18b]] }
  0xca   :  { %388 = vrot.lane.b32.xlu1 %v384_v5, %s4526_s29  ;;  %1074 = vrot.lane.b32.xlu0 %v1070_v7, %s4539_s19  ;;  %v593_v5 = vstv %s4958_s4  ;;  %v495_v7 = vstv %s3574_s1  ;;  %s3596_s4 = sld [smem:[#allocation2 + $0x8d]]  ;;  %s3586_s1 = sld [smem:[#allocation2 + $0x18a]] }
  0xcb   :  { %v594_v10 = vmul.f32 %v593_v5, %v4640_v0  ;;  %v496_v12 = vmul.f32 %v495_v7, %v4640_v0 }
  0xcc   :  { %v4889_v17 = vpop.permute.xlu1 %516  ;;  %v4893_v18 = vpop.permute.xlu0 %514 }
  0xce   :  { %584 = vrot.lane.b32.xlu1 %v580_v14, %s4530_s20  ;;  %486 = vrot.lane.b32.xlu0 %v482_v16, %s4528_s16  ;;  %v691_v14 = vstv %s3588_s22  ;;  %v497_v16 = vmul.f32 %v495_v7, %v4645_v1  ;;  %s3600_s22 = sld [smem:[#allocation2 + $0x8e]] }
  0xcf   :  { %v692_v19 = vmul.f32 %v691_v14, %v4640_v0  ;;  %v693_v22 = vmul.f32 %v691_v14, %v4645_v1 }
  0xd0   :  { %v4907_v24 = vpop.permute.xlu1 %572  ;;  %v4911_v25 = vpop.permute.xlu0 %570 }
  0xd2   :  { %390 = vrot.lane.b32.xlu1 %v385_v21, %s4526_s29  ;;  %1076 = vrot.lane.b32.xlu0 %v1071_v23, %s4539_s19  ;;  %v595_v23 = vmul.f32 %v593_v5, %v4645_v1 }
  0xd4   :  { %v4924_v34 = vpop.permute.xlu1 %136  ;;  %v4927_v37 = vpop.permute.xlu0 %626 }
  0xd6   :  { %586 = vrot.lane.b32.xlu1 %v581_v28, %s4530_s20  ;;  %488 = vrot.lane.b32.xlu0 %v483_v30, %s4528_s16  ;;  %v551_v28 = vstv %s3578_s27  ;;  %v650_v30 = vmul.f32 %v649_v26, %v4640_v0  ;;  %s3604_s27 = sld [smem:[#allocation2 + $0x8f]] }
  0xd7   :  { %v552_v33 = vmul.f32 %v551_v28, %v4640_v0 }
  0xd8   :  { %v4945_v50 = vpop.permute.xlu1 %138  ;;  %v4950_v52 = vpop.permute.xlu0 %628 }
  0xda   :  { %444 = vrot.lane.b32.xlu1 %v440_v41, %s4527_s15  ;;  %1130 = vrot.lane.b32.xlu0 %v1126_v45, %s4541_s5  ;;  %v553_v41 = vmul.f32 %v551_v28, %v4645_v1 }
  0xdc   :  { %v4960_v57 = vpop.permute.xlu1 %192  ;;  %v4962_v58 = vpop.permute.xlu0 %682 }
  0xde   :  { %640 = vrot.lane.b32.xlu1 %v636_v53, %s4531_s21  ;;  %542 = vrot.lane.b32.xlu0 %v538_v56, %s4529_s17  ;;  %v651_v53 = vmul.f32 %v649_v26, %v4645_v1  ;;  %v705_v56 = vstv %s5012_s30  ;;  %s5099_s30 = sld [smem:[#allocation2]] }
  0xdf   :  { %v707_v26 = vmul.f32 %v705_v56, %v4645_v1 }
  0xe0   :  { %v4968_v61 = vpop.permute.xlu1 %194  ;;  %v4970_v63 = vpop.permute.xlu0 %684 }
  0xe2   :  { %446 = vrot.lane.b32.xlu1 %v441_v59, %s4527_s15  ;;  %1132 = vrot.lane.b32.xlu0 %v1127_v60, %s4541_s5  ;;  %v607_v60 = vstv %s3582_s23  ;;  %s5109_s23 = sld [smem:[#allocation2 + $0x90]] }
  0xe3   :  { %v608_v5 = vmul.f32 %v607_v60, %v4640_v0  ;;  %v609_v14 = vmul.f32 %v607_v60, %v4645_v1 }
  0xe4   :  { %v4977_v6 = vpop.permute.xlu1 %150  ;;  %v4979_v8 = vpop.permute.xlu0 %738 }
  0xe6   :  { %642 = vrot.lane.b32.xlu1 %v637_v3, %s4531_s21  ;;  %544 = vrot.lane.b32.xlu0 %v539_v4, %s4529_s17  ;;  %v706_v4 = vmul.f32 %v705_v56, %v4640_v0 }
  0xe8   :  { %v4987_v13 = vpop.permute.xlu1 %740  ;;  %v4989_v15 = vpop.permute.xlu0 %248 }
  0xea   :  { %598 = vrot.lane.b32.xlu1 %v594_v10, %s4530_s20  ;;  %500 = vrot.lane.b32.xlu0 %v496_v12, %s4528_s16  ;;  %v803_v10 = vstv %s3596_s4  ;;  %s6616_s4 = smov 113  }
  0xec   :  { %v4995_v20 = vpop.permute.xlu1 %250  ;;  %v4997_v21 = vpop.permute.xlu0 %152 }
  0xed   :  { %6604 = vst [vmem:[#allocation15_spill] sm:$0xff] %v4997_v21 }
  0xee   :  { %502 = vrot.lane.b32.xlu1 %v497_v16, %s4528_s16  ;;  %696 = vrot.lane.b32.xlu0 %v692_v19, %s4532_s26  ;;  %v804_v16 = vmul.f32 %v803_v10, %v4640_v0 }
  0xf0   :  { %v5004_v27 = vpop.permute.xlu1 %206  ;;  %v5006_v29 = vpop.permute.xlu0 %794 }
  0xf1   :  { %6605 = vst [vmem:[#allocation16_spill] sm:$0xff] %v5004_v27 }
  0xf2   :  { %698 = vrot.lane.b32.xlu1 %v693_v22, %s4532_s26  ;;  %600 = vrot.lane.b32.xlu0 %v595_v23, %s4530_s20  ;;  %v805_v23 = vmul.f32 %v803_v10, %v4645_v1 }
  0xf4   :  { %v5014_v35 = vpop.permute.xlu1 %796  ;;  %v5016_v40 = vpop.permute.xlu0 %304 }
  0xf6   :  { %654 = vrot.lane.b32.xlu1 %v650_v30, %s4531_s21  ;;  %556 = vrot.lane.b32.xlu0 %v552_v33, %s4529_s17  ;;  %v663_v33 = vstv %s3586_s1  ;;  %s5134_s1 = sld [smem:[#allocation2 + $0x18d]] }
  0xf7   :  { %v665_v60 = vmul.f32 %v663_v33, %v4645_v1 }
  0xf8   :  { %v5022_v45 = vpop.permute.xlu1 %306  ;;  %v5024_v46 = vpop.permute.xlu0 %208 }
  0xf9   :  { %6606 = vst [vmem:[#allocation17_spill] sm:$0xff] %v5024_v46 }
  0xfa   :  { %558 = vrot.lane.b32.xlu1 %v553_v41, %s4529_s17  ;;  %752 = vrot.lane.b32.xlu0 %v748_v43, %s4533_s3  ;;  %s5039_s17 = sld [smem:[#allocation2 + $0x10c]]  ;;  %v664_v43 = vmul.f32 %v663_v33, %v4640_v0  ;;  %v719_v33 = vstv %s3590_s18  ;;  %s5173_s18 = sld [smem:[#allocation2 + $0x18e]] }
  0xfc   :  { %v5031_v59 = vpop.permute.xlu1 %164  ;;  %v5033_v3 = vpop.permute.xlu0 %850 }
  0xfd   :  { %6607 = vst [vmem:[#allocation18_spill] sm:$0xff] %v5031_v59 }
  0xfe   :  { %754 = vrot.lane.b32.xlu1 %v749_v51, %s4533_s3  ;;  %656 = vrot.lane.b32.xlu0 %v651_v53, %s4531_s21  ;;  %v859_v53 = vstv %s3600_s22  ;;  %s5145_s22 = sld [smem:[#allocation2 + $0x91]] }
 0x100   :  { %v5041_v7 = vpop.permute.xlu1 %360  ;;  %v5043_v12 = vpop.permute.xlu0 %262  ;;  %v761_v28 = vstv %s5039_s17  ;;  %s5128_s17 = sld [smem:[#allocation2 + $0x10f]] }
 0x101   :  { %6608 = vst [vmem:[#allocation19_spill] sm:$0xff] %v5043_v12  ;;  %v762_v41 = vmul.f32 %v761_v28, %v4640_v0  ;;  %v831_v12 = vstv %s5134_s1  ;;  %s5235_s1 = sld [smem:[#allocation2 + $0x93]] }
 0x102   :  { %710 = vrot.lane.b32.xlu1 %v706_v4, %s4532_s26  ;;  %612 = vrot.lane.b32.xlu0 %v608_v5, %s4530_s20  ;;  %v860_v4 = vmul.f32 %v859_v53, %v4640_v0 }
 0x104   :  { %v5049_v19 = vpop.permute.xlu1 %166  ;;  %v5051_v22 = vpop.permute.xlu0 %852 }
 0x105   :  { %6609 = vst [vmem:[#allocation20_spill] sm:$0xff] %v5049_v19 }
 0x106   :  { %614 = vrot.lane.b32.xlu1 %v609_v14, %s4530_s20  ;;  %808 = vrot.lane.b32.xlu0 %v804_v16, %s4534_s2  ;;  %s5066_s20 = sld [smem:[#allocation2 + $0x10d]]  ;;  %v861_v14 = vmul.f32 %v859_v53, %v4645_v1  ;;  %v763_v16 = vmul.f32 %v761_v28, %v4645_v1  ;;  %v915_v28 = vstv %s3604_s27  ;;  %s5284_s27 = sld [smem:[#allocation2 + $0x202]] }
 0x108   :  { %v5058_v30 = vpop.permute.xlu1 %362  ;;  %v5060_v39 = vpop.permute.xlu0 %264 }
 0x109   :  { %6610 = vst [vmem:[#allocation21_spill] sm:$0xff] %v5060_v39 }
 0x10a   :  { %810 = vrot.lane.b32.xlu1 %v805_v23, %s4534_s2  ;;  %712 = vrot.lane.b32.xlu0 %v707_v26, %s4532_s26 }
 0x10c   :  { %v5068_v51 = vpop.permute.xlu1 %220  ;;  %v5070_v56 = vpop.permute.xlu0 %906  ;;  %v817_v23 = vstv %s5066_s20  ;;  %s6620_s20 = smov 112  }
 0x10d   :  { %6611 = vst [vmem:[#allocation22_spill] sm:$0xff] %v5068_v51  ;;  %v917_v51 = vmul.f32 %v915_v28, %v4645_v1 }
 0x10e   :  { %766 = vrot.lane.b32.xlu1 %v762_v41, %s4533_s3  ;;  %668 = vrot.lane.b32.xlu0 %v664_v43, %s4531_s21  ;;  %v818_v43 = vmul.f32 %v817_v23, %v4640_v0 }
 0x110   :  { %v5076_v5 = vpop.permute.xlu1 %416  ;;  %v5078_v10 = vpop.permute.xlu0 %318 }
 0x111   :  { %6612 = vst [vmem:[#allocation23_spill] sm:$0xff] %v5078_v10 }
 0x112   :  { %670 = vrot.lane.b32.xlu1 %v665_v60, %s4531_s21  ;;  %864 = vrot.lane.b32.xlu0 %v860_v4, %s4535_s28  ;;  %v720_v60 = vmul.f32 %v719_v33, %v4640_v0  ;;  %s5093_s21 = sld [smem:[#allocation2 + $0x10e]] }
 0x114   :  { %v5085_v26 = vpop.permute.xlu1 %222  ;;  %v5087_v41 = vpop.permute.xlu0 %908 }
 0x115   :  { %6613 = vst [vmem:[#allocation24_spill] sm:$0xff] %v5085_v26 }
 0x116   :  { %866 = vrot.lane.b32.xlu1 %v861_v14, %s4535_s28  ;;  %768 = vrot.lane.b32.xlu0 %v763_v16, %s4533_s3  ;;  %v721_v14 = vmul.f32 %v719_v33, %v4645_v1  ;;  %v916_v16 = vmul.f32 %v915_v28, %v4640_v0 }
 0x118   :  { %v5095_v53 = vpop.permute.xlu1 %418  ;;  %v5101_v4 = vpop.permute.xlu0 %320  ;;  %v873_v33 = vstv %s5093_s21  ;;  %s5295_s21 = sld [smem:[#allocation2 + $0x112]] }
 0x119   :  { %6614 = vst [vmem:[#allocation25_spill] sm:$0xff] %v5101_v4  ;;  %v101_v4 = vstv %s5099_s30  ;;  %s6628_s30 = smov 126  }
 0x11a   :  { %822 = vrot.lane.b32.xlu1 %v818_v43, %s4534_s2  ;;  %724 = vrot.lane.b32.xlu0 %v720_v60, %s4532_s26  ;;  %v819_v43 = vmul.f32 %v817_v23, %v4645_v1  ;;  %v775_v60 = vstv %s5097_s25  ;;  %v102_v28 = vmul.f32 %v101_v4, %v4640_v0  ;;  %v103_v10 = vmul.f32 %v101_v4, %v4645_v1  ;;  %s5191_s25 = sld [smem:[#allocation2 + $0x92]] }
 0x11c   :  { %v5107_v26 = vpop.permute.xlu1 %276  ;;  %v5111_v19 = vpop.permute.xlu0 %962 }
 0x11d   :  { %6615 = vst [vmem:[#allocation26_spill] sm:$0xff] %v5107_v26  ;;  %v874_v26 = vmul.f32 %v873_v33, %v4640_v0 }
 0x11e   :  { %726 = vrot.lane.b32.xlu1 %v721_v14, %s4532_s26  ;;  %920 = vrot.lane.b32.xlu0 %v916_v16, %s6616_s4  ;;  %v776_v14 = vmul.f32 %v775_v60, %v4640_v0  ;;  %v971_v16 = vstv %s5109_s23  ;;  %s5326_s23 = sld [smem:[#allocation2 + $0x113]] }
 0x120   :  { %v5118_v59 = vpop.permute.xlu1 %472  ;;  %v5122_v39 = vpop.permute.xlu0 %374 }
 0x121   :  { %6617 = vst [vmem:[#allocation27_spill] sm:$0xff] %v5122_v39  ;;  %v128_v39 = vadd.f32 %v4793_v32, %v102_v28 }
 0x122   :  { %922 = vrot.lane.b32.xlu1 %v917_v51, %s6616_s4  ;;  %824 = vrot.lane.b32.xlu0 %v819_v43, %s4534_s2  ;;  %v777_v51 = vmul.f32 %v775_v60, %v4645_v1  ;;  %v972_v43 = vmul.f32 %v971_v16, %v4640_v0  ;;  %v875_v60 = vmul.f32 %v873_v33, %v4645_v1 }
 0x123   :  { %v184_v32 = vadd.f32 %v4789_v31, %v128_v39  ;;  %v832_v33 = vmul.f32 %v831_v12, %v4640_v0 }
 0x124   :  { %v5131_v23 = vpop.permute.xlu1 %278  ;;  %v5136_v46 = vpop.permute.xlu0 %964 }
 0x125   :  { %6618 = vst [vmem:[#allocation28_spill] sm:$0xff] %v5131_v23  ;;  %v240_v4 = vadd.f32 %v4813_v44, %v184_v32 }
 0x126   :  { %878 = vrot.lane.b32.xlu1 %v874_v26, %s4535_s28  ;;  %780 = vrot.lane.b32.xlu0 %v776_v14, %s4533_s3  ;;  %v973_v26 = vmul.f32 %v971_v16, %v4645_v1  ;;  %v929_v14 = vstv %s5128_s17  ;;  %s5227_s17 = sld [smem:[#allocation2 + $0x201]] }
 0x127   :  { %v930_v16 = vmul.f32 %v929_v14, %v4640_v0  ;;  %v296_v31 = vadd.f32 %v4825_v48, %v240_v4  ;;  %v833_v0 = vmul.f32 %v831_v12, %v4645_v1  ;;  %v5185_v48 = vld [vmem:[%s6574_s0] sm:$0xff] }
 0x128   :  { %v5143_v21 = vpop.permute.xlu1 %474  ;;  %v5147_v23 = vpop.permute.xlu0 %376 }
 0x129   :  { %6619 = vst [vmem:[#allocation29_spill] sm:$0xff] %v5147_v23  ;;  %v129_v23 = vadd.f32 %v4803_v38, %v103_v10  ;;  %v352_v10 = vadd.f32 %v4843_v55, %v296_v31 }
 0x12a   :  { %782 = vrot.lane.b32.xlu1 %v777_v51, %s4533_s3  ;;  %976 = vrot.lane.b32.xlu0 %v972_v43, %s6620_s20  ;;  %s5167_s3 = sld [smem:[#allocation2 + $0x110]]  ;;  %v1027_v51 = vstv %s5145_s22  ;;  %s5241_s22 = sld [smem:[#allocation2 + $0x111]] }
 0x12b   :  { %v185_v44 = vadd.f32 %v4800_v36, %v129_v23  ;;  %v1028_v43 = vmul.f32 %v5185_v48, %v1027_v51  ;;  %v5201_v23 = vld [vmem:[%s6574_s0 + $0x8] sm:$0xff] }
 0x12c   :  { %v5156_v28 = vpop.permute.xlu1 %332  ;;  %v5159_v27 = vpop.permute.xlu0 %1018 }
 0x12d   :  { %6621 = vst [vmem:[#allocation30_spill] sm:$0xff] %v5156_v28  ;;  %v241_v1 = vadd.f32 %v4810_v42, %v185_v44 }
 0x12e   :  { %978 = vrot.lane.b32.xlu1 %v973_v26, %s6620_s20  ;;  %880 = vrot.lane.b32.xlu0 %v875_v60, %s4535_s28  ;;  %v408_v26 = vadd.f32 %v4859_v2, %v352_v10  ;;  %v1029_v60 = vmul.f32 %v5201_v23, %v1027_v51  ;;  %v931_v2 = vmul.f32 %v5201_v23, %v929_v14 }
 0x12f   :  { %v297_v4 = vadd.f32 %v4821_v47, %v241_v1 }
 0x130   :  { %v5170_v39 = vpop.permute.xlu1 %528  ;;  %v5175_v38 = vpop.permute.xlu0 %430  ;;  %v464_v12 = vadd.f32 %v4875_v11, %v408_v26  ;;  %v985_v32 = vstv %s5167_s3  ;;  %s5257_s3 = sld [smem:[#allocation5]] }
 0x131   :  { %v353_v31 = vadd.f32 %v4839_v54, %v297_v4  ;;  %v986_v51 = vmul.f32 %v5185_v48, %v985_v32 }
 0x132   :  { %934 = vrot.lane.b32.xlu1 %v930_v16, %s6616_s4  ;;  %836 = vrot.lane.b32.xlu0 %v832_v33, %s4534_s2  ;;  %v520_v42 = vadd.f32 %v4893_v18, %v464_v12  ;;  %v887_v16 = vstv %s5173_s18  ;;  %s5279_s18 = sld [smem:[#allocation2 + $0x190]] }
 0x133   :  { %v888_v14 = vmul.f32 %v5185_v48, %v887_v16  ;;  %v409_v47 = vadd.f32 %v4856_v62, %v353_v31  ;;  %v889_v26 = vmul.f32 %v5201_v23, %v887_v16 }
 0x134   :  { %v5189_v36 = vpop.permute.xlu1 %334  ;;  %v5193_v55 = vpop.permute.xlu0 %1020  ;;  %v576_v44 = vadd.f32 %v4911_v25, %v520_v42 }
 0x135   :  { %6622 = vst [vmem:[#allocation31_spill] sm:$0xff] %v5189_v36  ;;  %v465_v25 = vadd.f32 %v4872_v9, %v409_v47 }
 0x136   :  { %838 = vrot.lane.b32.xlu1 %v833_v0, %s4534_s2  ;;  %1032 = vrot.lane.b32.xlu0 %v1028_v43, %s4538_s24  ;;  %s5220_s2 = sld [smem:[#allocation2 + $0x18f]]  ;;  %v632_v18 = vadd.f32 %v4927_v37, %v576_v44  ;;  %v1083_v0 = vstv %s5191_s25  ;;  %s5318_s25 = sld [smem:[#allocation2 + $0x281]] }
 0x137   :  { %v1084_v62 = vmul.f32 %v5185_v48, %v1083_v0  ;;  %v521_v37 = vadd.f32 %v4889_v17, %v465_v25  ;;  %v987_v17 = vmul.f32 %v5201_v23, %v985_v32 }
 0x138   :  { %v5209_v11 = vpop.permute.xlu1 %530  ;;  %v5212_v33 = vpop.permute.xlu0 %432  ;;  %v688_v43 = vadd.f32 %v4962_v58, %v632_v18  ;;  %v1041_v18 = vstv %s5241_s22  ;;  %s3618_s22 = sld [smem:[#allocation2 + $0x192]] }
 0x139   :  { %v577_v58 = vadd.f32 %v4907_v24, %v521_v37  ;;  %v1385_v24 = vstv %s5227_s17  ;;  %s6631_s17 = smov 125  }
 0x13a   :  { %1034 = vrot.lane.b32.xlu1 %v1029_v60, %s4538_s24  ;;  %936 = vrot.lane.b32.xlu0 %v931_v2, %s6616_s4  ;;  %v744_v1 = vadd.f32 %v4979_v8, %v688_v43  ;;  %v1085_v2 = vmul.f32 %v5201_v23, %v1083_v0 }
 0x13b   :  { %v633_v4 = vadd.f32 %v4950_v52, %v577_v58  ;;  %v1386_v52 = vmul.f32 %v5185_v48, %v1385_v24  ;;  %v1387_v58 = vmul.f32 %v5201_v23, %v1385_v24 }
 0x13c   :  { %v5224_v10 = vpop.permute.xlu1 %388  ;;  %v1075_v54 = vpop.permute.xlu0 %1074  ;;  %v800_v60 = vadd.f32 %v5006_v29, %v744_v1  ;;  %v943_v8 = vstv %s5220_s2  ;;  %s5331_s2 = sld [smem:[#allocation2 + $0x191]] }
 0x13d   :  { %6623 = vst [vmem:[#allocation32_spill] sm:$0xff] %v5224_v10  ;;  %v689_v29 = vadd.f32 %v4970_v63, %v633_v4  ;;  %v944_v32 = vmul.f32 %v5185_v48, %v943_v8  ;;  %v945_v1 = vmul.f32 %v5201_v23, %v943_v8  ;;  %v999_v4 = vstv %s5279_s18  ;;  %s5390_s18 = sld [smem:[#allocation2 + $0x301]] }
 0x13e   :  { %990 = vrot.lane.b32.xlu1 %v986_v51, %s6620_s20  ;;  %892 = vrot.lane.b32.xlu0 %v888_v14, %s4535_s28  ;;  %v856_v42 = vadd.f32 %v5033_v3, %v800_v60  ;;  %v1139_v51 = vstv %s5235_s1  ;;  %s5359_s1 = sld [smem:[#allocation2 + $0x204]] }
 0x13f   :  { %v745_v3 = vadd.f32 %v4987_v13, %v689_v29  ;;  %v1140_v25 = vmul.f32 %v5185_v48, %v1139_v51  ;;  %v1042_v13 = vmul.f32 %v5185_v48, %v1041_v18  ;;  %v1141_v8 = vmul.f32 %v5201_v23, %v1139_v51 }
 0x140   :  { %v5239_v12 = vpop.permute.xlu1 %584  ;;  %v5243_v9 = vpop.permute.xlu0 %486  ;;  %v912_v44 = vadd.f32 %v5070_v56, %v856_v42  ;;  %v1441_v29 = vstv %s5284_s27  ;;  %s6636_s27 = smov 124  }
 0x141   :  { %v801_v56 = vadd.f32 %v5014_v35, %v745_v3 }
 0x142   :  { %894 = vrot.lane.b32.xlu1 %v889_v26, %s4535_s28  ;;  %1088 = vrot.lane.b32.xlu0 %v1084_v62, %s4539_s19  ;;  %v968_v14 = vadd.f32 %v5111_v19, %v912_v44  ;;  %s6625_s28 = smov 127   ;;  %v1181_v62 = vstv %s5257_s3  ;;  %s5386_s3 = sld [smem:[#allocation2 + $0x283]] }
 0x143   :  { %v857_v19 = vadd.f32 %v5051_v22, %v801_v56  ;;  %v1443_v56 = vmul.f32 %v5201_v23, %v1441_v29 }
 0x144   :  { %v5254_v16 = vpop.permute.xlu1 %390  ;;  %v1077_v31 = vpop.permute.xlu0 %1076  ;;  %v1024_v0 = vadd.f32 %v5159_v27, %v968_v14 }
 0x145   :  { %6624 = vst [vmem:[#allocation33_spill] sm:$0xff] %v5254_v16  ;;  %v913_v27 = vadd.f32 %v5087_v41, %v857_v19 }
 0x146   :  { %1090 = vrot.lane.b32.xlu1 %v1085_v2, %s4539_s19  ;;  %992 = vrot.lane.b32.xlu0 %v987_v17, %s6620_s20  ;;  %v1080_v43 = vadd.f32 %v1075_v54, %v1024_v0 }
 0x147   :  { %v969_v22 = vadd.f32 %v5136_v46, %v913_v27  ;;  %v1043_v46 = vmul.f32 %v5201_v23, %v1041_v18  ;;  %v1399_v27 = vstv %s5318_s25  ;;  %s5443_s25 = sld [smem:[#allocation2 + $0x206]] }
 0x148   :  { %v5268_v47 = vpop.permute.xlu1 %586  ;;  %v5271_v63 = vpop.permute.xlu0 %488 }
 0x149   :  { %v1025_v41 = vadd.f32 %v5193_v55, %v969_v22  ;;  %v1000_v55 = vmul.f32 %v5185_v48, %v999_v4  ;;  %v1153_v22 = vstv %s5326_s23  ;;  %s5447_s23 = sld [smem:[#allocation2 + $0x284]] }
 0x14a   :  { %948 = vrot.lane.b32.xlu1 %v944_v32, %s6616_s4  ;;  %1390 = vrot.lane.b32.xlu0 %v1386_v52, %s6625_s28  ;;  %v1442_v52 = vmul.f32 %v5185_v48, %v1441_v29 }
 0x14b   :  { %v1081_v42 = vadd.f32 %v1077_v31, %v1025_v41  ;;  %v1097_v31 = vstv %s5295_s21  ;;  %v1055_v41 = vstv %s5331_s2  ;;  %s5402_s21 = sld [smem:[#allocation2 + $0x205]]  ;;  %s6127_s2 = sld [smem:[#allocation2 + $0x380]] }
 0x14c   :  { %v5282_v26 = vpop.permute.xlu1 %444  ;;  %v1131_v35 = vpop.permute.xlu0 %1130  ;;  %v1098_v0 = vmul.f32 %v5185_v48, %v1097_v31  ;;  %v1099_v19 = vmul.f32 %v5201_v23, %v1097_v31  ;;  %v1553_v31 = vstv %s5359_s1  ;;  %s5755_s1 = sld [smem:[#allocation2 + $0x287]] }
 0x14d   :  { %6626 = vst [vmem:[#allocation34_spill] sm:$0xff] %v5282_v26  ;;  %v1136_v37 = vadd.f32 %v1131_v35, %v1080_v43  ;;  %v1001_v43 = vmul.f32 %v5201_v23, %v999_v4 }
 0x14e   :  { %1144 = vrot.lane.b32.xlu1 %v1140_v25, %s4541_s5  ;;  %1046 = vrot.lane.b32.xlu0 %v1042_v13, %s4538_s24 }
 0x14f   :  { %v1182_v60 = vadd.f32 %v1181_v62, %v1136_v37 }
 0x150   :  { %v5293_v54 = vpop.permute.xlu1 %640  ;;  %v5297_v2 = vpop.permute.xlu0 %542 }
 0x151   :  { %v1184_v17 = vmul.f32 %v1182_v60, %v1182_v60 }
 0x152   :  { %950 = vrot.lane.b32.xlu1 %v945_v1, %s6616_s4  ;;  %1392 = vrot.lane.b32.xlu0 %v1387_v58, %s6625_s28  ;;  %s5313_s4 = sld [smem:[#allocation2 + $0x203]]  ;;  %v1400_v58 = vmul.f32 %v5185_v48, %v1399_v27 }
 0x153   :  { %3901 = vmatprep.mubr.msk.f32.mxu0 %vm1218_vm3, %v1184_v17 }
 0x154   :  { %v5306_v24 = vpop.permute.xlu1 %446  ;;  %v1133_v44 = vpop.permute.xlu0 %1132 }
 0x155   :  { %6627 = vst [vmem:[#allocation35_spill] sm:$0xff] %v5306_v24  ;;  %v1137_v32 = vadd.f32 %v1133_v44, %v1081_v42  ;;  %v1401_v44 = vmul.f32 %v5201_v23, %v1399_v27  ;;  %v1111_v27 = vstv %s3618_s22  ;;  %s5808_s22 = sld [smem:[#allocation2 + $0x501]] }
 0x156   :  { %1146 = vrot.lane.b32.xlu1 %v1141_v8, %s4541_s5  ;;  %1048 = vrot.lane.b32.xlu0 %v1043_v46, %s4538_s24  ;;  %v1154_v8 = vmul.f32 %v5185_v48, %v1153_v22  ;;  %v1056_v46 = vmul.f32 %v5185_v48, %v1055_v41 }
 0x157   :  { %v1183_v51 = vadd.f32 %v1181_v62, %v1137_v32 }
 0x158   :  { %v5315_v3 = vpop.permute.xlu1 %642  ;;  %v5320_v14 = vpop.permute.xlu0 %544  ;;  %v1497_v35 = vstv %s5313_s4  ;;  %s5421_s4 = sld [smem:[#allocation2 + $0x401]] }
 0x159   :  { %v1185_v18 = vmul.f32 %v1183_v51, %v1183_v51  ;;  %v1498_v1 = vmul.f32 %v5185_v48, %v1497_v35  ;;  %v1499_v29 = vmul.f32 %v5201_v23, %v1497_v35  ;;  %v1057_v51 = vmul.f32 %v5201_v23, %v1055_v41 }
 0x15a   :  { %1004 = vrot.lane.b32.xlu1 %v1000_v55, %s6620_s20  ;;  %1446 = vrot.lane.b32.xlu0 %v1442_v52, %s6628_s30  ;;  %v1155_v52 = vmul.f32 %v5201_v23, %v1153_v22  ;;  %v1112_v22 = vmul.f32 %v5185_v48, %v1111_v27 }
 0x15b   :  { %3902 = vmatmul.mubr.msk.f32.vlgmr.msra.gmra.mrb[0].mxu0 %vm1218_vm3, %v1185_v18 }
 0x15c   :  { %v5329_v25 = vpop.permute.xlu1 %598  ;;  %v5333_v13 = vpop.permute.xlu0 %500 }
 0x15d   :  { %6629 = vst [vmem:[#allocation36_spill] sm:$0xff] %v5333_v13 }
 0x15e   :  { %1448 = vrot.lane.b32.xlu1 %v1443_v56, %s6628_s30  ;;  %1102 = vrot.lane.b32.xlu0 %v1098_v0, %s4539_s19  ;;  %v1983_v24 = vstv %s5421_s4  ;;  %s5472_s4 = sld [smem:[#allocation2 + $0x80]] }
 0x15f   :  { %v1985_v10 = vmul.f32 %v5201_v23, %v1983_v24 }
 0x160   :  { %v5340_v62 = vpop.permute.xlu1 %502  ;;  %v5343_v37 = vpop.permute.xlu0 %696 }
 0x161   :  { %6630 = vst [vmem:[#allocation37_spill] sm:$0xff] %v5340_v62 }
 0x162   :  { %1104 = vrot.lane.b32.xlu1 %v1099_v19, %s4539_s19  ;;  %1006 = vrot.lane.b32.xlu0 %v1001_v43, %s6620_s20  ;;  %s3644_s20 = sld [smem:[#allocation2 + $0x282]]  ;;  %v1554_v19 = vmul.f32 %v5185_v48, %v1553_v31 }
 0x164   :  { %v5350_v60 = vpop.permute.xlu1 %698  ;;  %v5353_v17 = vpop.permute.xlu0 %600 }
 0x166   :  { %1502 = vrot.lane.b32.xlu1 %v1498_v1, %s6631_s17  ;;  %1404 = vrot.lane.b32.xlu0 %v1400_v58, %s6625_s28 }
 0x168   :  { %v5361_v4 = vpop.permute.xlu1 %654  ;;  %v5363_v42 = vpop.permute.xlu0 %556  ;;  %v1455_v56 = vstv %s3644_s20  ;;  %s5674_s20 = sld [smem:[#allocation2 + $0x286]] }
 0x169   :  { %6632 = vst [vmem:[#allocation38_spill] sm:$0xff] %v5363_v42  ;;  %v1456_v43 = vmul.f32 %v5185_v48, %v1455_v56  ;;  %v1457_v58 = vmul.f32 %v5201_v23, %v1455_v56  ;;  %v1567_v42 = vstv %s5447_s23  ;;  %s5498_s23 = sld [smem:[#allocation2 + $0x402]] }
 0x16a   :  { %1158 = vrot.lane.b32.xlu1 %v1154_v8, %s4541_s5  ;;  %1060 = vrot.lane.b32.xlu0 %v1056_v46, %s4538_s24  ;;  %v1113_v46 = vmul.f32 %v5201_v23, %v1111_v27 }
 0x16c   :  { %v5369_v32 = vpop.permute.xlu1 %558  ;;  %v5371_v55 = vpop.permute.xlu0 %752 }
 0x16d   :  { %6633 = vst [vmem:[#allocation39_spill] sm:$0xff] %v5369_v32 }
 0x16e   :  { %1504 = vrot.lane.b32.xlu1 %v1499_v29, %s6631_s17  ;;  %1406 = vrot.lane.b32.xlu0 %v1401_v44, %s6625_s28  ;;  %v1555_v29 = vmul.f32 %v5201_v23, %v1553_v31  ;;  %v1511_v44 = vstv %s5386_s3  ;;  %v1609_v31 = vstv %s5402_s21  ;;  %s5517_s21 = sld [smem:[#allocation2 + $0x303]]  ;;  %s6102_s3 = sld [smem:[#allocation2 + $0x480]] }
 0x16f   :  { %v1513_v62 = vmul.f32 %v5201_v23, %v1511_v44 }
 0x170   :  { %v5378_v18 = vpop.permute.xlu1 %754  ;;  %v5380_v0 = vpop.permute.xlu0 %656 }
 0x171   :  { %6634 = vst [vmem:[#allocation40_spill] sm:$0xff] %v5380_v0 }
 0x172   :  { %1160 = vrot.lane.b32.xlu1 %v1155_v52, %s4541_s5  ;;  %1062 = vrot.lane.b32.xlu0 %v1057_v51, %s4538_s24  ;;  %s5398_s24 = sld [smem:[#allocation2 + $0x193]]  ;;  %v1413_v51 = vstv %s5390_s18  ;;  %s6117_s18 = sld [smem:[#allocation5 + $0x9]] }
 0x174   :  { %v5388_v35 = vpop.permute.xlu1 %710  ;;  %v5392_v1 = vpop.permute.xlu0 %612 }
 0x175   :  { %6635 = vst [vmem:[#allocation41_spill] sm:$0xff] %v5392_v1 }
 0x176   :  { %1558 = vrot.lane.b32.xlu1 %v1554_v19, %s6636_s27  ;;  %1460 = vrot.lane.b32.xlu0 %v1456_v43, %s6628_s30  ;;  %v1512_v19 = vmul.f32 %v5185_v48, %v1511_v44  ;;  %v1414_v43 = vmul.f32 %v5185_v48, %v1413_v51  ;;  %v1801_v44 = vld [vmem:[%s6580_s6 + $0x8] sm:$0xff] }
 0x178   :  { %v5400_v41 = vpop.permute.xlu1 %614  ;;  %v5404_v8 = vpop.permute.xlu0 %808 }
 0x179   :  { %6637 = vst [vmem:[#allocation42_spill] sm:$0xff] %v5400_v41 }
 0x17a   :  { %1462 = vrot.lane.b32.xlu1 %v1457_v58, %s6628_s30  ;;  %1116 = vrot.lane.b32.xlu0 %v1112_v22, %s4539_s19  ;;  %v1167_v58 = vstv %s5398_s24  ;;  %s5542_s24 = sld [smem:[#allocation2 + $0x207]] }
 0x17b   :  { %v1168_v41 = vmul.f32 %v5185_v48, %v1167_v58 }
 0x17c   :  { %v5411_v52 = vpop.permute.xlu1 %810  ;;  %v5414_v56 = vpop.permute.xlu0 %712 }
 0x17d   :  { %6638 = vst [vmem:[#allocation43_spill] sm:$0xff] %v5414_v56 }
 0x17e   :  { %1118 = vrot.lane.b32.xlu1 %v1113_v46, %s4539_s19  ;;  %1560 = vrot.lane.b32.xlu0 %v1555_v29, %s6636_s27  ;;  %v1610_v46 = vmul.f32 %v5185_v48, %v1609_v31  ;;  %s5432_s19 = sld [smem:[#allocation2 + $0x302]] }
 0x180   :  { %v5423_v27 = vpop.permute.xlu1 %766  ;;  %v5426_v22 = vpop.permute.xlu0 %668 }
 0x181   :  { %6639 = vst [vmem:[#allocation44_spill] sm:$0xff] %v5426_v22 }
 0x182   :  { %1516 = vrot.lane.b32.xlu1 %v1512_v19, %s6631_s17  ;;  %1418 = vrot.lane.b32.xlu0 %v1414_v43, %s6625_s28  ;;  %v1415_v19 = vmul.f32 %v5201_v23, %v1413_v51  ;;  %v1984_v51 = vmul.f32 %v5185_v48, %v1983_v24  ;;  %v1809_v24 = vld [vmem:[%s6580_s6 + $0x48] sm:$0xff] }
 0x184   :  { %v5434_v29 = vpop.permute.xlu1 %670  ;;  %v5436_v32 = vpop.permute.xlu0 %864  ;;  %v1469_v36 = vstv %s5432_s19  ;;  %s5650_s19 = sld [smem:[#allocation2 + $0x382]] }
 0x185   :  { %6640 = vst [vmem:[#allocation45_spill] sm:$0xff] %v5434_v29  ;;  %v1611_v29 = vmul.f32 %v5201_v23, %v1609_v31  ;;  %v1470_v31 = vmul.f32 %v5185_v48, %v1469_v36 }
 0x186   :  { %1172 = vrot.lane.b32.xlu1 %v1168_v41, %s4541_s5  ;;  %1614 = vrot.lane.b32.xlu0 %v1610_v46, %s4526_s29  ;;  %v1800_v41 = vld [vmem:[%s6580_s6] sm:$0xff] }
 0x187   :  { %v4123_v46 = vpack.c.bf16 %v1801_v44, %v1800_v41  ;;  %v1803_v41 = vld [vmem:[%s6580_s6 + $0x18] sm:$0xff]  ;;  %v1169_v44 = vmul.f32 %v5201_v23, %v1167_v58 }
 0x188   :  { %v5445_v43 = vpop.permute.xlu1 %866  ;;  %v5449_v16 = vpop.permute.xlu0 %768 }
 0x189   :  { %6641 = vst [vmem:[#allocation46_spill] sm:$0xff] %v5449_v16  ;;  %4124 = vmatprep.subr.bf16.mxu1 %v4123_v46 }
 0x18a   :  { %1518 = vrot.lane.b32.xlu1 %v1513_v62, %s6631_s17  ;;  %1420 = vrot.lane.b32.xlu0 %v1415_v19, %s6625_s28  ;;  %v1802_v62 = vld [vmem:[%s6580_s6 + $0x10] sm:$0xff] }
 0x18b   :  { %4126 = vmatpush3.bf16.msra.mxu1 %v4123_v46  ;;  %v4127_v19 = vpack.c.bf16 %v1803_v41, %v1802_v62  ;;  %v1665_v46 = vstv %s5443_s25  ;;  %v1805_v62 = vld [vmem:[%s6580_s6 + $0x28] sm:$0xff]  ;;  %v1568_v41 = vmul.f32 %v5185_v48, %v1567_v42  ;;  %s5494_s25 = sld [smem:[#allocation2 + $0x381]] }
 0x18c   :  { %v5462_v22 = vpop.permute.xlu1 %822  ;;  %v5464_v1 = vpop.permute.xlu0 %724  ;;  %v1666_v58 = vmul.f32 %v5185_v48, %v1665_v46 }
 0x18d   :  { %6642 = vst [vmem:[#allocation47_spill] sm:$0xff] %v5464_v1  ;;  %4128 = vmatprep.subr.bf16.mxu1 %v4127_v19 }
 0x18e   :  { %1988 = vrot.lane.b32.xlu1 %v1984_v51, %s6625_s28  ;;  %1616 = vrot.lane.b32.xlu0 %v1611_v29, %s4526_s29  ;;  %v1804_v51 = vld [vmem:[%s6580_s6 + $0x20] sm:$0xff] }
 0x18f   :  { %4130 = vmatpush3.bf16.msra.mxu1 %v4127_v19  ;;  %v4131_v29 = vpack.c.bf16 %v1805_v62, %v1804_v51  ;;  %v105_v51 = vstv %s5472_s4  ;;  %v1471_v62 = vmul.f32 %v5201_v23, %v1469_v36  ;;  %v1808_v36 = vld [vmem:[%s6580_s6 + $0x40] sm:$0xff]  ;;  %s5646_s4 = sld [smem:[#allocation2 + $0x304]] }
 0x190   :  { %v5479_v1 = vpop.permute.xlu1 %726  ;;  %v5482_v13 = vpop.permute.xlu0 %920  ;;  %v106_v28 = vmul.f32 %v5185_v48, %v105_v51 }
 0x191   :  { %6643 = vst [vmem:[#allocation48_spill] sm:$0xff] %v5479_v1  ;;  %4132 = vmatprep.subr.bf16.mxu1 %v4131_v29 }
 0x192   :  { %1474 = vrot.lane.b32.xlu1 %v1470_v31, %s6628_s30  ;;  %1174 = vrot.lane.b32.xlu0 %v1169_v44, %s4541_s5  ;;  %v1806_v31 = vld [vmem:[%s6580_s6 + $0x30] sm:$0xff]  ;;  %v1807_v44 = vld [vmem:[%s6580_s6 + $0x38] sm:$0xff]  ;;  %s5513_s5 = sld [smem:[#allocation2 + $0x285]] }
 0x193   :  { %4134 = vmatpush3.bf16.msra.mxu1 %v4131_v29  ;;  %v4135_v26 = vpack.c.bf16 %v1807_v44, %v1806_v31  ;;  %v4139_v31 = vpack.c.bf16 %v1809_v24, %v1808_v36  ;;  %v1569_v44 = vmul.f32 %v5201_v23, %v1567_v42  ;;  %v1811_v42 = vld [vmem:[%s6580_s6 + $0x58] sm:$0xff]  ;;  %v2176_v36 = vld [vmem:[%s6581_s7 + $0x10] sm:$0xff] }
 0x194   :  { %v5496_v19 = vpop.permute.xlu1 %922  ;;  %v5500_v1 = vpop.permute.xlu0 %824  ;;  %v2177_v24 = vld [vmem:[%s6581_s7 + $0x18] sm:$0xff] }
 0x195   :  { %6644 = vst [vmem:[#allocation49_spill] sm:$0xff] %v5500_v1  ;;  %4136 = vmatprep.subr.bf16.mxu1 %v4135_v26 }
 0x196   :  { %1670 = vrot.lane.b32.xlu1 %v1666_v58, %s4527_s15  ;;  %1572 = vrot.lane.b32.xlu0 %v1568_v41, %s6636_s27  ;;  %v2174_v58 = vld [vmem:[%s6581_s7] sm:$0xff]  ;;  %v1667_v41 = vmul.f32 %v5201_v23, %v1665_v46  ;;  %v142_v46 = vadd.f32 %v4924_v34, %v106_v28 }
 0x197   :  { %4138 = vmatpush3.bf16.msra.mxu1 %v4135_v26  ;;  %v2175_v26 = vld [vmem:[%s6581_s7 + $0x8] sm:$0xff] }
 0x198   :  { %v5515_v29 = vpop.permute.xlu1 %878  ;;  %v5520_v1 = vpop.permute.xlu0 %780  ;;  %v4157_v16 = vpack.c.bf16 %v2175_v26, %v2174_v58  ;;  %4140 = vmatprep.subr.bf16.mxu1 %v4139_v31  ;;  %v198_v58 = vadd.f32 %v4960_v57, %v142_v46  ;;  %v1623_v26 = vstv %s5513_s5  ;;  %v1812_v57 = vld [vmem:[%s6580_s6 + $0x60] sm:$0xff]  ;;  %s5822_s5 = sld [smem:[#allocation2 + $0x306]] }
 0x199   :  { %6645 = vst [vmem:[#allocation50_spill] sm:$0xff] %v5515_v29  ;;  %6646 = vst [vmem:[#allocation51_spill] sm:$0xff] %v5520_v1  ;;  %v6601_v1 = vstv %s5494_s25  ;;  %v2039_v29 = vstv %s5498_s23  ;;  %v2178_v46 = vld [vmem:[%s6581_s7 + $0x20] sm:$0xff]  ;;  %s5626_s23 = sld [smem:[#allocation2 + $0x100]] }
 0x19a   :  { %1476 = vrot.lane.b32.xlu1 %v1471_v62, %s6628_s30  ;;  %1990 = vrot.lane.b32.xlu0 %v1985_v10, %s6625_s28  ;;  %v1810_v10 = vld [vmem:[%s6580_s6 + $0x50] sm:$0xff]  ;;  %v1428_v34 = vmul.f32 %v5185_v48, %v6601_v1 }
 0x19b   :  { %4158 = vmatprep.subr.bf16.mxu0 %v4157_v16  ;;  %4142 = vmatpush3.bf16.msra.mxu1 %v4139_v31  ;;  %v4143_v28 = vpack.c.bf16 %v1811_v42, %v1810_v10  ;;  %v2040_v31 = vmul.f32 %v5185_v48, %v2039_v29  ;;  %v254_v10 = vadd.f32 %v4989_v15, %v198_v58 }
 0x19c   :  { %v5539_v56 = vpop.permute.xlu1 %782  ;;  %v5545_v62 = vpop.permute.xlu0 %976  ;;  %4160 = vmatpush3.bf16.msra.mxu0 %v4157_v16  ;;  %v107_v16 = vmul.f32 %v5201_v23, %v105_v51  ;;  %v1624_v15 = vmul.f32 %v5185_v48, %v1623_v26 }
 0x19d   :  { %6647 = vst [vmem:[#allocation52_spill] sm:$0xff] %v5539_v56  ;;  %v4161_v56 = vpack.c.bf16 %v2177_v24, %v2176_v36  ;;  %4144 = vmatprep.subr.bf16.mxu1 %v4143_v28  ;;  %v2179_v36 = vld [vmem:[%s6581_s7 + $0x28] sm:$0xff] }
 0x19e   :  { %1672 = vrot.lane.b32.xlu1 %v1667_v41, %s4527_s15  ;;  %1574 = vrot.lane.b32.xlu0 %v1569_v44, %s6636_s27  ;;  %v1525_v41 = vstv %s5517_s21  ;;  %v1813_v44 = vld [vmem:[%s6580_s6 + $0x68] sm:$0xff]  ;;  %v4165_v58 = vpack.c.bf16 %v2179_v36, %v2178_v46  ;;  %s5624_s21 = sld [smem:[#allocation2 + $0x481]] }
 0x19f   :  { %4162 = vmatprep.subr.bf16.mxu0 %v4161_v56  ;;  %4146 = vmatpush3.bf16.msra.mxu1 %v4143_v28  ;;  %v4147_v51 = vpack.c.bf16 %v1813_v44, %v1812_v57  ;;  %v310_v28 = vadd.f32 %v5016_v40, %v254_v10  ;;  %v1526_v24 = vmul.f32 %v5185_v48, %v1525_v41  ;;  %v1814_v40 = vld [vmem:[%s6580_s6 + $0x70] sm:$0xff] }
 0x1a0   :  { %v5567_v0 = vpop.permute.xlu1 %978  ;;  %v5572_v42 = vpop.permute.xlu0 %880  ;;  %4164 = vmatpush3.bf16.msra.mxu0 %v4161_v56  ;;  %v2180_v10 = vld [vmem:[%s6581_s7 + $0x30] sm:$0xff] }
 0x1a1   :  { %6648 = vst [vmem:[#allocation53_spill] sm:$0xff] %v5572_v42  ;;  %v1721_v42 = vstv %s5542_s24  ;;  %4148 = vmatprep.subr.bf16.mxu1 %v4147_v51  ;;  %v366_v56 = vadd.f32 %v5041_v7, %v310_v28  ;;  %4166 = vmatprep.subr.bf16.mxu0 %v4165_v58  ;;  %v2182_v28 = vld [vmem:[%s6581_s7 + $0x40] sm:$0xff]  ;;  %s5741_s24 = sld [smem:[#allocation2 + $0x482]] }
 0x1a2   :  { %1432 = vrot.lane.b32.xlu1 %v1428_v34, %s6625_s28  ;;  %2044 = vrot.lane.b32.xlu0 %v2040_v31, %s6628_s30  ;;  %v143_v34 = vadd.f32 %v4945_v50, %v107_v16  ;;  %v1815_v31 = vld [vmem:[%s6580_s6 + $0x78] sm:$0x1]  ;;  %v2041_v50 = vmul.f32 %v5201_v23, %v2039_v29  ;;  %s5618_s6 = sld [smem:[#allocation2 + $0x403]] }
 0x1a3   :  { %4150 = vmatpush3.bf16.msra.mxu1 %v4147_v51  ;;  %v4151_v7 = vpack.c.bf16 %v1815_v31, %v1814_v40  ;;  %v2181_v16 = vld [vmem:[%s6581_s7 + $0x38] sm:$0xff]  ;;  %v422_v46 = vadd.f32 %v5076_v5, %v366_v56  ;;  %v1722_v51 = vmul.f32 %v5185_v48, %v1721_v42  ;;  %v6649_v56 = vstv %s5494_s25  ;;  %s5852_s25 = sld [smem:[#allocation5 + $0x2]] }
 0x1a4   :  { %v5593_v1 = vpop.permute.xlu1 %934  ;;  %v5598_v57 = vpop.permute.xlu0 %836  ;;  %4168 = vmatpush3.bf16.msra.mxu0 %v4165_v58  ;;  %v199_v44 = vadd.f32 %v4968_v61, %v143_v34  ;;  %v4169_v29 = vpack.c.bf16 %v2181_v16, %v2180_v10  ;;  %v1527_v58 = vmul.f32 %v5201_v23, %v1525_v41  ;;  %v1429_v40 = vmul.f32 %v5201_v23, %v6649_v56  ;;  %v2184_v10 = vld [vmem:[%s6581_s7 + $0x50] sm:$0xff] }
 0x1a5   :  { %4153 = vmatprep.subr.msk.bf16.mxu1 %vm4152_vm5, %v4151_v7  ;;  %v478_v5 = vadd.f32 %v5118_v59, %v422_v46  ;;  %v1483_v56 = vstv %s5650_s19  ;;  %s5735_s19 = sld [smem:[#allocation2 + $0x383]] }
 0x1a6   :  { %1628 = vrot.lane.b32.xlu1 %v1624_v15, %s4526_s29  ;;  %1530 = vrot.lane.b32.xlu0 %v1526_v24, %s6631_s17  ;;  %v255_v61 = vadd.f32 %v4995_v20, %v199_v44  ;;  %v2183_v24 = vld [vmem:[%s6581_s7 + $0x48] sm:$0xff]  ;;  %v1625_v44 = vmul.f32 %v5201_v23, %v1623_v26  ;;  %v2186_v26 = vld [vmem:[%s6581_s7 + $0x60] sm:$0xff] }
 0x1a7   :  { %4170 = vmatprep.subr.bf16.mxu0 %v4169_v29  ;;  %4156 = vmatpush3.bf16.msk.msra.mxu1 %vm4152_vm5, %v4151_v7  ;;  %v4173_v20 = vpack.c.bf16 %v2183_v24, %v2182_v28  ;;  %v534_v34 = vadd.f32 %v5170_v39, %v478_v5  ;;  %v1723_v7 = vmul.f32 %v5201_v23, %v1721_v42  ;;  %v109_v42 = vstv %s5626_s23  ;;  %v2187_v5 = vld [vmem:[%s6581_s7 + $0x68] sm:$0xff]  ;;  %s3669_s23 = sld [smem:[#allocation5 + $0x6]] }
 0x1a8   :  { %v5622_v15 = vpop.permute.xlu1 %838  ;;  %v5630_v36 = vpop.permute.xlu0 %1032  ;;  %4172 = vmatpush3.bf16.msra.mxu0 %v4169_v29  ;;  %v311_v59 = vadd.f32 %v5022_v45, %v255_v61  ;;  %v2095_v46 = vstv %s5618_s6  ;;  %v1997_v29 = vstv %s5624_s21  ;;  %s5779_s6 = sld [smem:[#allocation2 + $0x180]]  ;;  %s5834_s21 = sld [smem:[#allocation2 + $0x384]] }
 0x1a9   :  { %4174 = vmatprep.subr.bf16.mxu0 %v4173_v20  ;;  %v590_v45 = vadd.f32 %v5239_v12, %v534_v34  ;;  %v2096_v28 = vmul.f32 %v5185_v48, %v2095_v46 }
 0x1aa   :  { %2046 = vrot.lane.b32.xlu1 %v2041_v50, %s6628_s30  ;;  %1726 = vrot.lane.b32.xlu0 %v1722_v51, %s4528_s16  ;;  %v367_v41 = vadd.f32 %v5058_v30, %v311_v59  ;;  %v2185_v50 = vld [vmem:[%s6581_s7 + $0x58] sm:$0xff]  ;;  %v110_v59 = vmul.f32 %v5185_v48, %v109_v42 }
 0x1ab   :  { %v4177_v16 = vpack.c.bf16 %v2185_v50, %v2184_v10  ;;  %v646_v12 = vadd.f32 %v5293_v54, %v590_v45 }
 0x1ac   :  { %v5648_v31 = vpop.permute.xlu1 %1034  ;;  %v5654_v39 = vpop.permute.xlu0 %936  ;;  %4176 = vmatpush3.bf16.msra.mxu0 %v4173_v20  ;;  %v423_v30 = vadd.f32 %v5095_v53, %v367_v41  ;;  %v1581_v20 = vstv %s5646_s4  ;;  %s5804_s4 = sld [smem:[#allocation2 + $0x483]] }
 0x1ad   :  { %4178 = vmatprep.subr.bf16.mxu0 %v4177_v16  ;;  %v702_v53 = vadd.f32 %v5343_v37, %v646_v12  ;;  %v1582_v10 = vmul.f32 %v5185_v48, %v1581_v20  ;;  %v1679_v12 = vstv %s5674_s20  ;;  %s5760_s20 = sld [smem:[#allocation2 + $0x305]] }
 0x1ae   :  { %1532 = vrot.lane.b32.xlu1 %v1527_v58, %s6631_s17  ;;  %1434 = vrot.lane.b32.xlu0 %v1429_v40, %s6625_s28  ;;  %v479_v61 = vadd.f32 %v5143_v21, %v423_v30  ;;  %v4181_v21 = vpack.c.bf16 %v2187_v5, %v2186_v26  ;;  %v1998_v58 = vmul.f32 %v5185_v48, %v1997_v29 }
 0x1af   :  { %v758_v24 = vadd.f32 %v5371_v55, %v702_v53  ;;  %v2189_v55 = vld [vmem:[%s6581_s7 + $0x78] sm:$0x1f]  ;;  %v1999_v26 = vmul.f32 %v5201_v23, %v1997_v29 }
 0x1b0   :  { %v5671_v51 = vpop.permute.xlu1 %990  ;;  %v5679_v54 = vpop.permute.xlu0 %892  ;;  %4180 = vmatpush3.bf16.msra.mxu0 %v4177_v16  ;;  %v535_v37 = vadd.f32 %v5209_v11, %v479_v61  ;;  %v2188_v11 = vld [vmem:[%s6581_s7 + $0x70] sm:$0xff]  ;;  %v156_v16 = vadd.f32 %v4977_v6, %v110_v59  ;;  %s5718_s7 = sld [smem:[#allocation5 + $0x1]] }
 0x1b1   :  { %4182 = vmatprep.subr.bf16.mxu0 %v4181_v21  ;;  %v814_v41 = vadd.f32 %v5404_v8, %v758_v24  ;;  %v4185_v50 = vpack.c.bf16 %v2189_v55, %v2188_v11 }
 0x1b2   :  { %1728 = vrot.lane.b32.xlu1 %v1723_v7, %s4528_s16  ;;  %1630 = vrot.lane.b32.xlu0 %v1625_v44, %s4526_s29  ;;  %v591_v40 = vadd.f32 %v5268_v47, %v535_v37  ;;  %v1484_v7 = vmul.f32 %v5185_v48, %v1483_v56  ;;  %v6652_v37 = vld [vmem:[#allocation23_spill] sm:$0xff] }
 0x1b3   :  { %v870_v8 = vadd.f32 %v5436_v32, %v814_v41  ;;  %v6650_v32 = vld [vmem:[#allocation16_spill] sm:$0xff]  ;;  %v6654_v41 = vld [vmem:[#allocation27_spill] sm:$0xff] }
 0x1b4   :  { %v5697_v34 = vpop.permute.xlu1 %894  ;;  %v1089_v45 = vpop.permute.xlu0 %1088  ;;  %4184 = vmatpush3.bf16.msra.mxu0 %v4181_v21  ;;  %v647_v47 = vadd.f32 %v5315_v3, %v591_v40  ;;  %v212_v53 = vadd.f32 %v6650_v32, %v156_v16  ;;  %v2097_v40 = vmul.f32 %v5201_v23, %v2095_v46 }
 0x1b5   :  { %4187 = vmatprep.subr.msk.bf16.mxu0 %vm4941_vm2, %v4185_v50  ;;  %v926_v61 = vadd.f32 %v5482_v13, %v870_v8  ;;  %v1680_v13 = vmul.f32 %v5185_v48, %v1679_v12  ;;  %v1681_v8 = vmul.f32 %v5201_v23, %v1679_v12 }
 0x1b6   :  { %2100 = vrot.lane.b32.xlu1 %v2096_v28, %s6631_s17  ;;  %2002 = vrot.lane.b32.xlu0 %v1998_v58, %s6625_s28  ;;  %v703_v44 = vadd.f32 %v5350_v60, %v647_v47  ;;  %v111_v60 = vmul.f32 %v5201_v23, %v109_v42  ;;  %v6651_v28 = vld [vmem:[#allocation19_spill] sm:$0xff]  ;;  %v1485_v58 = vmul.f32 %v5201_v23, %v1483_v56  ;;  %v1187_v55 = vstv %s5718_s7  ;;  %s5883_s7 = sld [smem:[#allocation2 + $0x502]] }
 0x1b7   :  { %v982_v5 = vadd.f32 %v5545_v62, %v926_v61  ;;  %v268_v21 = vadd.f32 %v6651_v28, %v212_v53  ;;  %v6656_v61 = vld [vmem:[#allocation21_spill] sm:$0xff] }
 0x1b8   :  { %v1091_v30 = vpop.permute.xlu1 %1090  ;;  %v5724_v3 = vpop.permute.xlu0 %992  ;;  %4190 = vmatpush3.bf16.msk.msra.mxu0 %vm4941_vm2, %v4185_v50  ;;  %v759_v6 = vadd.f32 %v5378_v18, %v703_v44  ;;  %v6655_v50 = vld [vmem:[#allocation17_spill] sm:$0xff]  ;;  %v1583_v44 = vmul.f32 %v5201_v23, %v1581_v20 }
 0x1b9   :  { %v1038_v18 = vadd.f32 %v5630_v36, %v982_v5  ;;  %v324_v24 = vadd.f32 %v6652_v37, %v268_v21  ;;  %v6657_v5 = vld [vmem:[#allocation25_spill] sm:$0xff]  ;;  %v1735_v21 = vstv %s5755_s1  ;;  %s5931_s1 = sld [smem:[#allocation2 + $0x581]] }
 0x1ba   :  { %1586 = vrot.lane.b32.xlu1 %v1582_v10, %s6636_s27  ;;  %1488 = vrot.lane.b32.xlu0 %v1484_v7, %s6628_s30  ;;  %v815_v49 = vadd.f32 %v5411_v52, %v759_v6  ;;  %v6653_v52 = vld [vmem:[#allocation15_spill] sm:$0xff] }
 0x1bb   :  { %v1094_v59 = vadd.f32 %v1089_v45, %v1038_v18  ;;  %v157_v36 = vadd.f32 %v6653_v52, %v111_v60  ;;  %v380_v11 = vadd.f32 %v6654_v41, %v324_v24  ;;  %v6658_v18 = vld [vmem:[#allocation29_spill] sm:$0xff] }
 0x1bc   :  { %v5739_v29 = vpop.permute.xlu1 %948  ;;  %v5745_v62 = vpop.permute.xlu0 %1390  ;;  %v871_v42 = vadd.f32 %v5445_v43, %v815_v49  ;;  %v1637_v49 = vstv %s5760_s20  ;;  %s5958_s20 = sld [smem:[#allocation5 + $0x3]] }
 0x1bd   :  { %v213_v46 = vadd.f32 %v6655_v50, %v157_v36  ;;  %v436_v47 = vadd.f32 %v5175_v38, %v380_v11  ;;  %v1638_v52 = vmul.f32 %v5185_v48, %v1637_v49 }
 0x1be   :  { %2004 = vrot.lane.b32.xlu1 %v1999_v26, %s6625_s28  ;;  %1684 = vrot.lane.b32.xlu0 %v1680_v13, %s4527_s15  ;;  %v927_v43 = vadd.f32 %v5496_v19, %v871_v42  ;;  %v1539_v19 = vstv %s5735_s19  ;;  %v2053_v26 = vstv %s5741_s24  ;;  %s5900_s19 = sld [smem:[#allocation2 + $0x307]]  ;;  %s5925_s24 = sld [smem:[#allocation2 + $0x503]] }
 0x1bf   :  { %v269_v32 = vadd.f32 %v6656_v61, %v213_v46  ;;  %v492_v38 = vadd.f32 %v5243_v9, %v436_v47  ;;  %v1540_v20 = vmul.f32 %v5185_v48, %v1539_v19  ;;  %v2054_v9 = vmul.f32 %v5185_v48, %v2053_v26  ;;  %v6659_v47 = vld [vmem:[#allocation40_spill] sm:$0xff] }
 0x1c0   :  { %v1145_v10 = vpop.permute.xlu1 %1144  ;;  %v5763_v45 = vpop.permute.xlu0 %1046  ;;  %v983_v7 = vadd.f32 %v5567_v0, %v927_v43  ;;  %v2055_v43 = vmul.f32 %v5201_v23, %v2053_v26  ;;  %v1737_v46 = vmul.f32 %v5201_v23, %v1735_v21  ;;  %v6662_v26 = vld [vmem:[#allocation43_spill] sm:$0xff] }
 0x1c1   :  { %v1150_v56 = vadd.f32 %v1145_v10, %v1094_v59  ;;  %v325_v13 = vadd.f32 %v6657_v5, %v269_v32  ;;  %v548_v60 = vadd.f32 %v5297_v2, %v492_v38  ;;  %v1736_v2 = vmul.f32 %v5185_v48, %v1735_v21  ;;  %v6663_v5 = vld [vmem:[#allocation22_spill] sm:$0xff] }
 0x1c2   :  { %1490 = vrot.lane.b32.xlu1 %v1485_v58, %s6628_s30  ;;  %2102 = vrot.lane.b32.xlu0 %v2097_v40, %s6631_s17  ;;  %v1039_v0 = vadd.f32 %v5648_v31, %v983_v7  ;;  %v6660_v7 = vld [vmem:[#allocation50_spill] sm:$0xff] }
 0x1c3   :  { %v1188_v16 = vadd.f32 %v1187_v55, %v1150_v56  ;;  %v381_v37 = vadd.f32 %v6658_v18, %v325_v13  ;;  %v604_v24 = vadd.f32 %v5329_v25, %v548_v60  ;;  %v113_v25 = vstv %s5779_s6  ;;  %v6664_v60 = vld [vmem:[#allocation46_spill] sm:$0xff]  ;;  %s5969_s6 = sld [smem:[#allocation2 + $0x387]] }
 0x1c4   :  { %v5776_v53 = vpop.permute.xlu1 %950  ;;  %v5783_v6 = vpop.permute.xlu0 %1392  ;;  %v1095_v28 = vadd.f32 %v1091_v30, %v1039_v0  ;;  %v6665_v18 = vld [vmem:[#allocation26_spill] sm:$0xff] }
 0x1c5   :  { %v1190_v12 = vmul.f32 %v1188_v16, %v1188_v16  ;;  %v437_v30 = vadd.f32 %v5212_v33, %v381_v37  ;;  %v660_v59 = vadd.f32 %v5361_v4, %v604_v24  ;;  %v1541_v4 = vmul.f32 %v5201_v23, %v1539_v19  ;;  %v6661_v19 = vld [vmem:[#allocation18_spill] sm:$0xff]  ;;  %v6666_v24 = vld [vmem:[#allocation49_spill] sm:$0xff] }
 0x1c6   :  { %1686 = vrot.lane.b32.xlu1 %v1681_v8, %s4527_s15  ;;  %1588 = vrot.lane.b32.xlu0 %v1583_v44, %s6636_s27  ;;  %v5846_v44 = vld [vmem:[%s6574_s0 + $0x8] sm:$0xff]  ;;  %v2011_v23 = vstv %s5808_s22  ;;  %s6075_s22 = sld [smem:[#allocation2 + $0x280]] }
 0x1c7   :  { %3904 = vmatprep.mubr.msk.f32.mxu0 %vm1218_vm3, %v1190_v12  ;;  %v493_v41 = vadd.f32 %v5271_v63, %v437_v30  ;;  %v716_v11 = vadd.f32 %v5388_v35, %v660_v59  ;;  %v5827_v63 = vld [vmem:[%s6574_s0] sm:$0xff]  ;;  %s5880_s0 = sld [smem:[#allocation2 + $0x385]] }
 0x1c8   :  { %v1147_v31 = vpop.permute.xlu1 %1146  ;;  %v5796_v42 = vpop.permute.xlu0 %1048  ;;  %v114_v35 = vmul.f32 %v5827_v63, %v113_v25  ;;  %v2012_v21 = vmul.f32 %v5827_v63, %v2011_v23  ;;  %v6667_v59 = vld [vmem:[#allocation30_spill] sm:$0xff] }
 0x1c9   :  { %v1151_v58 = vadd.f32 %v1147_v31, %v1095_v28  ;;  %v549_v48 = vadd.f32 %v5320_v14, %v493_v41  ;;  %v1693_v31 = vstv %s5822_s5  ;;  %s6096_s5 = sld [smem:[#allocation5 + $0x5]] }
 0x1ca   :  { %1544 = vrot.lane.b32.xlu1 %v1540_v20, %s6631_s17  ;;  %2058 = vrot.lane.b32.xlu0 %v2054_v9, %s6628_s30  ;;  %v170_v61 = vadd.f32 %v6661_v19, %v114_v35 }
 0x1cb   :  { %v1189_v40 = vadd.f32 %v1187_v55, %v1151_v58  ;;  %v772_v55 = vadd.f32 %v5423_v27, %v716_v11  ;;  %v605_v27 = vadd.f32 %v5353_v17, %v549_v48  ;;  %v1639_v17 = vmul.f32 %v5846_v44, %v1637_v49  ;;  %v6669_v48 = vld [vmem:[#allocation32_spill] sm:$0xff] }
 0x1cc   :  { %v5806_v36 = vpop.permute.xlu1 %1004  ;;  %v5813_v10 = vpop.permute.xlu0 %1446  ;;  %v226_v13 = vadd.f32 %v6663_v5, %v170_v61 }
 0x1cd   :  { %v1191_v33 = vmul.f32 %v1189_v40, %v1189_v40  ;;  %v828_v56 = vadd.f32 %v5462_v22, %v772_v55  ;;  %v661_v8 = vadd.f32 %v6659_v47, %v605_v27  ;;  %v2109_v22 = vstv %s5804_s4  ;;  %s5975_s4 = sld [smem:[#allocation2 + $0x582]] }
 0x1ce   :  { %1740 = vrot.lane.b32.xlu1 %v1736_v2, %s4528_s16  ;;  %1642 = vrot.lane.b32.xlu0 %v1638_v52, %s4526_s29  ;;  %v2110_v20 = vmul.f32 %v5827_v63, %v2109_v22  ;;  %v282_v37 = vadd.f32 %v6665_v18, %v226_v13  ;;  %v6668_v52 = vld [vmem:[#allocation53_spill] sm:$0xff] }
 0x1cf   :  { %3905 = vmatmul.mubr.msk.f32.gmra.mrb[2].mxu0 %vm1218_vm3, %v1191_v33  ;;  %v884_v16 = vadd.f32 %v6660_v7, %v828_v56  ;;  %v717_v38 = vadd.f32 %v6662_v26, %v661_v8  ;;  %v115_v56 = vmul.f32 %v5846_v44, %v113_v25  ;;  %v6672_v26 = vld [vmem:[#allocation20_spill] sm:$0xff] }
 0x1d0   :  { %v5832_v14 = vpop.permute.xlu1 %1448  ;;  %v1103_v50 = vpop.permute.xlu0 %1102  ;;  %v338_v40 = vadd.f32 %v6667_v59, %v282_v37 }
 0x1d1   :  { %v940_v0 = vadd.f32 %v5593_v1, %v884_v16  ;;  %v773_v28 = vadd.f32 %v6664_v60, %v717_v38  ;;  %v1595_v1 = vstv %s5834_s21  ;;  %v1695_v38 = vmul.f32 %v5846_v44, %v1693_v31  ;;  %s6125_s21 = sld [smem:[#allocation2 + $0x500]] }
 0x1d2   :  { %1546 = vrot.lane.b32.xlu1 %v1541_v4, %s6631_s17  ;;  %2060 = vrot.lane.b32.xlu0 %v2055_v43, %s6628_s30  ;;  %v1596_v33 = vmul.f32 %v5827_v63, %v1595_v1  ;;  %v1193_v4 = vstv %s5852_s25  ;;  %v394_v55 = vadd.f32 %v6669_v48, %v338_v40  ;;  %v1597_v13 = vmul.f32 %v5846_v44, %v1595_v1  ;;  %v6678_v40 = vld [vmem:[#allocation31_spill] sm:$0xff]  ;;  %s6136_s25 = sld [smem:[#allocation5 + $0xa]] }
 0x1d3   :  { %v996_v9 = vadd.f32 %v5671_v51, %v940_v0  ;;  %v829_v58 = vadd.f32 %v6666_v24, %v773_v28  ;;  %v1694_v51 = vmul.f32 %v5827_v63, %v1693_v31  ;;  %v6673_v0 = vld [vmem:[#allocation38_spill] sm:$0xff]  ;;  %v6676_v31 = vld [vmem:[#allocation28_spill] sm:$0xff] }
 0x1d4   :  { %v1105_v32 = vpop.permute.xlu1 %1104  ;;  %v5856_v12 = vpop.permute.xlu0 %1006 }
 0x1d5   :  { %v1052_v2 = vadd.f32 %v5763_v45, %v996_v9  ;;  %v885_v41 = vadd.f32 %v6668_v52, %v829_v58  ;;  %v2067_v9 = vstv %s5883_s7  ;;  %s6148_s7 = sld [smem:[#allocation5 + $0x7]] }
 0x1d6   :  { %1742 = vrot.lane.b32.xlu1 %v1737_v46, %s4528_s16  ;;  %1644 = vrot.lane.b32.xlu0 %v1639_v17, %s4526_s29  ;;  %v6670_v46 = vld [vmem:[#allocation34_spill] sm:$0xff]  ;;  %v6671_v17 = vld [vmem:[#allocation36_spill] sm:$0xff]  ;;  %v2068_v59 = vmul.f32 %v5827_v63, %v2067_v9 }
 0x1d7   :  { %v1108_v11 = vadd.f32 %v1103_v50, %v1052_v2  ;;  %v941_v43 = vadd.f32 %v5654_v39, %v885_v41  ;;  %v2111_v50 = vmul.f32 %v5846_v44, %v2109_v22  ;;  %v450_v47 = vadd.f32 %v6670_v46, %v394_v55  ;;  %v6677_v2 = vld [vmem:[#allocation44_spill] sm:$0xff] }
 0x1d8   :  { %v5866_v49 = vpop.permute.xlu1 %1502  ;;  %v5872_v30 = vpop.permute.xlu0 %1404  ;;  %v2013_v39 = vmul.f32 %v5846_v44, %v2011_v23 }
 0x1d9   :  { %v997_v8 = vadd.f32 %v5724_v3, %v941_v43  ;;  %v506_v25 = vadd.f32 %v6671_v17, %v450_v47  ;;  %v171_v3 = vadd.f32 %v6672_v26, %v115_v56  ;;  %v6680_v43 = vld [vmem:[#allocation33_spill] sm:$0xff]  ;;  %v6681_v56 = vld [vmem:[#allocation51_spill] sm:$0xff] }
 0x1da   :  { %2114 = vrot.lane.b32.xlu1 %v2110_v20, %s6631_s17  ;;  %2016 = vrot.lane.b32.xlu0 %v2012_v21, %s6625_s28  ;;  %v1651_v20 = vstv %s5880_s0  ;;  %v6675_v21 = vld [vmem:[#allocation41_spill] sm:$0xff]  ;;  %v6682_v47 = vld [vmem:[#allocation35_spill] sm:$0xff]  ;;  %s3683_s0 = sld [smem:[#allocation2 + $0x580]] }
 0x1db   :  { %v1053_v19 = vadd.f32 %v5796_v42, %v997_v8  ;;  %v562_v23 = vadd.f32 %v6673_v0, %v506_v25  ;;  %v6674_v42 = vld [vmem:[#allocation24_spill] sm:$0xff]  ;;  %v6683_v25 = vld [vmem:[#allocation37_spill] sm:$0xff]  ;;  %v6684_v0 = vld [vmem:[#allocation39_spill] sm:$0xff] }
 0x1dc   :  { %v1159_v45 = vpop.permute.xlu1 %1158  ;;  %v5887_v27 = vpop.permute.xlu0 %1060  ;;  %v227_v60 = vadd.f32 %v6674_v42, %v171_v3  ;;  %v1653_v3 = vmul.f32 %v5846_v44, %v1651_v20 }
 0x1dd   :  { %v1164_v35 = vadd.f32 %v1159_v45, %v1108_v11  ;;  %v1109_v5 = vadd.f32 %v1105_v32, %v1053_v19  ;;  %v618_v18 = vadd.f32 %v6675_v21, %v562_v23  ;;  %v1652_v32 = vmul.f32 %v5827_v63, %v1651_v20  ;;  %v6686_v21 = vld [vmem:[#allocation45_spill] sm:$0xff] }
 0x1de   :  { %1698 = vrot.lane.b32.xlu1 %v1694_v51, %s4527_s15  ;;  %1600 = vrot.lane.b32.xlu0 %v1596_v33, %s6636_s27  ;;  %v283_v58 = vadd.f32 %v6676_v31, %v227_v60  ;;  %v1749_v11 = vstv %s5900_s19  ;;  %v6679_v33 = vld [vmem:[#allocation47_spill] sm:$0xff]  ;;  %v6685_v60 = vld [vmem:[#allocation42_spill] sm:$0xff]  ;;  %s3699_s19 = sld [smem:[#allocation5 + $0xb]] }
 0x1df   :  { %v1194_v7 = vadd.f32 %v1193_v4, %v1164_v35  ;;  %v674_v51 = vadd.f32 %v6677_v2, %v618_v18  ;;  %v2069_v35 = vmul.f32 %v5846_v44, %v2067_v9  ;;  %v1750_v46 = vmul.f32 %v5827_v63, %v1749_v11 }
 0x1e0   :  { %v5898_v16 = vpop.permute.xlu1 %1504  ;;  %v5904_v61 = vpop.permute.xlu0 %1406  ;;  %v339_v52 = vadd.f32 %v6678_v40, %v283_v58 }
 0x1e1   :  { %v1196_v22 = vmul.f32 %v1194_v7, %v1194_v7  ;;  %v730_v45 = vadd.f32 %v6679_v33, %v674_v51 }
 0x1e2   :  { %2116 = vrot.lane.b32.xlu1 %v2111_v50, %s6631_s17  ;;  %2018 = vrot.lane.b32.xlu0 %v2013_v39, %s6625_s28 }
 0x1e3   :  { %3907 = vmatprep.mubr.msk.f32.mxu0 %vm1218_vm3, %v1196_v22  ;;  %v786_v50 = vadd.f32 %v6681_v56, %v730_v45  ;;  %v1751_v22 = vmul.f32 %v5846_v44, %v1749_v11 }
 0x1e4   :  { %v1161_v28 = vpop.permute.xlu1 %1160  ;;  %v5917_v24 = vpop.permute.xlu0 %1062 }
 0x1e5   :  { %v1165_v37 = vadd.f32 %v1161_v28, %v1109_v5  ;;  %v842_v39 = vadd.f32 %v5598_v57, %v786_v50 }
 0x1e6   :  { %1700 = vrot.lane.b32.xlu1 %v1695_v38, %s4527_s15  ;;  %1602 = vrot.lane.b32.xlu0 %v1597_v13, %s6636_s27  ;;  %s5946_s27 = sld [smem:[#allocation2 + $0x386]]  ;;  %v2123_v38 = vstv %s5925_s24  ;;  %v2025_v13 = vstv %s5931_s1  ;;  %s4542_s24 = smov 24  }
 0x1e7   :  { %v1195_v1 = vadd.f32 %v1193_v4, %v1165_v37  ;;  %v395_v4 = vadd.f32 %v6680_v43, %v339_v52  ;;  %v898_v26 = vadd.f32 %v5679_v54, %v842_v39  ;;  %v2124_v54 = vmul.f32 %v5827_v63, %v2123_v38  ;;  %s4543_s1 = smov 51  }
 0x1e8   :  { %v5928_v41 = vpop.permute.xlu1 %1558  ;;  %v5934_v55 = vpop.permute.xlu0 %1460  ;;  %v2026_v9 = vmul.f32 %v5827_v63, %v2025_v13  ;;  %v2027_v2 = vmul.f32 %v5846_v44, %v2025_v13  ;;  %v1199_v52 = vstv %s5958_s20  ;;  %s6280_s20 = sld [smem:[#allocation8]] }
 0x1e9   :  { %v1197_v48 = vmul.f32 %v1195_v1, %v1195_v1  ;;  %v451_v8 = vadd.f32 %v6682_v47, %v395_v4  ;;  %v954_v57 = vadd.f32 %v5739_v29, %v898_v26  ;;  %v2125_v4 = vmul.f32 %v5846_v44, %v2123_v38 }
 0x1ea   :  { %1656 = vrot.lane.b32.xlu1 %v1652_v32, %s4526_s29  ;;  %2072 = vrot.lane.b32.xlu0 %v2068_v59, %s6628_s30  ;;  %v6687_v32 = vld [vmem:[#allocation48_spill] sm:$0xff] }
 0x1eb   :  { %3908 = vmatmul.mubr.msk.f32.gmra.mrb[4].mxu0 %vm1218_vm3, %v1197_v48  ;;  %v507_v19 = vadd.f32 %v6683_v25, %v451_v8  ;;  %v1010_v20 = vadd.f32 %v5806_v36, %v954_v57  ;;  %v6688_v59 = vld [vmem:[#allocation52_spill] sm:$0xff] }
 0x1ec   :  { %v5944_v7 = vpop.permute.xlu1 %1462  ;;  %v1117_v17 = vpop.permute.xlu0 %1116  ;;  %v1707_v37 = vstv %s5946_s27  ;;  %s6273_s27 = sld [smem:[#allocation7 + $0x80]] }
 0x1ed   :  { %v563_v23 = vadd.f32 %v6684_v0, %v507_v19  ;;  %v1066_v31 = vadd.f32 %v5887_v27, %v1010_v20  ;;  %v1708_v1 = vmul.f32 %v5827_v63, %v1707_v37  ;;  %v1709_v48 = vmul.f32 %v5846_v44, %v1707_v37 }
 0x1ee   :  { %2074 = vrot.lane.b32.xlu1 %v2069_v35, %s6628_s30  ;;  %1754 = vrot.lane.b32.xlu0 %v1750_v46, %s4528_s16  ;;  %v1763_v35 = vstv %s5969_s6  ;;  %v2081_v46 = vstv %s5975_s4  ;;  %s6282_s6 = sld [smem:[#allocation8 + $0x1]]  ;;  %s6284_s4 = sld [smem:[#allocation8 + $0x2]] }
 0x1ef   :  { %v619_v28 = vadd.f32 %v6685_v60, %v563_v23  ;;  %v1122_v51 = vadd.f32 %v1117_v17, %v1066_v31  ;;  %v1764_v39 = vmul.f32 %v5827_v63, %v1763_v35  ;;  %v2083_v26 = vmul.f32 %v5846_v44, %v2081_v46 }
 0x1f0   :  { %v1119_v5 = vpop.permute.xlu1 %1118  ;;  %v5961_v42 = vpop.permute.xlu0 %1560 }
 0x1f1   :  { %v675_v18 = vadd.f32 %v6686_v21, %v619_v28 }
 0x1f2   :  { %1756 = vrot.lane.b32.xlu1 %v1751_v22, %s4528_s16  ;;  %1658 = vrot.lane.b32.xlu0 %v1653_v3, %s4526_s29  ;;  %s5995_s29 = sld [smem:[#allocation2 + $0x583]]  ;;  %v1765_v22 = vmul.f32 %v5846_v44, %v1763_v35 }
 0x1f3   :  { %v731_v36 = vadd.f32 %v6687_v32, %v675_v18 }
 0x1f4   :  { %v5972_v29 = vpop.permute.xlu1 %1516  ;;  %v5978_v58 = vpop.permute.xlu0 %1418 }
 0x1f5   :  { %v787_v40 = vadd.f32 %v6688_v59, %v731_v36 }
 0x1f6   :  { %2128 = vrot.lane.b32.xlu1 %v2124_v54, %s6631_s17  ;;  %2030 = vrot.lane.b32.xlu0 %v2026_v9, %s6625_s28 }
 0x1f7   :  { %v843_v45 = vadd.f32 %v5622_v15, %v787_v40 }
 0x1f8   :  { %v1173_v11 = vpop.permute.xlu1 %1172  ;;  %v5987_v33 = vpop.permute.xlu0 %1614  ;;  %v2137_v3 = vstv %s5995_s29  ;;  %s6286_s29 = sld [smem:[#allocation8 + $0x3]] }
 0x1f9   :  { %v1178_v27 = vadd.f32 %v1173_v11, %v1122_v51  ;;  %v899_v56 = vadd.f32 %v5697_v34, %v843_v45  ;;  %v2082_v34 = vmul.f32 %v5827_v63, %v2081_v46  ;;  %v2138_v60 = vmul.f32 %v5827_v63, %v2137_v3 }
 0x1fa   :  { %2032 = vrot.lane.b32.xlu1 %v2027_v2, %s6625_s28  ;;  %1712 = vrot.lane.b32.xlu0 %v1708_v1, %s4527_s15  ;;  %s6002_s28 = sld [smem:[#allocation2 + $0x300]] }
 0x1fb   :  { %v1200_v43 = vadd.f32 %v1199_v52, %v1178_v27  ;;  %v955_v15 = vadd.f32 %v5776_v53, %v899_v56 }
 0x1fc   :  { %v5998_v50 = vpop.permute.xlu1 %1518  ;;  %v1421_v8 = vpop.permute.xlu0 %1420 }
 0x1fd   :  { %v1202_v47 = vmul.f32 %v1200_v43, %v1200_v43  ;;  %v1011_v17 = vadd.f32 %v5856_v12, %v955_v15 }
 0x1fe   :  { %1714 = vrot.lane.b32.xlu1 %v1709_v48, %s4527_s15  ;;  %2130 = vrot.lane.b32.xlu0 %v2125_v4, %s6631_s17  ;;  %s6017_s15 = sld [smem:[#allocation2 + $0x200]] }
 0x1ff   :  { %3910 = vmatprep.mubr.msk.f32.mxu0 %vm1218_vm3, %v1202_v47  ;;  %v1067_v53 = vadd.f32 %v5917_v24, %v1011_v17  ;;  %v2139_v24 = vmul.f32 %v5846_v44, %v2137_v3 }
 0x200   :  { %v6010_v25 = vpop.permute.xlu1 %1988  ;;  %v6012_v19 = vpop.permute.xlu0 %1616  ;;  %v1377_v23 = vstv %s6002_s28  ;;  %s6288_s28 = sld [smem:[#allocation7 + $0x1]] }
 0x201   :  { %v1123_v38 = vadd.f32 %v1119_v5, %v1067_v53  ;;  %v1379_v57 = vmul.f32 %v5846_v44, %v1377_v23  ;;  %v1378_v1 = vmul.f32 %v5827_v63, %v1377_v23 }
 0x202   :  { %1768 = vrot.lane.b32.xlu1 %v1764_v39, %s4528_s16  ;;  %2086 = vrot.lane.b32.xlu0 %v2082_v34, %s6628_s30 }
 0x203   :  { %v1425_v21 = vadd.f32 %v1421_v8, %v1379_v57  ;;  %v1424_v45 = vadd.f32 %v5978_v58, %v1378_v1 }
 0x204   :  { %v1475_v12 = vpop.permute.xlu1 %1474  ;;  %v1175_v0 = vpop.permute.xlu0 %1174  ;;  %v1369_v5 = vstv %s6017_s15  ;;  %s6290_s15 = sld [smem:[#allocation7 + $0x81]] }
 0x205   :  { %v1179_v13 = vadd.f32 %v1175_v0, %v1123_v38  ;;  %v1370_v32 = vmul.f32 %v5827_v63, %v1369_v5  ;;  %v1480_v48 = vadd.f32 %v1475_v12, %v1424_v45 }
 0x206   :  { %1770 = vrot.lane.b32.xlu1 %v1765_v22, %s4528_s16  ;;  %2088 = vrot.lane.b32.xlu0 %v2083_v26, %s6628_s30  ;;  %s6047_s16 = sld [smem:[#allocation5 + $0x4]]  ;;  %s6051_s30 = sld [smem:[#allocation2 + $0x400]] }
 0x207   :  { %v1201_v28 = vadd.f32 %v1199_v52, %v1179_v13  ;;  %v1396_v51 = vadd.f32 %v5745_v62, %v1370_v32  ;;  %v1371_v52 = vmul.f32 %v5846_v44, %v1369_v5 }
 0x208   :  { %v1671_v54 = vpop.permute.xlu1 %1670  ;;  %v6028_v20 = vpop.permute.xlu0 %1572 }
 0x209   :  { %v1203_v9 = vmul.f32 %v1201_v28, %v1201_v28  ;;  %v1452_v59 = vadd.f32 %v5813_v10, %v1396_v51  ;;  %v1397_v10 = vadd.f32 %v5783_v6, %v1371_v52 }
 0x20a   :  { %2144 = vrot.lane.b32.xlu1 %v2139_v24, %s6631_s17  ;;  %2142 = vrot.lane.b32.xlu0 %v2138_v60, %s6631_s17  ;;  %s6067_s17 = sld [smem:[#allocation5 + $0x8]] }
 0x20b   :  { %3911 = vmatmul.mubr.msk.f32.gmra.mrb[6].mxu0 %vm1218_vm3, %v1203_v9  ;;  %v1508_v27 = vadd.f32 %v5866_v49, %v1452_v59  ;;  %v1453_v46 = vadd.f32 %v5832_v14, %v1397_v10  ;;  %v1373_v9 = vstv %s6075_s22  ;;  %s6320_s22 = sld [smem:[#allocation7 + $0x82]] }
 0x20c   :  { %v1477_v18 = vpop.permute.xlu1 %1476  ;;  %v6036_v31 = vpop.permute.xlu0 %1990  ;;  %v1777_v15 = vstv %s6047_s16  ;;  %v1967_v39 = vstv %s6051_s30  ;;  %s6293_s16 = sld [smem:[#allocation7 + $0x101]] }
 0x20d   :  { %v6034_v37 = vadd.f32 %v1477_v18, %v1425_v21  ;;  %v1564_v62 = vadd.f32 %v5928_v41, %v1508_v27  ;;  %v1509_v58 = vadd.f32 %v5898_v16, %v1453_v46  ;;  %v1969_v5 = vmul.f32 %v5846_v44, %v1967_v39  ;;  %s6295_s30 = sld [smem:[#allocation7 + $0x181]] }
 0x20f   :  { %v1620_v35 = vadd.f32 %v5987_v33, %v1564_v62  ;;  %v1565_v34 = vadd.f32 %v5961_v42, %v1509_v58  ;;  %v1968_v33 = vmul.f32 %v5827_v63, %v1967_v39  ;;  %v1995_v1 = vadd.f32 %v6036_v31, %v1969_v5 }
 0x210   :  { %v1673_v36 = vpop.permute.xlu1 %1672  ;;  %v6039_v2 = vpop.permute.xlu0 %1574  ;;  %v2151_v23 = vstv %s6067_s17  ;;  %s6318_s17 = sld [smem:[#allocation7 + $0x2]] }
 0x211   :  { %v1676_v49 = vadd.f32 %v1671_v54, %v1620_v35  ;;  %v1621_v14 = vadd.f32 %v6012_v19, %v1565_v34  ;;  %v1994_v42 = vadd.f32 %v6010_v25, %v1968_v33  ;;  %v1971_v33 = vstv %s6102_s3  ;;  %s6324_s3 = sld [smem:[#allocation7 + $0x182]] }
 0x213   :  { %v1677_v22 = vadd.f32 %v1673_v36, %v1621_v14  ;;  %v1374_v36 = vmul.f32 %v5827_v63, %v1373_v9 }
 0x214   :  { %v6044_v40 = vpop.permute.xlu1 %1432  ;;  %v2045_v11 = vpop.permute.xlu0 %2044 }
 0x215   :  { %v2050_v12 = vadd.f32 %v2045_v11, %v1994_v42  ;;  %v1410_v11 = vadd.f32 %v5872_v30, %v1374_v36 }
 0x217   :  { %v1466_v62 = vadd.f32 %v5934_v55, %v1410_v11 }
 0x218   :  { %v6054_v43 = vpop.permute.xlu1 %1628  ;;  %v1531_v4 = vpop.permute.xlu0 %1530 }
 0x219   :  { %v6058_v56 = vadd.f32 %v1531_v4, %v1480_v48  ;;  %v1375_v4 = vmul.f32 %v5846_v44, %v1373_v9  ;;  %v1522_v35 = vadd.f32 %v5972_v29, %v1466_v62 }
 0x21b   :  { %v1578_v30 = vadd.f32 %v6028_v20, %v1522_v35 }
 0x21c   :  { %v2047_v47 = vpop.permute.xlu1 %2046  ;;  %v1727_v8 = vpop.permute.xlu0 %1726 }
 0x21d   :  { %v1732_v41 = vadd.f32 %v1727_v8, %v1676_v49  ;;  %v2051_v59 = vadd.f32 %v2047_v47, %v1995_v1  ;;  %v1411_v49 = vadd.f32 %v5904_v61, %v1375_v4  ;;  %v1634_v47 = vadd.f32 %v6054_v43, %v1578_v30 }
 0x21e   :  { %v1972_v43 = vmul.f32 %v5827_v63, %v1971_v33  ;;  %v1975_v30 = vstv %s6125_s21  ;;  %s6337_s21 = sld [smem:[#allocation7 + $0x83]] }
 0x21f   :  { %v1778_v6 = vadd.f32 %v1777_v15, %v1732_v41  ;;  %v1467_v8 = vadd.f32 %v5944_v7, %v1411_v49 }
 0x220   :  { %v6065_v17 = vpop.permute.xlu1 %1532  ;;  %v6071_v53 = vpop.permute.xlu0 %1434 }
 0x221   :  { %v1780_v16 = vmul.f32 %v1778_v6, %v1778_v6  ;;  %v1523_v41 = vadd.f32 %v5998_v50, %v1467_v8  ;;  %v1537_v4 = vadd.f32 %v6065_v17, %v6034_v37 }
 0x223   :  { %3945 = vmatprep.mubr.msk.f32.mxu1 %vm1816_vm6, %v1780_v16  ;;  %v1579_v20 = vadd.f32 %v6039_v2, %v1523_v41 }
 0x224   :  { %v1729_v26 = vpop.permute.xlu1 %1728  ;;  %v1631_v38 = vpop.permute.xlu0 %1630 }
 0x225   :  { %v1733_v3 = vadd.f32 %v1729_v26, %v1677_v22  ;;  %v1635_v61 = vadd.f32 %v1631_v38, %v1579_v20 }
 0x227   :  { %v1779_v0 = vadd.f32 %v1777_v15, %v1733_v3  ;;  %v1783_v15 = vstv %s6096_s5  ;;  %s6322_s5 = sld [smem:[#allocation7 + $0x102]] }
 0x228   :  { %v2101_v13 = vpop.permute.xlu1 %2100  ;;  %v2003_v57 = vpop.permute.xlu0 %2002 }
 0x229   :  { %v1781_v19 = vmul.f32 %v1779_v0, %v1779_v0  ;;  %v2106_v24 = vadd.f32 %v2101_v13, %v2050_v12  ;;  %v2008_v42 = vadd.f32 %v2003_v57, %v1972_v43  ;;  %v2163_v43 = vstv %s6136_s25  ;;  %s4545_s25 = smov 78  }
 0x22b   :  { %v2152_v60 = vadd.f32 %v2151_v23, %v2106_v24  ;;  %3946 = vmatmul.mubr.msk.f32.vlgmr.msra.gmra.mrb[0].mxu1 %vm1816_vm6, %v1781_v19  ;;  %v1973_v19 = vmul.f32 %v5846_v44, %v1971_v33 }
 0x22c   :  { %v6079_v28 = vpop.permute.xlu1 %1586  ;;  %v6081_v25 = vpop.permute.xlu0 %1488 }
 0x22d   :  { %v2154_v54 = vmul.f32 %v2152_v60, %v2152_v60 }
 0x22e   :  { %v6085_v21 = vpop.f32.mrb[0].mxu0 }
 0x22f   :  { %3989 = vmatprep.mubr.msk.f32.mxu0 %vm2190_vm7, %v2154_v54  ;;  %v6088_v18 = vpop.f32.mrb[1].mxu0 }
 0x230   :  { %v2005_v32 = vpop.permute.xlu1 %2004  ;;  %v1685_v51 = vpop.permute.xlu0 %1684 }
 0x231   :  { %v1690_v29 = vadd.f32 %v1685_v51, %v1634_v47  ;;  %v2009_v5 = vadd.f32 %v2005_v32, %v1973_v19  ;;  %v1592_v32 = vadd.f32 %v6079_v28, %v6058_v56  ;;  %v1381_v56 = vstv %s6127_s2  ;;  %s6341_s2 = sld [smem:[#allocation7 + $0x183]] }
 0x232   :  { %v1382_v17 = vmul.f32 %v5827_v63, %v1381_v56 }
 0x234   :  { %v6092_v52 = vpop.permute.xlu1 %1490  ;;  %v2103_v27 = vpop.permute.xlu0 %2102 }
 0x235   :  { %v2107_v45 = vadd.f32 %v2103_v27, %v2051_v59 }
 0x237   :  { %v2153_v48 = vadd.f32 %v2151_v23, %v2107_v45  ;;  %v2157_v23 = vstv %s6117_s18  ;;  %s6335_s18 = sld [smem:[#allocation7 + $0x3]] }
 0x238   :  { %v1687_v10 = vpop.permute.xlu1 %1686  ;;  %v6100_v46 = vpop.permute.xlu0 %1588 }
 0x239   :  { %v2155_v31 = vmul.f32 %v2153_v48, %v2153_v48  ;;  %v1691_v26 = vadd.f32 %v1687_v10, %v1635_v61  ;;  %v1593_v49 = vadd.f32 %v6100_v46, %v1537_v4 }
 0x23b   :  { %3990 = vmatmul.mubr.msk.f32.vlgmr.msra.gmra.mrb[8].mxu0 %vm2190_vm7, %v2155_v31 }
 0x23c   :  { %v6106_v55 = vpop.permute.xlu1 %1544  ;;  %v2059_v58 = vpop.permute.xlu0 %2058 }
 0x23d   :  { %v2064_v0 = vadd.f32 %v2059_v58, %v2008_v42 }
 0x240   :  { %v1741_v39 = vpop.permute.xlu1 %1740  ;;  %v1643_v6 = vpop.permute.xlu0 %1642 }
 0x241   :  { %v1746_v34 = vadd.f32 %v1741_v39, %v1690_v29  ;;  %v1648_v31 = vadd.f32 %v1643_v6, %v1592_v32  ;;  %v1976_v29 = vmul.f32 %v5827_v63, %v1975_v30 }
 0x243   :  { %v1784_v14 = vadd.f32 %v1783_v15, %v1746_v34 }
 0x244   :  { %v6115_v16 = vpop.permute.xlu1 %1546  ;;  %v2061_v22 = vpop.permute.xlu0 %2060 }
 0x245   :  { %v1786_v7 = vmul.f32 %v1784_v14, %v1784_v14  ;;  %v2065_v1 = vadd.f32 %v2061_v22, %v2009_v5  ;;  %v1438_v22 = vadd.f32 %v6044_v40, %v1382_v17 }
 0x247   :  { %3948 = vmatprep.mubr.msk.f32.mxu1 %vm1816_vm6, %v1786_v7 }
 0x248   :  { %v1743_v50 = vpop.permute.xlu1 %1742  ;;  %v1645_v12 = vpop.permute.xlu0 %1644 }
 0x249   :  { %v1747_v3 = vadd.f32 %v1743_v50, %v1691_v26  ;;  %v1649_v8 = vadd.f32 %v1645_v12, %v1593_v49  ;;  %v1383_v26 = vmul.f32 %v5846_v44, %v1381_v56  ;;  %v1977_v12 = vmul.f32 %v5846_v44, %v1975_v30 }
 0x24b   :  { %v1785_v2 = vadd.f32 %v1783_v15, %v1747_v3  ;;  %v1789_v15 = vstv %s3669_s23  ;;  %s6339_s23 = sld [smem:[#allocation7 + $0x103]] }
 0x24c   :  { %v2115_v13 = vpop.permute.xlu1 %2114  ;;  %v2017_v38 = vpop.permute.xlu0 %2016 }
 0x24d   :  { %v1787_v24 = vmul.f32 %v1785_v2, %v1785_v2  ;;  %v2120_v60 = vadd.f32 %v2115_v13, %v2064_v0  ;;  %v2022_v6 = vadd.f32 %v2017_v38, %v1976_v29  ;;  %v1494_v0 = vadd.f32 %v6081_v25, %v1438_v22 }
 0x24e   :  { %v1439_v13 = vadd.f32 %v6071_v53, %v1383_v26  ;;  %v1979_v53 = vstv %s3683_s0  ;;  %s4546_s0 = smov 39  }
 0x24f   :  { %v2158_v54 = vadd.f32 %v2157_v23, %v2120_v60  ;;  %3949 = vmatmul.mubr.msk.f32.gmra.mrb[2].mxu1 %vm1816_vm6, %v1787_v24  ;;  %v1550_v40 = vadd.f32 %v6106_v55, %v1494_v0  ;;  %v1980_v4 = vmul.f32 %v5827_v63, %v1979_v53 }
 0x250   :  { %v1699_v9 = vpop.permute.xlu1 %1698  ;;  %v1601_v51 = vpop.permute.xlu0 %1600  ;;  %v1495_v38 = vadd.f32 %v6092_v52, %v1439_v13  ;;  %v1981_v52 = vmul.f32 %v5846_v44, %v1979_v53 }
 0x251   :  { %v2160_v36 = vmul.f32 %v2158_v54, %v2158_v54  ;;  %v1704_v47 = vadd.f32 %v1699_v9, %v1648_v31  ;;  %v1606_v54 = vadd.f32 %v1601_v51, %v1550_v40 }
 0x252   :  { %v1551_v5 = vadd.f32 %v6115_v16, %v1495_v38 }
 0x253   :  { %3992 = vmatprep.mubr.msk.f32.mxu0 %vm2190_vm7, %v2160_v36 }
 0x254   :  { %v2117_v57 = vpop.permute.xlu1 %2116  ;;  %v2019_v11 = vpop.permute.xlu0 %2018 }
 0x255   :  { %v2121_v59 = vadd.f32 %v2117_v57, %v2065_v1  ;;  %v2023_v60 = vadd.f32 %v2019_v11, %v1977_v12 }
 0x257   :  { %v2159_v27 = vadd.f32 %v2157_v23, %v2121_v59 }
 0x258   :  { %v1701_v45 = vpop.permute.xlu1 %1700  ;;  %v1603_v48 = vpop.permute.xlu0 %1602 }
 0x259   :  { %v2161_v62 = vmul.f32 %v2159_v27, %v2159_v27  ;;  %v1705_v41 = vadd.f32 %v1701_v45, %v1649_v8  ;;  %v1607_v59 = vadd.f32 %v1603_v48, %v1551_v5  ;;  %v1795_v45 = vstv %s6148_s7 }
 0x25b   :  { %3993 = vmatmul.mubr.msk.f32.gmra.mrb[10].mxu0 %vm2190_vm7, %v2161_v62 }
 0x25c   :  { %v1657_v10 = vpop.permute.xlu1 %1656  ;;  %v2073_v35 = vpop.permute.xlu0 %2072 }
 0x25d   :  { %v2078_v14 = vadd.f32 %v2073_v35, %v2022_v6  ;;  %v1662_v36 = vadd.f32 %v1657_v10, %v1606_v54 }
 0x260   :  { %v2075_v58 = vpop.permute.xlu1 %2074  ;;  %v1755_v39 = vpop.permute.xlu0 %1754 }
 0x261   :  { %v1760_v28 = vadd.f32 %v1755_v39, %v1704_v47  ;;  %v2079_v25 = vadd.f32 %v2075_v58, %v2023_v60 }
 0x263   :  { %v1790_v34 = vadd.f32 %v1789_v15, %v1760_v28 }
 0x264   :  { %v1757_v37 = vpop.permute.xlu1 %1756  ;;  %v1659_v46 = vpop.permute.xlu0 %1658 }
 0x265   :  { %v1761_v33 = vadd.f32 %v1757_v37, %v1705_v41  ;;  %v1792_v20 = vmul.f32 %v1790_v34, %v1790_v34  ;;  %v1663_v11 = vadd.f32 %v1659_v46, %v1607_v59 }
 0x267   :  { %v1791_v61 = vadd.f32 %v1789_v15, %v1761_v33  ;;  %3951 = vmatprep.mubr.msk.f32.mxu1 %vm1816_vm6, %v1792_v20  ;;  %v2169_v15 = vstv %s3699_s19 }
 0x268   :  { %v2129_v7 = vpop.permute.xlu1 %2128  ;;  %v2031_v3 = vpop.permute.xlu0 %2030 }
 0x269   :  { %v1793_v50 = vmul.f32 %v1791_v61, %v1791_v61  ;;  %v2134_v42 = vadd.f32 %v2129_v7, %v2078_v14  ;;  %v2036_v58 = vadd.f32 %v2031_v3, %v1980_v4 }
 0x26b   :  { %v2164_v2 = vadd.f32 %v2163_v43, %v2134_v42  ;;  %3952 = vmatmul.mubr.msk.f32.gmra.mrb[4].mxu1 %vm1816_vm6, %v1793_v50 }
 0x26c   :  { %v2033_v23 = vpop.permute.xlu1 %2032  ;;  %v1713_v24 = vpop.permute.xlu0 %1712 }
 0x26d   :  { %v2166_v19 = vmul.f32 %v2164_v2, %v2164_v2  ;;  %v1718_v27 = vadd.f32 %v1713_v24, %v1662_v36  ;;  %v2037_v48 = vadd.f32 %v2033_v23, %v1981_v52 }
 0x26f   :  { %3995 = vmatprep.mubr.msk.f32.mxu0 %vm2190_vm7, %v2166_v19 }
 0x270   :  { %v1715_v9 = vpop.permute.xlu1 %1714  ;;  %v2131_v1 = vpop.permute.xlu0 %2130 }
 0x271   :  { %v2135_v57 = vadd.f32 %v2131_v1, %v2079_v25  ;;  %v1719_v31 = vadd.f32 %v1715_v9, %v1663_v11 }
 0x273   :  { %v2165_v55 = vadd.f32 %v2163_v43, %v2135_v57 }
 0x274   :  { %v1769_v62 = vpop.permute.xlu1 %1768  ;;  %v2087_v32 = vpop.permute.xlu0 %2086 }
 0x275   :  { %v1774_v51 = vadd.f32 %v1769_v62, %v1718_v27  ;;  %v2167_v35 = vmul.f32 %v2165_v55, %v2165_v55  ;;  %v2092_v44 = vadd.f32 %v2087_v32, %v2036_v58  ;;  %v2422_v32 = vld [vmem:[%s6582_s8 + $0x8] sm:$0xff] }
 0x277   :  { %v1796_v16 = vadd.f32 %v1795_v45, %v1774_v51  ;;  %3996 = vmatmul.mubr.msk.f32.gmra.mrb[12].mxu0 %vm2190_vm7, %v2167_v35  ;;  %v2421_v51 = vld [vmem:[%s6582_s8] sm:$0xff] }
 0x278   :  { %v1771_v10 = vpop.permute.xlu1 %1770  ;;  %v2089_v47 = vpop.permute.xlu0 %2088  ;;  %v6190_v4 = vpack.c.bf16 %v2422_v32, %v2421_v51  ;;  %v2667_v51 = vstv %s6284_s4  ;;  %v2780_v32 = vstv %s6286_s29 }
 0x279   :  { %v1798_v30 = vmul.f32 %v1796_v16, %v1796_v16  ;;  %v1775_v49 = vadd.f32 %v1771_v10, %v1719_v31  ;;  %v2093_v29 = vadd.f32 %v2089_v47, %v2037_v48  ;;  %v2423_v31 = vld [vmem:[%s6582_s8 + $0x10] sm:$0xff]  ;;  %v2424_v16 = vld [vmem:[%s6582_s8 + $0x18] sm:$0xff]  ;;  %v2426_v47 = vld [vmem:[%s6582_s8 + $0x28] sm:$0xff] }
 0x27a   :  { %4192 = vmatprep.subr.bf16.mxu1 %v6190_v4  ;;  %4236 = vmatprep.subr.bf16.mxu0 %v6190_v4  ;;  %v6203_v48 = vpack.c.bf16 %v2424_v16, %v2423_v31  ;;  %v2440_v16 = vstv %s6288_s28 }
 0x27b   :  { %v1797_v8 = vadd.f32 %v1795_v45, %v1775_v49  ;;  %3954 = vmatprep.mubr.msk.f32.mxu1 %vm1816_vm6, %v1798_v30  ;;  %4194 = vmatpush3.bf16.msra.mxu1 %v6190_v4  ;;  %v2425_v49 = vld [vmem:[%s6582_s8 + $0x20] sm:$0xff] }
 0x27c   :  { %v2145_v39 = vpop.permute.xlu1 %2144  ;;  %v2143_v28 = vpop.permute.xlu0 %2142  ;;  %4238 = vmatpush3.bf16.msra.mxu0 %v6190_v4  ;;  %4196 = vmatprep.subr.bf16.mxu1 %v6203_v48  ;;  %v6215_v58 = vpack.c.bf16 %v2426_v47, %v2425_v49  ;;  %v2671_v47 = vstv %s6293_s16 }
 0x27d   :  { %v1799_v56 = vmul.f32 %v1797_v8, %v1797_v8  ;;  %v2149_v63 = vadd.f32 %v2145_v39, %v2093_v29  ;;  %v2148_v41 = vadd.f32 %v2143_v28, %v2092_v44  ;;  %4240 = vmatprep.subr.bf16.mxu0 %v6203_v48 }
 0x27f   :  { %v2171_v34 = vadd.f32 %v2169_v15, %v2149_v63  ;;  %3955 = vmatmul.mubr.msk.f32.gmra.mrb[6].mxu1 %vm1816_vm6, %v1799_v56  ;;  %v2170_v37 = vadd.f32 %v2169_v15, %v2148_v41  ;;  %v2427_v56 = vld [vmem:[%s6582_s8 + $0x30] sm:$0xff]  ;;  %v2428_v63 = vld [vmem:[%s6582_s8 + $0x38] sm:$0xff] }
 0x280   :  { %4198 = vmatpush3.bf16.msra.mxu1 %v6203_v48  ;;  %4242 = vmatpush3.bf16.msra.mxu0 %v6203_v48  ;;  %v6228_v28 = vpack.c.bf16 %v2428_v63, %v2427_v56 }
 0x281   :  { %v2173_v17 = vmul.f32 %v2171_v34, %v2171_v34  ;;  %v2172_v6 = vmul.f32 %v2170_v37, %v2170_v37  ;;  %4200 = vmatprep.subr.bf16.mxu1 %v6215_v58  ;;  %4244 = vmatprep.subr.bf16.mxu0 %v6215_v58  ;;  %v2429_v37 = vld [vmem:[%s6582_s8 + $0x40] sm:$0xff] }
 0x283   :  { %3998 = vmatprep.mubr.msk.f32.mxu0 %vm2190_vm7, %v2172_v6 }
 0x284   :  { %3999 = vmatmul.mubr.msk.f32.gmra.mrb[14].mxu0 %vm2190_vm7, %v2173_v17  ;;  %4202 = vmatpush3.bf16.msra.mxu1 %v6215_v58  ;;  %v2430_v17 = vld [vmem:[%s6582_s8 + $0x48] sm:$0x7f]  ;;  %vm2912_vm7 = vcmask 318464  }
 0x285   :  { %4246 = vmatpush3.bf16.msra.mxu0 %v6215_v58  ;;  %4204 = vmatprep.subr.bf16.mxu1 %v6228_v28 }
 0x286   :  { %4248 = vmatprep.subr.bf16.mxu0 %v6228_v28 }
 0x288   :  { %4206 = vmatpush3.bf16.msra.mxu1 %v6228_v28 }
 0x289   :  { %4250 = vmatpush3.bf16.msra.mxu0 %v6228_v28 }
 0x2a2   :  { %v6163_v33 = vpop.f32.mrb[2].mxu0 }
 0x2a3   :  { %v6165_v46 = vpop.f32.mrb[3].mxu0 }
 0x2be   :  { %v6167_v20 = vpop.f32.mrb[4].mxu0 }
 0x2bf   :  { %v6169_v14 = vpop.f32.mrb[5].mxu0 }
 0x2de   :  { %v6171_v61 = vpop.f32.mrb[6].mxu0 }
 0x2df   :  { %v6173_v43 = vpop.f32.mrb[7].mxu0 }
 0x2fe   :  { %v3947_v7 = vpop.f32.mrb[0].mxu1 }
 0x2ff   :  { %4376 = vlog2.f32 %v3947_v7  ;;  %v1911_v22 = vpop.f32.mrb[1].mxu1  ;;  %v6246_v7 = vpack.c.bf16 %v2430_v17, %v2429_v37 }
 0x300   :  { %4378 = vlog2.f32 %v1911_v22 }
 0x301   :  { %4209 = vmatprep.subr.msk.bf16.mxu1 %vm6233_vm9, %v6246_v7  ;;  %4253 = vmatprep.subr.msk.bf16.mxu0 %vm6233_vm9, %v6246_v7 }
 0x302   :  { %4212 = vmatpush3.bf16.msk.msra.mxu1 %vm6233_vm9, %v6246_v7  ;;  %4256 = vmatpush3.bf16.msk.msra.mxu0 %vm6233_vm9, %v6246_v7 }
 0x303   :  { %4214 = vmatprep.subr.bf16.mxu1 %v6190_v4 }
 0x309   :  { %v4377_v26 = vpop.eup %4376 }
 0x30a   :  { %v4379_v50 = vpop.eup %4378  ;;  %v1953_v42 = vmul.f32 0.6931472, %v4377_v26 }
 0x30b   :  { %v1951_v3 = vmul.f32 0.6931472, %v4379_v50 }
 0x30c   :  { %2349 = vrot.lane.b32.xlu1 %v1953_v42, %s4542_s24 }
 0x30d   :  { %2347 = vrot.lane.b32.xlu0 %v1951_v3, %s4542_s24 }
 0x30e   :  { %v3991_v12 = vpop.f32.mrb[8].mxu0 }
 0x30f   :  { %v2284_v0 = vpop.f32.mrb[9].mxu0 }
 0x310   :  { %4380 = vlog2.f32 %v2284_v0 }
 0x311   :  { %4382 = vlog2.f32 %v3991_v12 }
 0x31a   :  { %v4381_v2 = vpop.eup %4380 }
 0x31b   :  { %v2324_v23 = vmul.f32 0.6931472, %v4381_v2  ;;  %v4383_v13 = vpop.eup %4382  ;;  %v2923_v2 = vld [vmem:[%s6584_s10] sm:$0xff]  ;;  %s6278_s10 = sld [smem:[#allocation7 + $0x180]] }
 0x31c   :  { %v2326_v40 = vmul.f32 0.6931472, %v4383_v13 }
 0x31d   :  { %2379 = vrot.lane.b32.xlu0 %v2324_v23, %s4543_s1  ;;  %v4544_v23 = vmov 0  }
 0x31e   :  { %4375 = vset.pattern.permute.xlu0 %v4544_v23 }
 0x321   :  { %2381 = vrot.lane.b32.xlu0 %v2326_v40, %s4543_s1 }
 0x322   :  { %v3950_v19 = vpop.f32.mrb[2].mxu1 }
 0x323   :  { %v1921_v24 = vpop.f32.mrb[3].mxu1 }
 0x324   :  { %4384 = vlog2.f32 %v1921_v24 }
 0x325   :  { %4386 = vlog2.f32 %v3950_v19 }
 0x32e   :  { %v4385_v60 = vpop.eup %4384  ;;  %v3994_v38 = vpop.f32.mrb[10].mxu0 }
 0x32f   :  { %v1955_v54 = vmul.f32 0.6931472, %v4385_v60  ;;  %v2294_v25 = vpop.f32.mrb[11].mxu0  ;;  %v4387_v9 = vpop.eup %4386 }
 0x330   :  { %4388 = vlog2.f32 %v2294_v25  ;;  %v1957_v5 = vmul.f32 0.6931472, %v4387_v9  ;;  %v2777_v9 = vstv %s6278_s10 }
 0x331   :  { %2351 = vrot.lane.b32.xlu1 %v1955_v54, %s4542_s24  ;;  %4390 = vlog2.f32 %v3994_v38  ;;  %v2551_v54 = vstv %s6273_s27 }
 0x335   :  { %2353 = vrot.lane.b32.xlu1 %v1957_v5, %s4542_s24 }
 0x33a   :  { %v4389_v36 = vpop.eup %4388 }
 0x33b   :  { %v2328_v1 = vmul.f32 0.6931472, %v4389_v36  ;;  %v4391_v57 = vpop.eup %4390 }
 0x33c   :  { %v2330_v53 = vmul.f32 0.6931472, %v4391_v57 }
 0x33d   :  { %2383 = vrot.lane.b32.xlu0 %v2328_v1, %s4543_s1 }
 0x33e   :  { %v3953_v59 = vpop.f32.mrb[4].mxu1 }
 0x33f   :  { %v1931_v27 = vpop.f32.mrb[5].mxu1 }
 0x340   :  { %4392 = vlog2.f32 %v1931_v27 }
 0x341   :  { %2385 = vrot.lane.b32.xlu0 %v2330_v53, %s4543_s1  ;;  %4394 = vlog2.f32 %v3953_v59  ;;  %v2436_v53 = vstv %s6280_s20 }
 0x34a   :  { %v4393_v55 = vpop.eup %4392  ;;  %v3997_v62 = vpop.f32.mrb[12].mxu0 }
 0x34b   :  { %v1959_v45 = vmul.f32 0.6931472, %v4393_v55  ;;  %v4395_v11 = vpop.eup %4394  ;;  %v2304_v52 = vpop.f32.mrb[13].mxu0 }
 0x34c   :  { %4396 = vlog2.f32 %v2304_v52  ;;  %v1961_v35 = vmul.f32 0.6931472, %v4395_v11  ;;  %v2554_v52 = vstv %s6282_s6 }
 0x34d   :  { %2355 = vrot.lane.b32.xlu1 %v1959_v45, %s4542_s24  ;;  %4398 = vlog2.f32 %v3997_v62 }
 0x351   :  { %2357 = vrot.lane.b32.xlu1 %v1961_v35, %s4542_s24 }
 0x352   :  { %v3956_v10 = vpop.f32.mrb[6].mxu1 }
 0x353   :  { %v1941_v30 = vpop.f32.mrb[7].mxu1 }
 0x354   :  { %4400 = vlog2.f32 %v1941_v30 }
 0x355   :  { %4402 = vlog2.f32 %v3956_v10  ;;  %v2558_v10 = vstv %s6290_s15 }
 0x356   :  { %v4397_v8 = vpop.eup %4396 }
 0x357   :  { %v2332_v29 = vmul.f32 0.6931472, %v4397_v8  ;;  %v4000_v44 = vpop.f32.mrb[14].mxu0  ;;  %v4399_v15 = vpop.eup %4398  ;;  %v2784_v8 = vstv %s6295_s30 }
 0x358   :  { %4404 = vlog2.f32 %v4000_v44  ;;  %v2314_v39 = vpop.f32.mrb[15].mxu0  ;;  %v2334_v41 = vmul.f32 0.6931472, %v4399_v15 }
 0x359   :  { %4406 = vlog2.f32 %v2314_v39  ;;  %2387 = vrot.lane.b32.xlu0 %v2332_v29, %s4543_s1 }
 0x35a   :  { %4408 = vlog2.f32 %v6088_v18 }
 0x35b   :  { %4410 = vlog2.f32 %v6085_v21 }
 0x35c   :  { %4412 = vlog2.f32 %v6163_v33 }
 0x35d   :  { %2389 = vrot.lane.b32.xlu0 %v2334_v41, %s4543_s1  ;;  %4414 = vlog2.f32 %v6165_v46 }
 0x35e   :  { %v4401_v6 = vpop.eup %4400  ;;  %4416 = vlog2.f32 %v6169_v14 }
 0x35f   :  { %v1963_v22 = vmul.f32 0.6931472, %v4401_v6  ;;  %v4403_v26 = vpop.eup %4402  ;;  %4418 = vlog2.f32 %v6167_v20  ;;  %v2446_v20 = vstv %s6318_s17 }
 0x360   :  { %v1965_v42 = vmul.f32 0.6931472, %v4403_v26  ;;  %4420 = vlog2.f32 %v6171_v61 }
 0x361   :  { %2359 = vrot.lane.b32.xlu1 %v1963_v22, %s4542_s24  ;;  %4422 = vlog2.f32 %v6173_v43 }
 0x362   :  { %v4405_v50 = vpop.eup %4404 }
 0x363   :  { %v4407_v3 = vpop.eup %4406  ;;  %v2338_v0 = vmul.f32 0.6931472, %v4405_v50 }
 0x364   :  { %v2336_v12 = vmul.f32 0.6931472, %v4407_v3  ;;  %v4409_v40 = vpop.eup %4408 }
 0x365   :  { %2361 = vrot.lane.b32.xlu1 %v1965_v42, %s4542_s24  ;;  %s6271_s24 = sld [smem:[#allocation7]]  ;;  %v1353_v19 = vmul.f32 0.6931472, %v4409_v40  ;;  %v4411_v21 = vpop.eup %4410 }
 0x366   :  { %2391 = vrot.lane.b32.xlu0 %v2336_v12, %s4543_s1  ;;  %v1355_v38 = vmul.f32 0.6931472, %v4411_v21  ;;  %v4413_v36 = vpop.eup %4412 }
 0x367   :  { %v4415_v57 = vpop.eup %4414  ;;  %v1359_v35 = vmul.f32 0.6931472, %v4413_v36 }
 0x368   :  { %v1357_v31 = vmul.f32 0.6931472, %v4415_v57 }
 0x369   :  { %2393 = vrot.lane.b32.xlu1 %v2338_v0, %s4543_s1  ;;  %s6276_s1 = sld [smem:[#allocation7 + $0x100]] }
 0x36a   :  { %2928 = vperm.xlu0 %4375, %v2923_v2  }
 0x36b   :  { %v2433_v24 = vstv %s6271_s24 }
 0x36f   :  { %v2664_v25 = vstv %s6276_s1 }
 0x37e   :  { %v2350_v33 = vpop.permute.xlu1 %2349 }
 0x37f   :  { %v2348_v13 = vpop.permute.xlu0 %2347  ;;  %v2405_v59 = vsel %vm2403_vm10, %v1355_v38, %v2350_v33 }
 0x380   :  { %v2404_v46 = vsel %vm2403_vm10, %v1353_v19, %v2348_v13 }
 0x38f   :  { %v2380_v18 = vpop.permute.xlu0 %2379 }
 0x390   :  { %v2413_v60 = vsel %vm2412_vm11, %v2404_v46, %v2380_v18 }
 0x391   :  { %v2434_v27 = vmul.f32 %v2433_v24, %v2413_v60  ;;  %v2552_v55 = vmul.f32 %v2551_v54, %v2413_v60  ;;  %v2665_v45 = vmul.f32 %v2664_v25, %v2413_v60  ;;  %v2778_v62 = vmul.f32 %v2777_v9, %v2413_v60 }
 0x393   :  { %v2382_v5 = vpop.permute.xlu0 %2381  ;;  %v2437_v30 = vadd.f32 %v2436_v53, %v2434_v27  ;;  %v2555_v29 = vadd.f32 %v2554_v52, %v2552_v55  ;;  %v2668_v44 = vadd.f32 %v2667_v51, %v2665_v45  ;;  %v2781_v15 = vadd.f32 %v2780_v32, %v2778_v62 }
 0x394   :  { %v2414_v11 = vsel %vm2412_vm11, %v2405_v59, %v2382_v5  ;;  %v2564_v59 = vstv %s6320_s22  ;;  %v2790_v27 = vstv %s6324_s3  ;;  %s4549_s22 = smov [#allocation10]  }
 0x395   :  { %v2435_v49 = vmul.f32 %v2433_v24, %v2414_v11  ;;  %v2553_v41 = vmul.f32 %v2551_v54, %v2414_v11  ;;  %v2666_v37 = vmul.f32 %v2664_v25, %v2414_v11  ;;  %v2779_v17 = vmul.f32 %v2777_v9, %v2414_v11 }
 0x397   :  { %v2438_v3 = vadd.f32 %v2436_v53, %v2435_v49  ;;  %v2556_v18 = vadd.f32 %v2554_v52, %v2553_v41  ;;  %v2669_v19 = vadd.f32 %v2667_v51, %v2666_v37  ;;  %v2782_v21 = vadd.f32 %v2780_v32, %v2779_v17 }
 0x398   :  { %v2677_v53 = vstv %s6322_s5  ;;  %s3533_s5 = sshll.u32 %s4549_s22, 4  ;;  %s3534_s5 = int_to_ptr.vmem [resolvable:$true] %s3533_s5 }
 0x399   :  { %p4491_p7 = scmp.lt.s32.totalorder %s3534_s5, %s3534_s5 }
 0x3a3   :  { %v2352_v1 = vpop.permute.xlu1 %2351 }
 0x3a4   :  { %v2406_v39 = vsel %vm2403_vm10, %v1357_v31, %v2352_v1  ;;  %v4417_v1 = vpop.eup %4416 }
 0x3a5   :  { %v4419_v57 = vpop.eup %4418  ;;  %v1361_v14 = vmul.f32 0.6931472, %v4417_v1 }
 0x3a6   :  { %v1363_v11 = vmul.f32 0.6931472, %v4419_v57 }
 0x3a7   :  { %v2354_v56 = vpop.permute.xlu1 %2353 }
 0x3a8   :  { %v2407_v12 = vsel %vm2403_vm10, %v1359_v35, %v2354_v56 }
 0x3af   :  { %v2384_v63 = vpop.permute.xlu0 %2383 }
 0x3b0   :  { %v2415_v6 = vsel %vm2412_vm11, %v2406_v39, %v2384_v63  ;;  %v4421_v39 = vpop.eup %4420 }
 0x3b1   :  { %v2441_v22 = vmul.f32 %v2440_v16, %v2415_v6  ;;  %v2559_v26 = vmul.f32 %v2558_v10, %v2415_v6  ;;  %v2672_v50 = vmul.f32 %v2671_v47, %v2415_v6  ;;  %v2785_v42 = vmul.f32 %v2784_v8, %v2415_v6  ;;  %v4423_v63 = vpop.eup %4422 }
 0x3b3   :  { %v2443_v0 = vadd.f32 %v2441_v22, %v2437_v30  ;;  %v2561_v2 = vadd.f32 %v2559_v26, %v2555_v29  ;;  %v2674_v23 = vadd.f32 %v2672_v50, %v2668_v44  ;;  %v2787_v13 = vadd.f32 %v2785_v42, %v2781_v15  ;;  %v2386_v40 = vpop.permute.xlu0 %2385 }
 0x3b4   :  { %v2416_v33 = vsel %vm2412_vm11, %v2407_v12, %v2386_v40  ;;  %v1367_v22 = vmul.f32 0.6931472, %v4421_v39  ;;  %v1365_v26 = vmul.f32 0.6931472, %v4423_v63  ;;  %v2452_v42 = vstv %s6335_s18 }
 0x3b5   :  { %v2442_v46 = vmul.f32 %v2440_v16, %v2416_v33  ;;  %v2560_v24 = vmul.f32 %v2558_v10, %v2416_v33  ;;  %v2673_v60 = vmul.f32 %v2671_v47, %v2416_v33  ;;  %v2786_v38 = vmul.f32 %v2784_v8, %v2416_v33 }
 0x3b6   :  { %v2683_v12 = vstv %s6339_s23 }
 0x3b7   :  { %v2444_v54 = vadd.f32 %v2442_v46, %v2438_v3  ;;  %v2562_v25 = vadd.f32 %v2560_v24, %v2556_v18  ;;  %v2675_v9 = vadd.f32 %v2673_v60, %v2669_v19  ;;  %v2788_v5 = vadd.f32 %v2786_v38, %v2782_v21 }
 0x3b8   :  { %v2570_v3 = vstv %s6337_s21 }
 0x3bf   :  { %v2356_v36 = vpop.permute.xlu1 %2355 }
 0x3c0   :  { %v2408_v55 = vsel %vm2403_vm10, %v1361_v14, %v2356_v36 }
 0x3c3   :  { %v2358_v45 = vpop.permute.xlu1 %2357 }
 0x3c4   :  { %v2409_v61 = vsel %vm2403_vm10, %v1363_v11, %v2358_v45 }
 0x3cb   :  { %v2388_v62 = vpop.permute.xlu0 %2387 }
 0x3cc   :  { %v2417_v52 = vsel %vm2412_vm11, %v2408_v55, %v2388_v62 }
 0x3cd   :  { %v2447_v51 = vmul.f32 %v2446_v20, %v2417_v52  ;;  %v2565_v32 = vmul.f32 %v2564_v59, %v2417_v52  ;;  %v2678_v35 = vmul.f32 %v2677_v53, %v2417_v52  ;;  %v2791_v31 = vmul.f32 %v2790_v27, %v2417_v52 }
 0x3cf   :  { %v2449_v43 = vadd.f32 %v2447_v51, %v2443_v0  ;;  %v2567_v16 = vadd.f32 %v2565_v32, %v2561_v2  ;;  %v2680_v10 = vadd.f32 %v2678_v35, %v2674_v23  ;;  %v2793_v30 = vadd.f32 %v2791_v31, %v2787_v13  ;;  %v2390_v49 = vpop.permute.xlu0 %2389 }
 0x3d0   :  { %v2418_v47 = vsel %vm2412_vm11, %v2409_v61, %v2390_v49  ;;  %v2796_v0 = vstv %s6341_s2 }
 0x3d1   :  { %v2448_v8 = vmul.f32 %v2446_v20, %v2418_v47  ;;  %v2566_v29 = vmul.f32 %v2564_v59, %v2418_v47  ;;  %v2679_v44 = vmul.f32 %v2677_v53, %v2418_v47  ;;  %v2792_v15 = vmul.f32 %v2790_v27, %v2418_v47 }
 0x3d3   :  { %v2360_v56 = vpop.permute.xlu1 %2359  ;;  %v2450_v41 = vadd.f32 %v2448_v8, %v2444_v54  ;;  %v2568_v37 = vadd.f32 %v2566_v29, %v2562_v25  ;;  %v2681_v17 = vadd.f32 %v2679_v44, %v2675_v9  ;;  %v2794_v6 = vadd.f32 %v2792_v15, %v2788_v5 }
 0x3d4   :  { %v2410_v2 = vsel %vm2403_vm10, %v1365_v26, %v2360_v56 }
 0x3d7   :  { %v2362_v50 = vpop.permute.xlu1 %2361 }
 0x3d8   :  { %v2392_v23 = vpop.permute.xlu0 %2391  ;;  %v2411_v13 = vsel %vm2403_vm10, %v1367_v22, %v2362_v50  ;;  %vm2941_vm10 = vcmask 228352  }
 0x3d9   :  { %v2419_v40 = vsel %vm2412_vm11, %v2410_v2, %v2392_v23 }
 0x3da   :  { %v2453_v18 = vmul.f32 %v2452_v42, %v2419_v40  ;;  %v2571_v19 = vmul.f32 %v2570_v3, %v2419_v40  ;;  %v2684_v21 = vmul.f32 %v2683_v12, %v2419_v40  ;;  %v2797_v33 = vmul.f32 %v2796_v0, %v2419_v40 }
 0x3db   :  { %v2394_v46 = vpop.permute.xlu1 %2393 }
 0x3dc   :  { %v2420_v24 = vsel %vm2412_vm11, %v2411_v13, %v2394_v46  ;;  %v2455_v60 = vadd.f32 %v2453_v18, %v2449_v43  ;;  %v2573_v38 = vadd.f32 %v2571_v19, %v2567_v16  ;;  %v2686_v54 = vadd.f32 %v2684_v21, %v2680_v10 }
 0x3dd   :  { %v2799_v25 = vadd.f32 %v2797_v33, %v2793_v30  ;;  %v2454_v9 = vmul.f32 %v2452_v42, %v2420_v24  ;;  %v2572_v5 = vmul.f32 %v2570_v3, %v2420_v24  ;;  %v2685_v36 = vmul.f32 %v2683_v12, %v2420_v24 }
 0x3de   :  { %v2798_v1 = vmul.f32 %v2796_v0, %v2420_v24  ;;  %vm2457_vm13 = vcmp.ge.f32.partialorder %v2455_v60, 0.0  ;;  %v2459_v57 = vmul.f32 0.01, %v2455_v60  ;;  %vm2688_vm14 = vcmp.ge.f32.partialorder %v2686_v54, 0.0 }
 0x3df   :  { %v2690_v14 = vmul.f32 0.01, %v2686_v54  ;;  %v2456_v20 = vadd.f32 %v2454_v9, %v2450_v41  ;;  %v2574_v59 = vadd.f32 %v2572_v5, %v2568_v37  ;;  %v2687_v53 = vadd.f32 %v2685_v36, %v2681_v17  ;;  %v2922_v41 = vld [vmem:[%s6583_s9 + $0x8] sm:$0xff]  ;;  %v2921_v37 = vld [vmem:[%s6583_s9] sm:$0xff] }
 0x3e0   :  { %v2800_v27 = vadd.f32 %v2798_v1, %v2794_v6  ;;  %v2461_v55 = vsel %vm2457_vm13, %v2455_v60, %v2459_v57  ;;  %vm2575_vm15 = vcmp.ge.f32.partialorder %v2573_v38, 0.0  ;;  %v2577_v62 = vmul.f32 0.01, %v2573_v38 }
 0x3e1   :  { %v2692_v45 = vsel %vm2688_vm14, %v2686_v54, %v2690_v14  ;;  %v2460_v11 = vmul.f32 0.01, %v2456_v20  ;;  %v2691_v52 = vmul.f32 0.01, %v2687_v53  ;;  %4021 = vmatprep.mubr.msk.f32.mxu1 %vm2463_vm12, %v2461_v55  ;;  %vm2458_vm0 = vcmp.ge.f32.partialorder %v2456_v20, 0.0 }
 0x3e2   :  { %4067 = vmatprep.mubr.msk.f32.mxu0 %vm2463_vm12, %v2692_v45  ;;  %vm2689_vm2 = vcmp.ge.f32.partialorder %v2687_v53, 0.0  ;;  %v2579_v35 = vsel %vm2575_vm15, %v2573_v38, %v2577_v62  ;;  %v2578_v31 = vmul.f32 0.01, %v2574_v59  ;;  %vm2576_vm3 = vcmp.ge.f32.partialorder %v2574_v59, 0.0 }
 0x3e3   :  { %v2462_v51 = vsel %vm2458_vm0, %v2456_v20, %v2460_v11  ;;  %v2693_v32 = vsel %vm2689_vm2, %v2687_v53, %v2691_v52  ;;  %v2803_v61 = vmul.f32 0.01, %v2799_v25  ;;  %vm2801_vm5 = vcmp.ge.f32.partialorder %v2799_v25, 0.0 }
 0x3e4   :  { %4022 = vmatmul.mubr.msk.f32.vlgmr.msra.gmra.mrb[8].mxu1 %vm2463_vm12, %v2462_v51  ;;  %4068 = vmatmul.mubr.msk.f32.vlgmr.msra.gmra.mrb[16].mxu0 %vm2463_vm12, %v2693_v32  ;;  %v2580_v43 = vsel %vm2576_vm3, %v2574_v59, %v2578_v31  ;;  %v2804_v10 = vmul.f32 0.01, %v2800_v27  ;;  %vm2802_vm6 = vcmp.ge.f32.partialorder %v2800_v27, 0.0  ;;  %v4547_v51 = vmov 0.0  }
 0x3e5   :  { %4216 = vmatpush3.bf16.msra.mxu1 %v6190_v4  ;;  %4044 = vmatprep.mubr.msk.f32.mxu1 %vm2463_vm12, %v2579_v35  ;;  %v2805_v16 = vsel %vm2801_vm5, %v2799_v25, %v2803_v61  ;;  %vm3183_vm15 = vcmask 1043456   ;;  %vm3264_vm3 = vcmask 130048   ;;  %vm3525_vm5 = vcmask 123904  }
 0x3e6   :  { %4218 = vmatprep.subr.bf16.mxu1 %v6203_v48  ;;  %vm6519_vm0 = vmpackc.low %vm3183_vm15, %vm4540_vm1 }
 0x3e9   :  { %4220 = vmatpush3.bf16.msra.mxu1 %v6203_v48  ;;  %v2929_v44 = vpop.permute.xlu0 %2928 }
 0x3ea   :  { %4222 = vmatprep.subr.bf16.mxu1 %v6215_v58 }
 0x3ed   :  { %4224 = vmatpush3.bf16.msra.mxu1 %v6215_v58 }
 0x3ee   :  { %4226 = vmatprep.subr.bf16.mxu1 %v6228_v28 }
 0x3f1   :  { %4228 = vmatpush3.bf16.msra.mxu1 %v6228_v28 }
 0x3f2   :  { %4231 = vmatprep.subr.msk.bf16.mxu1 %vm6233_vm9, %v6246_v7 }
 0x3f5   :  { %4234 = vmatpush3.bf16.msk.msra.mxu1 %vm6233_vm9, %v6246_v7 }
 0x3f6   :  { %4258 = vmatprep.subr.bf16.mxu1 %v6190_v4 }
 0x3f8   :  { %4045 = vmatmul.mubr.msk.f32.vlgmr.msra.gmra.mrb[10].mxu1 %vm2463_vm12, %v2580_v43 }
 0x3f9   :  { %4260 = vmatpush3.bf16.msra.mxu1 %v6190_v4  ;;  %4090 = vmatprep.mubr.msk.f32.mxu1 %vm2463_vm12, %v2805_v16  ;;  %v2806_v4 = vsel %vm2802_vm6, %v2800_v27, %v2804_v10 }
 0x3fa   :  { %4262 = vmatprep.subr.bf16.mxu1 %v6203_v48 }
 0x3fd   :  { %4264 = vmatpush3.bf16.msra.mxu1 %v6203_v48 }
 0x3fe   :  { %4266 = vmatprep.subr.bf16.mxu1 %v6215_v58 }
 0x401   :  { %4268 = vmatpush3.bf16.msra.mxu1 %v6215_v58 }
 0x402   :  { %4270 = vmatprep.subr.bf16.mxu1 %v6228_v28 }
 0x405   :  { %4272 = vmatpush3.bf16.msra.mxu1 %v6228_v28 }
 0x406   :  { %4275 = vmatprep.subr.msk.bf16.mxu1 %vm6233_vm9, %v6246_v7 }
 0x409   :  { %4278 = vmatpush3.bf16.msk.msra.mxu1 %vm6233_vm9, %v6246_v7  ;;  %vm2918_vm9 = vcmask 957440  }
 0x40c   :  { %4091 = vmatmul.mubr.msk.f32.vlgmr.msra.gmra.mrb[12].mxu1 %vm2463_vm12, %v2806_v4  ;;  %vm3084_vm12 = vcmask 64512  }
 0x40d   :  { %3436 = vmatprep.mubr.f32.mxu1 %v4547_v51 }
 0x4b7   :  { %v4023_v48 = vpop.f32.mrb[8].mxu1  ;;  %v4069_v30 = vpop.f32.mrb[16].mxu0 }
 0x4b8   :  { %2900 = vrot.lane.b32.xlu1 %v4069_v30, %s4545_s25  ;;  %v2540_v58 = vpop.f32.mrb[9].mxu1  ;;  %v2766_v49 = vpop.f32.mrb[17].mxu0 }
 0x4b9   :  { %2898 = vrot.lane.b32.xlu0 %v2766_v49, %s4545_s25 }
 0x4cb   :  { %v4046_v28 = vpop.f32.mrb[10].mxu1 }
 0x4cc   :  { %2892 = vrot.lane.b32.xlu1 %v4046_v28, %s4546_s0  ;;  %v2653_v47 = vpop.f32.mrb[11].mxu1 }
 0x4d0   :  { %2890 = vrot.lane.b32.xlu1 %v2653_v47, %s4546_s0  ;;  %v6412_v47 = vld [vmem:[%s6585_s11] sm:$0xff] }
 0x4df   :  { %v4092_v8 = vpop.f32.mrb[12].mxu1 }
 0x4e0   :  { %2908 = vrot.lane.b32.xlu1 %v4092_v8, %s4532_s26  ;;  %v2879_v34 = vpop.f32.mrb[13].mxu1 }
 0x4e1   :  { %2906 = vrot.lane.b32.xlu0 %v2879_v34, %s4532_s26 }
 0x52a   :  { %v2901_v7 = vpop.permute.xlu1 %2900 }
 0x52b   :  { %v2899_v39 = vpop.permute.xlu0 %2898 }
 0x53e   :  { %v2893_v29 = vpop.permute.xlu1 %2892 }
 0x53f   :  { %v2914_v56 = vsel %vm2912_vm7, %v4023_v48, %v2893_v29 }
 0x540   :  { %v2917_v17 = vsel %vm2915_vm8, %v2914_v56, %v2901_v7  ;;  %v4548_v56 = vmov 0.0|0.0  }
 0x542   :  { %v2891_v15 = vpop.permute.xlu1 %2890 }
 0x543   :  { %v2913_v63 = vsel %vm2912_vm7, %v2540_v58, %v2891_v15  ;;  %v2980_v58 = vlaneseq }
 0x544   :  { %v2916_v50 = vsel %vm2915_vm8, %v2913_v63, %v2899_v39 }
 0x545   :  { %v2981_v49 = vshrl.u32 %v2980_v58, 7  ;;  %v2983_v28 = vand.u32 127, %v2980_v58 }
 0x547   :  { %vm2984_vm11 = vcmp.eq.s32.totalorder %v2981_v49, %v2983_v28 }
 0x548   :  { %v6416_v29 = vsel %vm2984_vm11, 1.0, %v4547_v51 }
 0x552   :  { %v2909_v6 = vpop.permute.xlu1 %2908 }
 0x553   :  { %v2920_v22 = vsel %vm2918_vm9, %v2917_v17, %v2909_v6  ;;  %v2936_v26 = vmul.f32 %v2922_v41, %v2909_v6  ;;  %v2907_v42 = vpop.permute.xlu0 %2906 }
 0x554   :  { %v2935_v3 = vmul.f32 %v2921_v37, %v2920_v22  ;;  %v2919_v12 = vsel %vm2918_vm9, %v2916_v50, %v2907_v42  ;;  %v2925_v0 = vmul.f32 %v2922_v41, %v2907_v42 }
 0x555   :  { %v2938_v2 = vsub.f32 %v2936_v26, %v2929_v44  ;;  %v2924_v23 = vmul.f32 %v2921_v37, %v2919_v12 }
 0x556   :  { %v2937_v13 = vsub.f32 %v2935_v3, %v2929_v44  ;;  %v2932_v40 = vsub.f32 %v2925_v0, %v2929_v44  ;;  %v2987_v0 = vld [vmem:[%s6586_s12] sm:$0xff] }
 0x557   :  { %v2940_v18 = vmax.f32 %v2938_v2, 0.0  ;;  %v2931_v19 = vsub.f32 %v2924_v23, %v2929_v44  ;;  %v2988_v2 = vld [vmem:[%s6586_s12 + $0x8] sm:$0xff] }
 0x558   :  { %v2939_v21 = vmax.f32 %v2937_v13, 0.0  ;;  %v2934_v33 = vmax.f32 %v2932_v40, 0.0 }
 0x559   :  { %v2933_v46 = vmax.f32 %v2931_v19, 0.0  ;;  %v2947_v24 = vsel %vm2941_vm10, %v2940_v18, 0.0 }
 0x55a   :  { %v2948_v60 = vadd.f32 %v2947_v24, %v2939_v21  ;;  %v2942_v38 = vsel %vm2941_vm10, %v2934_v33, 0.0  ;;  %v2991_v24 = vld [vmem:[%s6586_s12 + $0x20] sm:$0xff] }
 0x55b   :  { %v2943_v54 = vadd.f32 %v2942_v38, %v2933_v46 }
 0x55c   :  { %2949 = vadd.xlane.f32.xlu1 %v2948_v60  ;;  %v2992_v60 = vld [vmem:[%s6586_s12 + $0x28] sm:$0xff] }
 0x55d   :  { %2944 = vadd.xlane.f32.xlu0 %v2943_v54  ;;  %v6450_v38 = vpack.c.bf16 %v2992_v60, %v2991_v24  ;;  %v2993_v54 = vld [vmem:[%s6586_s12 + $0x30] sm:$0xff] }
 0x5e9   :  { %v2950_v25 = vpop.xlane.xlu1 %2949 }
 0x5ea   :  { %v2945_v9 = vpop.xlane.xlu0 %2944 }
 0x5eb   :  { %v2951_v5 = vadd.f32 %v2950_v25, %v2945_v9  ;;  %v2994_v25 = vld [vmem:[%s6586_s12 + $0x38] sm:$0xff] }
 0x5ec   :  { %v6460_v9 = vpack.c.bf16 %v2994_v25, %v2993_v54 }
 0x5ed   :  { %v2953_v36 = vmul.f32 0.0032051282, %v2951_v5  ;;  %v2995_v5 = vld [vmem:[%s6586_s12 + $0x40] sm:$0xff] }
 0x5ef   :  { %v2954_v1 = vsub.f32 %v2933_v46, %v2953_v36  ;;  %v2955_v57 = vsub.f32 %v2934_v33, %v2953_v36  ;;  %v2957_v14 = vsub.f32 %v2940_v18, %v2953_v36  ;;  %v2956_v20 = vsub.f32 %v2939_v21, %v2953_v36  ;;  %v2989_v21 = vld [vmem:[%s6586_s12 + $0x10] sm:$0xff]  ;;  %v2990_v33 = vld [vmem:[%s6586_s12 + $0x18] sm:$0xff]  ;;  %v2996_v36 = vld [vmem:[%s6586_s12 + $0x48] sm:$0xff] }
 0x5f0   :  { %v6430_v18 = vpack.c.bf16 %v2988_v2, %v2987_v0  ;;  %v6440_v46 = vpack.c.bf16 %v2990_v33, %v2989_v21 }
 0x5f1   :  { %v2958_v59 = vmul.f32 %v2954_v1, %v2954_v1  ;;  %v2959_v53 = vmul.f32 %v2955_v57, %v2955_v57  ;;  %v2966_v27 = vmul.f32 %v2957_v14, %v2957_v14  ;;  %v2965_v62 = vmul.f32 %v2956_v20, %v2956_v20 }
 0x5f3   :  { %v2960_v55 = vsel %vm2941_vm10, %v2959_v53, 0.0  ;;  %v2967_v11 = vsel %vm2941_vm10, %v2966_v27, 0.0  ;;  %v3000_v53 = vld [vmem:[%s6586_s12 + $0x68] sm:$0xff] }
 0x5f4   :  { %v2961_v45 = vadd.f32 %v2960_v55, %v2958_v59  ;;  %v2968_v52 = vadd.f32 %v2967_v11, %v2965_v62  ;;  %v2999_v59 = vld [vmem:[%s6586_s12 + $0x60] sm:$0xff]  ;;  %v3001_v55 = vld [vmem:[%s6586_s12 + $0x70] sm:$0xff] }
 0x5f5   :  { %v6490_v27 = vpack.c.bf16 %v3000_v53, %v2999_v59  ;;  %v3003_v11 = vld [vmem:[%s6586_s12 + $0x80] sm:$0xff] }
 0x5f6   :  { %2962 = vadd.xlane.f32.xlu0 %v2961_v45  ;;  %v3002_v45 = vld [vmem:[%s6586_s12 + $0x78] sm:$0xff] }
 0x5f7   :  { %v6500_v62 = vpack.c.bf16 %v3002_v45, %v3001_v55 }
 0x5fa   :  { %2969 = vadd.xlane.f32.xlu0 %v2968_v52  ;;  %v3004_v52 = vld [vmem:[%s6586_s12 + $0x88] sm:$0xff] }
 0x683   :  { %v2963_v32 = vpop.xlane.xlu0 %2962 }
 0x687   :  { %v2970_v35 = vpop.xlane.xlu0 %2969 }
 0x688   :  { %v2971_v31 = vadd.f32 %v2970_v35, %v2963_v32  ;;  %v4304_v32 = vpack.c.bf16 %v3004_v52, %v3003_v11  ;;  %v3005_v35 = vld [vmem:[%s6586_s12 + $0x90] sm:$0xff] }
 0x68a   :  { %v2972_v61 = vmul.f32 0.0032051282, %v2971_v31  ;;  %v3006_v31 = vld [vmem:[%s6586_s12 + $0x98] sm:$0xf] }
 0x68c   :  { %v2973_v43 = vadd.f32 1e-05, %v2972_v61  ;;  %v4307_v61 = vpack.c.bf16 %v3006_v31, %v3005_v35 }
 0x68e   :  { %4424 = vrsqrt.f32 %v2973_v43 }
 0x698   :  { %v4425_v16 = vpop.eup %4424 }
 0x699   :  { %v2976_v10 = vmul.f32 %v4425_v16, %v2955_v57  ;;  %v6400_v4 = vmul.f32 %v4425_v16, %v2957_v14  ;;  %v2975_v48 = vmul.f32 %v4425_v16, %v2954_v1  ;;  %v6402_v30 = vmul.f32 %v4425_v16, %v2956_v20  ;;  %v2997_v57 = vld [vmem:[%s6586_s12 + $0x50] sm:$0xff]  ;;  %v2998_v14 = vld [vmem:[%s6586_s12 + $0x58] sm:$0xff] }
 0x69a   :  { %v6470_v1 = vpack.c.bf16 %v2996_v36, %v2995_v5  ;;  %v6480_v20 = vpack.c.bf16 %v2998_v14, %v2997_v57 }
 0x69b   :  { %3740 = vmatprep.subr.msk.mxu0 %vm2941_vm10, %v2976_v10  ;;  %3741 = vmatprep.mubr.msk.f32.mxu0 %vm2941_vm10, %v2976_v10 }
 0x69c   :  { %3372 = vmatprep.subr.mxu1 %v6400_v4  ;;  %3012 = vmatpush1.xpose.msra.mxu0 %v2975_v48 }
 0x69d   :  { %3373 = vmatpush1.msra.mxu1 %v6402_v30  ;;  %3109 = vmatprep.subr.mxu0 %v2976_v10 }
 0x69e   :  { %4310 = vmatprep.subr.bf16.mxu1 %v4548_v56 }
 0x69f   :  { %3076 = vmatmul.mubr.f32.vlgmr.msra.gmra.mrb[18].mxu0 %v2975_v48 }
 0x6a0   :  { %3110 = vmatpush1.msra.mxu0 %v2975_v48  ;;  %3173 = vmatprep.mubr.f32.mxu0 %v4547_v51 }
 0x6a1   :  { %4279 = vmatprep.subr.bf16.mxu0 %v4548_v56 }
 0x772   :  { %v3077_v8 = vpop.f32.mrb[18].mxu0 }
 0x773   :  { %v3081_v34 = vmul.f32 %v3077_v8, %v6412_v47  ;;  %v3079_v7 = vpop.f32.mrb[19].mxu0 }
 0x775   :  { %v3082_v44 = vmax.f32 %v3081_v34, 0.0 }
 0x777   :  { %v3083_v15 = vadd.f32 %v6416_v29, %v3082_v44 }
 0x779   :  { %v3085_v39 = vsel %vm3084_vm12, %v3083_v15, 0.0 }
 0x77a   :  { %3086 = vadd.xlane.f32.xlu1 %v3085_v39  ;;  %v3092_v63 = vrot.slane %v3085_v39, 4 }
 0x77c   :  { %v3093_v41 = vadd.f32 %v3092_v63, %v3085_v39 }
 0x77e   :  { %v3094_v37 = vrot.slane %v3093_v41, 2 }
 0x780   :  { %v3095_v17 = vadd.f32 %v3094_v37, %v3093_v41 }
 0x782   :  { %v3096_v6 = vrot.slane %v3095_v17, 1 }
 0x784   :  { %v3097_v22 = vadd.f32 %v3096_v6, %v3095_v17 }
 0x786   :  { %vm3098_vm13 = vcmp.eq.f32.partialorder %v3097_v22, 0.0 }
 0x787   :  { %v3743_v26 = vsel %vm3098_vm13, 1.0, %v4547_v51 }
 0x788   :  { %v3101_v3 = vadd.f32 %v3743_v26, %v3097_v22 }
 0x807   :  { %v3087_v50 = vpop.xlane.xlu1 %3086 }
 0x808   :  { %vm3088_vm14 = vcmp.eq.f32.partialorder %v3087_v50, 0.0 }
 0x809   :  { %v3742_v42 = vsel %vm3088_vm14, 1.0, %v4547_v51 }
 0x80a   :  { %v3091_v12 = vadd.f32 %v3742_v42, %v3087_v50 }
 0x80c   :  { %4426 = vrsqrt.f32 %v3091_v12  ;;  %v3747_v12 = vld [vmem:[%s6587_s13] ss:$0 sm:$0xff]  ;;  %s4486_s13 = scalar_lea.vmem %s3534_s5, 32 }
 0x80d   :  { %4428 = vrsqrt.f32 %v3101_v3  ;;  %p4487_p6 = scmp.ne.s32.totalorder %s3534_s5, %s4486_s13  ;;  %p4492_p8 = scmp.lt.s32.totalorder %s4486_s13, %s4486_s13 }
 0x80f   :  { %p4493_p9 = por %p4492_p8, %p4491_p7 }
 0x811   :  { %p4494_p10 = pnand %p4493_p9, %p4487_p6 }
 0x816   :  { %v4427_v23 = vpop.eup %4426 }
 0x817   :  { %v3103_v13 = vmul.f32 %v4427_v23, %v3083_v15  ;;  %v4429_v40 = vpop.eup %4428 }
 0x819   :  { %v3105_v19 = vmul.f32 %v4429_v40, %v3103_v13 }
 0x81b   :  { %3744 = vmatmul.mubr.msk.f32.vlgmr.msra.gmra.mrb[20].mxu0 %vm3084_vm12, %v3105_v19 }
 0x81c   :  { %4281 = vmatpush1.bf16.msra.mxu0 %v6430_v18 }
 0x81d   :  { %4282 = vmatprep.subr.bf16.mxu0 %v4548_v56 }
 0x820   :  { %4284 = vmatpush1.bf16.msra.mxu0 %v6440_v46 }
 0x821   :  { %4285 = vmatprep.subr.bf16.mxu0 %v4548_v56 }
 0x824   :  { %4287 = vmatpush1.bf16.msra.mxu0 %v6450_v38 }
 0x825   :  { %4288 = vmatprep.subr.bf16.mxu0 %v4548_v56 }
 0x828   :  { %4290 = vmatpush1.bf16.msra.mxu0 %v6460_v9 }
 0x829   :  { %4291 = vmatprep.subr.bf16.mxu0 %v4548_v56 }
 0x82c   :  { %4293 = vmatpush1.bf16.msra.mxu0 %v6470_v1 }
 0x82d   :  { %4294 = vmatprep.subr.bf16.mxu0 %v4548_v56 }
 0x830   :  { %4296 = vmatpush1.bf16.msra.mxu0 %v6480_v20 }
 0x831   :  { %4297 = vmatprep.subr.bf16.mxu0 %v4548_v56 }
 0x834   :  { %4299 = vmatpush1.bf16.msra.mxu0 %v6490_v27 }
 0x835   :  { %4300 = vmatprep.subr.bf16.mxu0 %v4548_v56 }
 0x838   :  { %4302 = vmatpush1.bf16.msra.mxu0 %v6500_v62 }
 0x839   :  { %4303 = vmatprep.subr.bf16.mxu0 %v4548_v56 }
 0x83c   :  { %4305 = vmatpush1.bf16.msra.mxu0 %v4304_v32 }
 0x83d   :  { %4306 = vmatprep.subr.bf16.mxu0 %v4548_v56 }
 0x840   :  { %4309 = vmatpush1.bf16.msk.msra.mxu0 %vm6519_vm0, %v4307_v61 }
 0x841   :  { %3748 = vmatprep.subr.msk.mxu0 %vm2941_vm10, %v6400_v4 }
 0x8ee   :  { %v3175_v16 = vpop.f32.mrb[20].mxu0 }
 0x8ef   :  { %v3177_v10 = vpop.f32.mrb[21].mxu0 }
 0x8f0   :  { %3746 = vmatprep.mubr.msk.f32.mxu0 %vm2941_vm10, %v3177_v10 }
 0x8f1   :  { %3252 = vmatmul.mubr.f32.vlgmr.msra.gmra.mrb[22].mxu0 %v3175_v16 }
 0x8f2   :  { %3276 = vmatpush1.xpose.msra.mxu0 %v6402_v30  ;;  %3749 = vmatprep.mubr.msk.f32.mxu0 %vm2941_vm10, %v6400_v4 }
 0x8f5   :  { %3340 = vmatmul.mubr.f32.vlgmr.msra.gmra.mrb[24].mxu0 %v6402_v30 }
 0x9c4   :  { %v3253_v48 = vpop.f32.mrb[22].mxu0 }
 0x9c5   :  { %v3255_v58 = vpop.f32.mrb[23].mxu0  ;;  %v3263_v0 = vsub.f32 %v3253_v48, %v3747_v12 }
 0x9c7   :  { %v3265_v2 = vsel %vm3264_vm3, %v3263_v0, 0.0 }
 0x9c8   :  { %v3341_v49 = vpop.f32.mrb[24].mxu0  ;;  %v3266_v23 = vrot.slane %v3265_v2, 4 }
 0x9c9   :  { %v3345_v28 = vmul.f32 %v3341_v49, %v6412_v47  ;;  %v3343_v8 = vpop.f32.mrb[25].mxu0 }
 0x9ca   :  { %v3267_v13 = vadd.f32 %v3266_v23, %v3265_v2 }
 0x9cb   :  { %v3346_v34 = vmax.f32 %v3345_v28, 0.0 }
 0x9cc   :  { %v3268_v19 = vrot.slane %v3267_v13, 2 }
 0x9cd   :  { %v3347_v7 = vadd.f32 %v6416_v29, %v3346_v34 }
 0x9cf   :  { %v3348_v44 = vsel %vm3084_vm12, %v3347_v7, 0.0 }
 0x9d0   :  { %3349 = vadd.xlane.f32.xlu0 %v3348_v44  ;;  %v3355_v15 = vrot.slane %v3348_v44, 4 }
 0x9d2   :  { %v3356_v39 = vadd.f32 %v3355_v15, %v3348_v44 }
 0x9d4   :  { %v3357_v63 = vrot.slane %v3356_v39, 2 }
 0x9d6   :  { %v3358_v41 = vadd.f32 %v3357_v63, %v3356_v39 }
 0x9d8   :  { %v3359_v37 = vrot.slane %v3358_v41, 1 }
 0x9da   :  { %v3360_v4 = vadd.f32 %v3359_v37, %v3358_v41 }
 0x9dc   :  { %vm3361_vm1 = vcmp.eq.f32.partialorder %v3360_v4, 0.0 }
 0x9dd   :  { %v3751_v30 = vsel %vm3361_vm1, 1.0, %v4547_v51 }
 0x9de   :  { %v3364_v6 = vadd.f32 %v3751_v30, %v3360_v4 }
 0xa5d   :  { %v3350_v17 = vpop.xlane.xlu0 %3349 }
 0xa5e   :  { %vm3351_vm2 = vcmp.eq.f32.partialorder %v3350_v17, 0.0 }
 0xa5f   :  { %v3750_v47 = vsel %vm3351_vm2, 1.0, %v4547_v51 }
 0xa60   :  { %v3354_v22 = vadd.f32 %v3750_v47, %v3350_v17 }
 0xa62   :  { %4430 = vrsqrt.f32 %v3354_v22 }
 0xa63   :  { %4432 = vrsqrt.f32 %v3364_v6 }
 0xa6c   :  { %v4431_v29 = vpop.eup %4430 }
 0xa6d   :  { %v3366_v26 = vmul.f32 %v4431_v29, %v3347_v7  ;;  %v4433_v50 = vpop.eup %4432 }
 0xa6f   :  { %v3368_v42 = vmul.f32 %v4433_v50, %v3366_v26 }
 0xa71   :  { %3752 = vmatmul.mubr.msk.f32.vlgmr.msra.gmra.mrb[14].mxu1 %vm3084_vm12, %v3368_v42 }
 0xa72   :  { %4312 = vmatpush1.bf16.msra.mxu1 %v6430_v18 }
 0xa73   :  { %4313 = vmatprep.subr.bf16.mxu1 %v4548_v56 }
 0xa76   :  { %4315 = vmatpush1.bf16.msra.mxu1 %v6440_v46  ;;  %v3269_v46 = vadd.f32 %v3268_v19, %v3267_v13 }
 0xa77   :  { %4316 = vmatprep.subr.bf16.mxu1 %v4548_v56 }
 0xa7a   :  { %4318 = vmatpush1.bf16.msra.mxu1 %v6450_v38  ;;  %v3270_v38 = vrot.slane %v3269_v46, 1 }
 0xa7b   :  { %4319 = vmatprep.subr.bf16.mxu1 %v4548_v56 }
 0xa7e   :  { %4321 = vmatpush1.bf16.msra.mxu1 %v6460_v9  ;;  %v3271_v9 = vadd.f32 %v3270_v38, %v3269_v46 }
 0xa7f   :  { %4322 = vmatprep.subr.bf16.mxu1 %v4548_v56 }
 0xa82   :  { %4324 = vmatpush1.bf16.msra.mxu1 %v6470_v1 }
 0xa83   :  { %4325 = vmatprep.subr.bf16.mxu1 %v4548_v56 }
 0xa86   :  { %4327 = vmatpush1.bf16.msra.mxu1 %v6480_v20 }
 0xa87   :  { %4328 = vmatprep.subr.bf16.mxu1 %v4548_v56 }
 0xa8a   :  { %4330 = vmatpush1.bf16.msra.mxu1 %v6490_v27 }
 0xa8b   :  { %4331 = vmatprep.subr.bf16.mxu1 %v4548_v56 }
 0xa8e   :  { %4333 = vmatpush1.bf16.msra.mxu1 %v6500_v62 }
 0xa8f   :  { %4334 = vmatprep.subr.bf16.mxu1 %v4548_v56 }
 0xa92   :  { %4336 = vmatpush1.bf16.msra.mxu1 %v4304_v32 }
 0xa93   :  { %4337 = vmatprep.subr.bf16.mxu1 %v4548_v56 }
 0xa96   :  { %4340 = vmatpush1.bf16.msk.msra.mxu1 %vm6519_vm0, %v4307_v61 }
 0xb44   :  { %v3438_v51 = vpop.f32.mrb[14].mxu1 }
 0xb45   :  { %v3440_v3 = vpop.f32.mrb[15].mxu1 }
 0xb46   :  { %3754 = vmatprep.mubr.msk.f32.mxu1 %vm2941_vm10, %v3440_v3 }
 0xb47   :  { %3511 = vmatmul.mubr.f32.vlgmr.msra.gmra.mrb[16].mxu1 %v3438_v51 }
 0xc1a   :  { %v3512_v40 = vpop.f32.mrb[16].mxu1 }
 0xc1b   :  { %v3516_v18 = vsub.f32 %v3512_v40, %v3747_v12  ;;  %v3514_v56 = vpop.f32.mrb[17].mxu1 }
 0xc1d   :  { %v3517_v21 = vsel %vm3264_vm3, %v3516_v18, 0.0 }
 0xc1e   :  { %v3518_v33 = vrot.slane %v3517_v21, 4 }
 0xc20   :  { %v3519_v24 = vadd.f32 %v3518_v33, %v3517_v21 }
 0xc22   :  { %v3520_v60 = vrot.slane %v3519_v24, 2 }
 0xc24   :  { %v3521_v54 = vadd.f32 %v3520_v60, %v3519_v24 }
 0xc26   :  { %v3522_v25 = vrot.slane %v3521_v54, 1 }
 0xc28   :  { %v3523_v5 = vadd.f32 %v3522_v25, %v3521_v54 }
 0xc2a   :  { %v3524_v36 = vsel %vm1841_vm4, %v3271_v9, %v3523_v5 }
 0xc2b   :  { %3526 = vst.msk [vmem:[#allocation10] sm:$0x3] %vm3525_vm5, %v3524_v36 }
 0xc2c   :  { %4497 = shalt.err (!%p4494_p10)
}
 0xc2d   :  { %s4498_s21 = scalar_lea.hbm %s6588_s14, 32 }
 0xc2e   :  { %p4499_p11 = scmp.ne.s32.totalorder %s6588_s14, %s4498_s21  ;;  %p4502_p12 = scmp.lt.u32.totalorder %s4498_s21, %s6588_s14 }
 0xc30   :  { %p4504_p13 = pnand %p4502_p12, %p4499_p11 }
 0xc32   :  { %4507 = shalt.err (!%p4504_p13)
}
 0xc33   :  { %3536 = dma.vmem_to_hbm [thread:$0]  %s3534_s5, 32, %s6588_s14, [#allocation3]  }
 0xc34   :  { %4514 = dma.done.wait [#allocation3], 32  }
 0xc35   :  { %4515 = vsyncadd [#allocation3], 4294967264 }
 0xc36   :  { %3540 = vsyncpa [#allocation3], 1 }
 0xc37   :  { %3541 = vsyncpa [#allocation4], 1 }
 0xc38   :  { %3542 = vsyncpa [#allocation6], 1 }
 0xc39   :  { %3543 = vsyncpa [#allocation9], 1 }

</bundles_post_ra>
